<compile_context>
chip_gen: v6e
topology: v6e:2x2x1
jax: 0.10.0
libtpu: 0.0.40
codegen_flags: <defaults>
</compile_context>

<pallas_src>
import functools

import numpy as np
import jax
import jax.numpy as jnp
from jax.experimental import pallas as pl
from jax.experimental.pallas import tpu as pltpu

# ----------------------------------------------------------------------------
# MS-SSIM configuration (mirrors pytorch_msssim.MS_SSIM defaults except win_size)
# ----------------------------------------------------------------------------
DATA_RANGE = 1.0          # MS_SSIM(data_range=1.0)  (dgmr feeds data in [0, 1])
WIN_SIZE = 3              # MS_SSIM(win_size=3)      (keeps small demo images valid)
WIN_SIGMA = 1.5
K1, K2 = 0.01, 0.03
WEIGHTS = np.array([0.0448, 0.2856, 0.3001, 0.2363, 0.1333], dtype=np.float32)
LEVELS = int(WEIGHTS.shape[0])
CONVERT_RANGE = False     # MS_SSIMLoss(convert_range=False)


def _fspecial_gauss_1d(size: int, sigma: float) -> np.ndarray:
    """Deterministic 1-D Gaussian window (the module's only 'parameter')."""
    coords = np.arange(size, dtype=np.float64) - size // 2
    g = np.exp(-(coords ** 2) / (2.0 * sigma ** 2))
    return (g / g.sum()).astype(np.float32)


# ----------------------------------------------------------------------------
# Host-side (numpy) constant matrices — built once per shape, passed as kernel inputs
# ----------------------------------------------------------------------------
def _band(n: int, taps: np.ndarray) -> np.ndarray:
    """(n-ws+1, n) 'valid' correlation matrix: out[r] = sum_k taps[k] * in[r+k]."""
    ws = len(taps)
    m = np.zeros((n - ws + 1, n), np.float32)
    for r in range(n - ws + 1):
        m[r, r:r + ws] = taps
    return m


def _pool(n: int) -> np.ndarray:
    """(n//2, n) row matrix for a stride-2 average of adjacent pairs."""
    m = np.zeros((n // 2, n), np.float32)
    for i in range(n // 2):
        m[i, 2 * i] = 0.5
        m[i, 2 * i + 1] = 0.5
    return m


def _block_diag(block: np.ndarray, reps: int) -> np.ndarray:
    return np.kron(np.eye(reps, dtype=np.float32), block)


def _build_constants(h: int, w: int, tb: int, pack: int, g: np.ndarray):
    """Per-level constants, flattened in exactly the order the kernel consumes them."""
    consts = []
    hh, ww = h, w
    ws = len(g)
    for lvl in range(LEVELS):
        hc, wc = hh - ws + 1, ww - ws + 1
        # Separable "valid" Gaussian filter as left/right matmul matrices,
        # block-diagonal over the TB vertically-stacked / PACK lane-packed images.
        consts.append(_block_diag(_band(hh, g), tb))            # GH^T   (tb*hc, tb*hh)
        consts.append(_block_diag(_band(ww, g).T, pack))        # GW     (pack*ww, pack*wc)
        # Per-image spatial-mean selectors: mean = ROWSEL @ map @ COLSEL  -> (tb, pack)
        consts.append(_block_diag(np.ones((1, hc), np.float32), tb))                 # ROWSEL
        consts.append(_block_diag(np.ones((wc, 1), np.float32), pack)
                      / np.float32(hc * wc))                                         # COLSEL
        if lvl != LEVELS - 1:
            # 2x2 stride-2 average pool as left/right matmuls (block-diagonal too).
            consts.append(_block_diag(_pool(hh), tb))           # PH^T  (tb*hh/2, tb*hh)
            consts.append(_block_diag(_pool(ww).T, pack))       # PW    (pack*ww, pack*ww/2)
            hh, ww = hh // 2, ww // 2
    return [np.ascontiguousarray(m, dtype=np.float32) for m in consts]


# ----------------------------------------------------------------------------
# Fused Pallas kernel: all MS-SSIM scales for TB*PACK packed image pairs per step
# ----------------------------------------------------------------------------
def _ms_ssim_kernel(x_ref, y_ref, *refs, levels, c1, c2):
    """x_ref/y_ref: (TB*H, PACK*W) packed f32 slabs; refs = (*const_refs, out_ref)."""
    out_ref = refs[-1]                       # (LEVELS, TB, PACK)
    consts = refs[:-1]

    x = x_ref[...]
    y = y_ref[...]

    k = 0
    for lvl in range(levels):
        gh_t = consts[k][...]
        gw = consts[k + 1][...]
        rowsel = consts[k + 2][...]
        colsel = consts[k + 3][...]
        k += 4

        def gfilt(t, _gh=gh_t, _gw=gw):
            th = jnp.dot(_gh, t, preferred_element_type=jnp.float32)
            return jnp.dot(th, _gw, preferred_element_type=jnp.float32)

        # Liveness-friendly order: means first, then one covariance term at a time.
        mu1 = gfilt(x)
        mu2 = gfilt(y)
        mu1_mu2 = mu1 * mu2
        sigma12 = gfilt(x * y) - mu1_mu2
        sigma_sum = (gfilt(x * x) - mu1 * mu1) + (gfilt(y * y) - mu2 * mu2)
        cs_map = (2.0 * sigma12 + c2) / (sigma_sum + c2)

        if lvl == levels - 1:
            lum = (2.0 * mu1_mu2 + c1) / (mu1 * mu1 + mu2 * mu2 + c1)
            val_map = lum * cs_map           # full ssim map, only needed at last scale
        else:
            val_map = cs_map

        # Per-image spatial means via selector matmuls (MXU), already 1/(hc*wc)-scaled.
        means = jnp.dot(jnp.dot(rowsel, val_map, preferred_element_type=jnp.float32),
                        colsel, preferred_element_type=jnp.float32)       # (TB, PACK)
        out_ref[lvl, :, :] = jnp.maximum(means, 0.0)   # relu, as in pytorch_msssim

        if lvl != levels - 1:
            ph_t = consts[k][...]
            pw = consts[k + 1][...]
            k += 2
            x = jnp.dot(jnp.dot(ph_t, x, preferred_element_type=jnp.float32), pw,
                        preferred_element_type=jnp.float32)
            y = jnp.dot(jnp.dot(ph_t, y, preferred_element_type=jnp.float32), pw,
                        preferred_element_type=jnp.float32)


# ----------------------------------------------------------------------------
# MS_SSIMLoss forward
# ----------------------------------------------------------------------------
def ms_ssim_loss(x, y, convert_range: bool = CONVERT_RANGE):
    """loss = 1 - MS_SSIM(x, y); x/y in NCHW; size_average=True."""
    if convert_range:
        x = (x + 1.0) / 2.0
        y = (y + 1.0) / 2.0

    b, c, h, w = x.shape
    assert min(h, w) > (WIN_SIZE - 1) * (2 ** (LEVELS - 1)), "image too small for MS-SSIM"
    assert h % (2 ** (LEVELS - 1)) == 0 and w % (2 ** (LEVELS - 1)) == 0, \
        "this implementation assumes even spatial dims at every pooled scale"

    nc = b * c
    xl = x.reshape(nc, h, w).astype(jnp.float32)
    yl = y.reshape(nc, h, w).astype(jnp.float32)

    # Packing factors: PACK images side-by-side along lanes (fills 128 lanes when W is
    # narrow), TB images stacked along sublanes per grid step.
    pack = max(1, 128 // w)
    slabs = -(-nc // pack)
    if h >= 256 or slabs == 1:
        tb = 1                       # keep the (tb*hc, tb*h) band matrix small at large H
    elif slabs < 8:
        tb = 2
    else:
        tb = 4
    steps = -(-slabs // tb)
    padded = steps * tb * pack

    if padded != nc:                 # pad with repeated images; masked out of the mean below
        idx = jnp.arange(padded) % nc
        xl = jnp.take(xl, idx, axis=0)
        yl = jnp.take(yl, idx, axis=0)

    # Lane-dense packed layout: one (tb*h, pack*w) slab per grid step.
    def pack_layout(t):
        return (t.reshape(steps, tb, pack, h, w)
                 .transpose(0, 1, 3, 2, 4)
                 .reshape(steps * tb * h, pack * w))

    xp = pack_layout(xl)
    yp = pack_layout(yl)

    g = _fspecial_gauss_1d(WIN_SIZE, WIN_SIGMA)
    consts = _build_constants(h, w, tb, pack, g)
    c1 = float((K1 * DATA_RANGE) ** 2)
    c2 = float((K2 * DATA_RANGE) ** 2)

    kernel = functools.partial(_ms_ssim_kernel, levels=LEVELS, c1=c1, c2=c2)

    img_spec = pl.BlockSpec((tb * h, pack * w), lambda i: (i, 0))
    const_specs = [pl.BlockSpec(m.shape, lambda i: (0, 0)) for m in consts]  # never re-DMA'd
    out_spec = pl.BlockSpec((None, LEVELS, tb, pack), lambda i: (i, 0, 0, 0))

    # Rough per-step VMEM estimate (double-buffered images + constants + temporaries);
    # only raise the scoped VMEM limit when it actually matters (large images on v5e).
    step_bytes = 4 * (2 * 2 * tb * h * pack * w
                      + 2 * sum(m.size for m in consts)
                      + 8 * tb * h * pack * w)
    if step_bytes > 12 * 1024 * 1024:
        cparams = pltpu.CompilerParams(
            dimension_semantics=("parallel",),
            vmem_limit_bytes=int(min(2 * step_bytes, 64 * 1024 * 1024)))
    else:
        cparams = pltpu.CompilerParams(dimension_semantics=("parallel",))

    outs = pl.pallas_call(
        kernel,
        grid=(steps,),
        in_specs=[img_spec, img_spec] + const_specs,
        out_specs=out_spec,
        out_shape=jax.ShapeDtypeStruct((steps, LEVELS, tb, pack), jnp.float32),
        compiler_params=cparams,
    )(xp, yp, *[jnp.asarray(m) for m in consts])

    # Tiny glue: weighted geometric mean over levels, then mean over the (N*C) images.
    vals = outs.transpose(1, 0, 2, 3).reshape(LEVELS, padded)     # (LEVELS, padded)
    weights = jnp.asarray(WEIGHTS)[:, None]                       # (LEVELS, 1)
    msssim = jnp.prod(vals ** weights, axis=0)                    # (padded,)
    if padded != nc:
        valid = (jnp.arange(padded) < nc).astype(jnp.float32)
        return 1.0 - jnp.sum(msssim * valid) / nc
    return 1.0 - jnp.mean(msssim)                                 # size_average=True


if __name__ == "__main__":
    key = jax.random.PRNGKey(0)
    kx, ky = jax.random.split(key)
    # min spatial side must exceed (win_size-1)*2**4 = 32 and divide 16 -> use 64x64.
    shape = (2, 4, 64, 64)   # (batch, channels, H, W)
    x = jax.random.uniform(kx, shape, dtype=jnp.float32)
    y = jax.random.uniform(ky, shape, dtype=jnp.float32)

    loss_fn = jax.jit(ms_ssim_loss)

    loss = jax.block_until_ready(loss_fn(x, y))
    assert bool(jnp.isfinite(loss)), "loss is not finite"
    assert 0.0 <= float(loss) <= 1.0, f"loss out of expected range: {float(loss)}"

    # sanity: identical inputs -> MS-SSIM == 1 -> loss ~ 0
    zero = jax.block_until_ready(loss_fn(x, x))
    assert abs(float(zero)) < 1e-4, f"self-loss should be ~0, got {float(zero)}"

    print("KERNEL_OK")
</pallas_src>

<mosaic_0001>
module attributes {stable_mosaic.version = 11 : i64} {
  func.func @_ms_ssim_kernel(%arg0: i32, %arg1: memref<128x128xf32, #tpu.memory_space<vmem>>, %arg2: memref<128x128xf32, #tpu.memory_space<vmem>>, %arg3: memref<124x128xf32, #tpu.memory_space<vmem>>, %arg4: memref<128x124xf32, #tpu.memory_space<vmem>>, %arg5: memref<2x124xf32, #tpu.memory_space<vmem>>, %arg6: memref<124x2xf32, #tpu.memory_space<vmem>>, %arg7: memref<64x128xf32, #tpu.memory_space<vmem>>, %arg8: memref<128x64xf32, #tpu.memory_space<vmem>>, %arg9: memref<60x64xf32, #tpu.memory_space<vmem>>, %arg10: memref<64x60xf32, #tpu.memory_space<vmem>>, %arg11: memref<2x60xf32, #tpu.memory_space<vmem>>, %arg12: memref<60x2xf32, #tpu.memory_space<vmem>>, %arg13: memref<32x64xf32, #tpu.memory_space<vmem>>, %arg14: memref<64x32xf32, #tpu.memory_space<vmem>>, %arg15: memref<28x32xf32, #tpu.memory_space<vmem>>, %arg16: memref<32x28xf32, #tpu.memory_space<vmem>>, %arg17: memref<2x28xf32, #tpu.memory_space<vmem>>, %arg18: memref<28x2xf32, #tpu.memory_space<vmem>>, %arg19: memref<16x32xf32, #tpu.memory_space<vmem>>, %arg20: memref<32x16xf32, #tpu.memory_space<vmem>>, %arg21: memref<12x16xf32, #tpu.memory_space<vmem>>, %arg22: memref<16x12xf32, #tpu.memory_space<vmem>>, %arg23: memref<2x12xf32, #tpu.memory_space<vmem>>, %arg24: memref<12x2xf32, #tpu.memory_space<vmem>>, %arg25: memref<8x16xf32, #tpu.memory_space<vmem>>, %arg26: memref<16x8xf32, #tpu.memory_space<vmem>>, %arg27: memref<4x8xf32, #tpu.memory_space<vmem>>, %arg28: memref<8x4xf32, #tpu.memory_space<vmem>>, %arg29: memref<2x4xf32, #tpu.memory_space<vmem>>, %arg30: memref<4x2xf32, #tpu.memory_space<vmem>>, %arg31: memref<1x5x2x2xf32, #tpu.memory_space<vmem>>) attributes {dimension_semantics = [#tpu.dimension_semantics<parallel>], iteration_bounds = array<i64: 2>, scalar_prefetch = 0 : i64, scratch_operands = 0 : i64, tpu.core_type = #tpu.core_type<tc>, window_params = [{transform_indices = @transform_0, window_bounds = array<i64: 128, 128>}, {transform_indices = @transform_1, window_bounds = array<i64: 128, 128>}, {pipeline_mode = #tpu.pipeline_mode<synchronous>, transform_indices = @transform_2, window_bounds = array<i64: 124, 128>}, {pipeline_mode = #tpu.pipeline_mode<synchronous>, transform_indices = @transform_3, window_bounds = array<i64: 128, 124>}, {pipeline_mode = #tpu.pipeline_mode<synchronous>, transform_indices = @transform_4, window_bounds = array<i64: 2, 124>}, {pipeline_mode = #tpu.pipeline_mode<synchronous>, transform_indices = @transform_5, window_bounds = array<i64: 124, 2>}, {pipeline_mode = #tpu.pipeline_mode<synchronous>, transform_indices = @transform_6, window_bounds = array<i64: 64, 128>}, {pipeline_mode = #tpu.pipeline_mode<synchronous>, transform_indices = @transform_7, window_bounds = array<i64: 128, 64>}, {pipeline_mode = #tpu.pipeline_mode<synchronous>, transform_indices = @transform_8, window_bounds = array<i64: 60, 64>}, {pipeline_mode = #tpu.pipeline_mode<synchronous>, transform_indices = @transform_9, window_bounds = array<i64: 64, 60>}, {pipeline_mode = #tpu.pipeline_mode<synchronous>, transform_indices = @transform_10, window_bounds = array<i64: 2, 60>}, {pipeline_mode = #tpu.pipeline_mode<synchronous>, transform_indices = @transform_11, window_bounds = array<i64: 60, 2>}, {pipeline_mode = #tpu.pipeline_mode<synchronous>, transform_indices = @transform_12, window_bounds = array<i64: 32, 64>}, {pipeline_mode = #tpu.pipeline_mode<synchronous>, transform_indices = @transform_13, window_bounds = array<i64: 64, 32>}, {pipeline_mode = #tpu.pipeline_mode<synchronous>, transform_indices = @transform_14, window_bounds = array<i64: 28, 32>}, {pipeline_mode = #tpu.pipeline_mode<synchronous>, transform_indices = @transform_15, window_bounds = array<i64: 32, 28>}, {pipeline_mode = #tpu.pipeline_mode<synchronous>, transform_indices = @transform_16, window_bounds = array<i64: 2, 28>}, {pipeline_mode = #tpu.pipeline_mode<synchronous>, transform_indices = @transform_17, window_bounds = array<i64: 28, 2>}, {pipeline_mode = #tpu.pipeline_mode<synchronous>, transform_indices = @transform_18, window_bounds = array<i64: 16, 32>}, {pipeline_mode = #tpu.pipeline_mode<synchronous>, transform_indices = @transform_19, window_bounds = array<i64: 32, 16>}, {pipeline_mode = #tpu.pipeline_mode<synchronous>, transform_indices = @transform_20, window_bounds = array<i64: 12, 16>}, {pipeline_mode = #tpu.pipeline_mode<synchronous>, transform_indices = @transform_21, window_bounds = array<i64: 16, 12>}, {pipeline_mode = #tpu.pipeline_mode<synchronous>, transform_indices = @transform_22, window_bounds = array<i64: 2, 12>}, {pipeline_mode = #tpu.pipeline_mode<synchronous>, transform_indices = @transform_23, window_bounds = array<i64: 12, 2>}, {pipeline_mode = #tpu.pipeline_mode<synchronous>, transform_indices = @transform_24, window_bounds = array<i64: 8, 16>}, {pipeline_mode = #tpu.pipeline_mode<synchronous>, transform_indices = @transform_25, window_bounds = array<i64: 16, 8>}, {pipeline_mode = #tpu.pipeline_mode<synchronous>, transform_indices = @transform_26, window_bounds = array<i64: 4, 8>}, {pipeline_mode = #tpu.pipeline_mode<synchronous>, transform_indices = @transform_27, window_bounds = array<i64: 8, 4>}, {pipeline_mode = #tpu.pipeline_mode<synchronous>, transform_indices = @transform_28, window_bounds = array<i64: 2, 4>}, {pipeline_mode = #tpu.pipeline_mode<synchronous>, transform_indices = @transform_29, window_bounds = array<i64: 4, 2>}, {transform_indices = @transform_30, window_bounds = array<i64: 1, 5, 2, 2>}]} {
    %c0 = arith.constant 0 : index
    %c0_0 = arith.constant 0 : index
    %0 = vector.load %arg1[%c0, %c0_0] : memref<128x128xf32, #tpu.memory_space<vmem>>, vector<128x128xf32>
    %c0_1 = arith.constant 0 : index
    %c0_2 = arith.constant 0 : index
    %1 = vector.load %arg2[%c0_1, %c0_2] : memref<128x128xf32, #tpu.memory_space<vmem>>, vector<128x128xf32>
    %c0_3 = arith.constant 0 : index
    %c0_4 = arith.constant 0 : index
    %2 = vector.load %arg3[%c0_3, %c0_4] : memref<124x128xf32, #tpu.memory_space<vmem>>, vector<124x128xf32>
    %c0_5 = arith.constant 0 : index
    %c0_6 = arith.constant 0 : index
    %3 = vector.load %arg4[%c0_5, %c0_6] : memref<128x124xf32, #tpu.memory_space<vmem>>, vector<128x124xf32>
    %c0_7 = arith.constant 0 : index
    %c0_8 = arith.constant 0 : index
    %4 = vector.load %arg5[%c0_7, %c0_8] : memref<2x124xf32, #tpu.memory_space<vmem>>, vector<2x124xf32>
    %c0_9 = arith.constant 0 : index
    %c0_10 = arith.constant 0 : index
    %5 = vector.load %arg6[%c0_9, %c0_10] : memref<124x2xf32, #tpu.memory_space<vmem>>, vector<124x2xf32>
    %cst = arith.constant dense<0.000000e+00> : vector<124x128xf32>
    %6 = tpu.matmul %2, %0, %cst {dimension_numbers = #tpu.dot_dimension_numbers<[1], [0], [0], [1], [0, 0, 1, 1], [], []>} : vector<124x128xf32>, vector<128x128xf32>, vector<124x128xf32> -> vector<124x128xf32>
    %cst_11 = arith.constant dense<0.000000e+00> : vector<124x124xf32>
    %7 = tpu.matmul %6, %3, %cst_11 {dimension_numbers = #tpu.dot_dimension_numbers<[1], [0], [0], [1], [0, 0, 1, 1], [], []>} : vector<124x128xf32>, vector<128x124xf32>, vector<124x124xf32> -> vector<124x124xf32>
    %cst_12 = arith.constant dense<0.000000e+00> : vector<124x128xf32>
    %8 = tpu.matmul %2, %1, %cst_12 {dimension_numbers = #tpu.dot_dimension_numbers<[1], [0], [0], [1], [0, 0, 1, 1], [], []>} : vector<124x128xf32>, vector<128x128xf32>, vector<124x128xf32> -> vector<124x128xf32>
    %cst_13 = arith.constant dense<0.000000e+00> : vector<124x124xf32>
    %9 = tpu.matmul %8, %3, %cst_13 {dimension_numbers = #tpu.dot_dimension_numbers<[1], [0], [0], [1], [0, 0, 1, 1], [], []>} : vector<124x128xf32>, vector<128x124xf32>, vector<124x124xf32> -> vector<124x124xf32>
    %10 = arith.mulf %7, %9 : vector<124x124xf32>
    %11 = arith.mulf %0, %1 : vector<128x128xf32>
    %cst_14 = arith.constant dense<0.000000e+00> : vector<124x128xf32>
    %12 = tpu.matmul %2, %11, %cst_14 {dimension_numbers = #tpu.dot_dimension_numbers<[1], [0], [0], [1], [0, 0, 1, 1], [], []>} : vector<124x128xf32>, vector<128x128xf32>, vector<124x128xf32> -> vector<124x128xf32>
    %cst_15 = arith.constant dense<0.000000e+00> : vector<124x124xf32>
    %13 = tpu.matmul %12, %3, %cst_15 {dimension_numbers = #tpu.dot_dimension_numbers<[1], [0], [0], [1], [0, 0, 1, 1], [], []>} : vector<124x128xf32>, vector<128x124xf32>, vector<124x124xf32> -> vector<124x124xf32>
    %14 = arith.subf %13, %10 : vector<124x124xf32>
    %15 = arith.mulf %0, %0 : vector<128x128xf32>
    %cst_16 = arith.constant dense<0.000000e+00> : vector<124x128xf32>
    %16 = tpu.matmul %2, %15, %cst_16 {dimension_numbers = #tpu.dot_dimension_numbers<[1], [0], [0], [1], [0, 0, 1, 1], [], []>} : vector<124x128xf32>, vector<128x128xf32>, vector<124x128xf32> -> vector<124x128xf32>
    %cst_17 = arith.constant dense<0.000000e+00> : vector<124x124xf32>
    %17 = tpu.matmul %16, %3, %cst_17 {dimension_numbers = #tpu.dot_dimension_numbers<[1], [0], [0], [1], [0, 0, 1, 1], [], []>} : vector<124x128xf32>, vector<128x124xf32>, vector<124x124xf32> -> vector<124x124xf32>
    %18 = arith.mulf %7, %7 : vector<124x124xf32>
    %19 = arith.subf %17, %18 : vector<124x124xf32>
    %20 = arith.mulf %1, %1 : vector<128x128xf32>
    %cst_18 = arith.constant dense<0.000000e+00> : vector<124x128xf32>
    %21 = tpu.matmul %2, %20, %cst_18 {dimension_numbers = #tpu.dot_dimension_numbers<[1], [0], [0], [1], [0, 0, 1, 1], [], []>} : vector<124x128xf32>, vector<128x128xf32>, vector<124x128xf32> -> vector<124x128xf32>
    %cst_19 = arith.constant dense<0.000000e+00> : vector<124x124xf32>
    %22 = tpu.matmul %21, %3, %cst_19 {dimension_numbers = #tpu.dot_dimension_numbers<[1], [0], [0], [1], [0, 0, 1, 1], [], []>} : vector<124x128xf32>, vector<128x124xf32>, vector<124x124xf32> -> vector<124x124xf32>
    %23 = arith.mulf %9, %9 : vector<124x124xf32>
    %24 = arith.subf %22, %23 : vector<124x124xf32>
    %25 = arith.addf %19, %24 : vector<124x124xf32>
    %cst_20 = arith.constant 2.000000e+00 : f32
    %26 = vector.broadcast %cst_20 : f32 to vector<124x124xf32>
    %27 = arith.mulf %26, %14 : vector<124x124xf32>
    %cst_21 = arith.constant 8.99999984E-4 : f32
    %28 = vector.broadcast %cst_21 : f32 to vector<124x124xf32>
    %29 = arith.addf %27, %28 : vector<124x124xf32>
    %cst_22 = arith.constant 8.99999984E-4 : f32
    %30 = vector.broadcast %cst_22 : f32 to vector<124x124xf32>
    %31 = arith.addf %25, %30 : vector<124x124xf32>
    %32 = arith.divf %29, %31 : vector<124x124xf32>
    %cst_23 = arith.constant dense<0.000000e+00> : vector<2x124xf32>
    %33 = tpu.matmul %4, %32, %cst_23 {dimension_numbers = #tpu.dot_dimension_numbers<[1], [0], [0], [1], [0, 0, 1, 1], [], []>} : vector<2x124xf32>, vector<124x124xf32>, vector<2x124xf32> -> vector<2x124xf32>
    %cst_24 = arith.constant dense<0.000000e+00> : vector<2x2xf32>
    %34 = tpu.matmul %33, %5, %cst_24 {dimension_numbers = #tpu.dot_dimension_numbers<[1], [0], [0], [1], [0, 0, 1, 1], [], []>} : vector<2x124xf32>, vector<124x2xf32>, vector<2x2xf32> -> vector<2x2xf32>
    %cst_25 = arith.constant 0.000000e+00 : f32
    %35 = vector.broadcast %cst_25 : f32 to vector<2x2xf32>
    %36 = arith.maximumf %34, %35 : vector<2x2xf32>
    %c0_26 = arith.constant 0 : index
    %c0_27 = arith.constant 0 : index
    %c0_28 = arith.constant 0 : index
    %c0_29 = arith.constant 0 : index
    %37 = vector.load %arg31[%c0_26, %c0_27, %c0_28, %c0_29] : memref<1x5x2x2xf32, #tpu.memory_space<vmem>>, vector<1x1x2x2xf32>
    %38 = vector.shape_cast %37 : vector<1x1x2x2xf32> to vector<2x2xf32>
    %39 = vector.shape_cast %36 : vector<2x2xf32> to vector<1x1x2x2xf32>
    tpu.vector_store %arg31[%c0_26, %c0_27, %c0_28, %c0_29], %39 {strides = array<i32>} : memref<1x5x2x2xf32, #tpu.memory_space<vmem>>, vector<1x1x2x2xf32>,
    %c0_30 = arith.constant 0 : index
    %c0_31 = arith.constant 0 : index
    %40 = vector.load %arg7[%c0_30, %c0_31] : memref<64x128xf32, #tpu.memory_space<vmem>>, vector<64x128xf32>
    %c0_32 = arith.constant 0 : index
    %c0_33 = arith.constant 0 : index
    %41 = vector.load %arg8[%c0_32, %c0_33] : memref<128x64xf32, #tpu.memory_space<vmem>>, vector<128x64xf32>
    %cst_34 = arith.constant dense<0.000000e+00> : vector<64x128xf32>
    %42 = tpu.matmul %40, %0, %cst_34 {dimension_numbers = #tpu.dot_dimension_numbers<[1], [0], [0], [1], [0, 0, 1, 1], [], []>} : vector<64x128xf32>, vector<128x128xf32>, vector<64x128xf32> -> vector<64x128xf32>
    %cst_35 = arith.constant dense<0.000000e+00> : vector<64x64xf32>
    %43 = tpu.matmul %42, %41, %cst_35 {dimension_numbers = #tpu.dot_dimension_numbers<[1], [0], [0], [1], [0, 0, 1, 1], [], []>} : vector<64x128xf32>, vector<128x64xf32>, vector<64x64xf32> -> vector<64x64xf32>
    %cst_36 = arith.constant dense<0.000000e+00> : vector<64x128xf32>
    %44 = tpu.matmul %40, %1, %cst_36 {dimension_numbers = #tpu.dot_dimension_numbers<[1], [0], [0], [1], [0, 0, 1, 1], [], []>} : vector<64x128xf32>, vector<128x128xf32>, vector<64x128xf32> -> vector<64x128xf32>
    %cst_37 = arith.constant dense<0.000000e+00> : vector<64x64xf32>
    %45 = tpu.matmul %44, %41, %cst_37 {dimension_numbers = #tpu.dot_dimension_numbers<[1], [0], [0], [1], [0, 0, 1, 1], [], []>} : vector<64x128xf32>, vector<128x64xf32>, vector<64x64xf32> -> vector<64x64xf32>
    %c0_38 = arith.constant 0 : index
    %c0_39 = arith.constant 0 : index
    %46 = vector.load %arg9[%c0_38, %c0_39] : memref<60x64xf32, #tpu.memory_space<vmem>>, vector<60x64xf32>
    %c0_40 = arith.constant 0 : index
    %c0_41 = arith.constant 0 : index
    %47 = vector.load %arg10[%c0_40, %c0_41] : memref<64x60xf32, #tpu.memory_space<vmem>>, vector<64x60xf32>
    %c0_42 = arith.constant 0 : index
    %c0_43 = arith.constant 0 : index
    %48 = vector.load %arg11[%c0_42, %c0_43] : memref<2x60xf32, #tpu.memory_space<vmem>>, vector<2x60xf32>
    %c0_44 = arith.constant 0 : index
    %c0_45 = arith.constant 0 : index
    %49 = vector.load %arg12[%c0_44, %c0_45] : memref<60x2xf32, #tpu.memory_space<vmem>>, vector<60x2xf32>
    %cst_46 = arith.constant dense<0.000000e+00> : vector<60x64xf32>
    %50 = tpu.matmul %46, %43, %cst_46 {dimension_numbers = #tpu.dot_dimension_numbers<[1], [0], [0], [1], [0, 0, 1, 1], [], []>} : vector<60x64xf32>, vector<64x64xf32>, vector<60x64xf32> -> vector<60x64xf32>
    %cst_47 = arith.constant dense<0.000000e+00> : vector<60x60xf32>
    %51 = tpu.matmul %50, %47, %cst_47 {dimension_numbers = #tpu.dot_dimension_numbers<[1], [0], [0], [1], [0, 0, 1, 1], [], []>} : vector<60x64xf32>, vector<64x60xf32>, vector<60x60xf32> -> vector<60x60xf32>
    %cst_48 = arith.constant dense<0.000000e+00> : vector<60x64xf32>
    %52 = tpu.matmul %46, %45, %cst_48 {dimension_numbers = #tpu.dot_dimension_numbers<[1], [0], [0], [1], [0, 0, 1, 1], [], []>} : vector<60x64xf32>, vector<64x64xf32>, vector<60x64xf32> -> vector<60x64xf32>
    %cst_49 = arith.constant dense<0.000000e+00> : vector<60x60xf32>
    %53 = tpu.matmul %52, %47, %cst_49 {dimension_numbers = #tpu.dot_dimension_numbers<[1], [0], [0], [1], [0, 0, 1, 1], [], []>} : vector<60x64xf32>, vector<64x60xf32>, vector<60x60xf32> -> vector<60x60xf32>
    %54 = arith.mulf %51, %53 : vector<60x60xf32>
    %55 = arith.mulf %43, %45 : vector<64x64xf32>
    %cst_50 = arith.constant dense<0.000000e+00> : vector<60x64xf32>
    %56 = tpu.matmul %46, %55, %cst_50 {dimension_numbers = #tpu.dot_dimension_numbers<[1], [0], [0], [1], [0, 0, 1, 1], [], []>} : vector<60x64xf32>, vector<64x64xf32>, vector<60x64xf32> -> vector<60x64xf32>
    %cst_51 = arith.constant dense<0.000000e+00> : vector<60x60xf32>
    %57 = tpu.matmul %56, %47, %cst_51 {dimension_numbers = #tpu.dot_dimension_numbers<[1], [0], [0], [1], [0, 0, 1, 1], [], []>} : vector<60x64xf32>, vector<64x60xf32>, vector<60x60xf32> -> vector<60x60xf32>
    %58 = arith.subf %57, %54 : vector<60x60xf32>
    %59 = arith.mulf %43, %43 : vector<64x64xf32>
    %cst_52 = arith.constant dense<0.000000e+00> : vector<60x64xf32>
    %60 = tpu.matmul %46, %59, %cst_52 {dimension_numbers = #tpu.dot_dimension_numbers<[1], [0], [0], [1], [0, 0, 1, 1], [], []>} : vector<60x64xf32>, vector<64x64xf32>, vector<60x64xf32> -> vector<60x64xf32>
    %cst_53 = arith.constant dense<0.000000e+00> : vector<60x60xf32>
    %61 = tpu.matmul %60, %47, %cst_53 {dimension_numbers = #tpu.dot_dimension_numbers<[1], [0], [0], [1], [0, 0, 1, 1], [], []>} : vector<60x64xf32>, vector<64x60xf32>, vector<60x60xf32> -> vector<60x60xf32>
    %62 = arith.mulf %51, %51 : vector<60x60xf32>
    %63 = arith.subf %61, %62 : vector<60x60xf32>
    %64 = arith.mulf %45, %45 : vector<64x64xf32>
    %cst_54 = arith.constant dense<0.000000e+00> : vector<60x64xf32>
    %65 = tpu.matmul %46, %64, %cst_54 {dimension_numbers = #tpu.dot_dimension_numbers<[1], [0], [0], [1], [0, 0, 1, 1], [], []>} : vector<60x64xf32>, vector<64x64xf32>, vector<60x64xf32> -> vector<60x64xf32>
    %cst_55 = arith.constant dense<0.000000e+00> : vector<60x60xf32>
    %66 = tpu.matmul %65, %47, %cst_55 {dimension_numbers = #tpu.dot_dimension_numbers<[1], [0], [0], [1], [0, 0, 1, 1], [], []>} : vector<60x64xf32>, vector<64x60xf32>, vector<60x60xf32> -> vector<60x60xf32>
    %67 = arith.mulf %53, %53 : vector<60x60xf32>
    %68 = arith.subf %66, %67 : vector<60x60xf32>
    %69 = arith.addf %63, %68 : vector<60x60xf32>
    %cst_56 = arith.constant 2.000000e+00 : f32
    %70 = vector.broadcast %cst_56 : f32 to vector<60x60xf32>
    %71 = arith.mulf %70, %58 : vector<60x60xf32>
    %cst_57 = arith.constant 8.99999984E-4 : f32
    %72 = vector.broadcast %cst_57 : f32 to vector<60x60xf32>
    %73 = arith.addf %71, %72 : vector<60x60xf32>
    %cst_58 = arith.constant 8.99999984E-4 : f32
    %74 = vector.broadcast %cst_58 : f32 to vector<60x60xf32>
    %75 = arith.addf %69, %74 : vector<60x60xf32>
    %76 = arith.divf %73, %75 : vector<60x60xf32>
    %cst_59 = arith.constant dense<0.000000e+00> : vector<2x60xf32>
    %77 = tpu.matmul %48, %76, %cst_59 {dimension_numbers = #tpu.dot_dimension_numbers<[1], [0], [0], [1], [0, 0, 1, 1], [], []>} : vector<2x60xf32>, vector<60x60xf32>, vector<2x60xf32> -> vector<2x60xf32>
    %cst_60 = arith.constant dense<0.000000e+00> : vector<2x2xf32>
    %78 = tpu.matmul %77, %49, %cst_60 {dimension_numbers = #tpu.dot_dimension_numbers<[1], [0], [0], [1], [0, 0, 1, 1], [], []>} : vector<2x60xf32>, vector<60x2xf32>, vector<2x2xf32> -> vector<2x2xf32>
    %cst_61 = arith.constant 0.000000e+00 : f32
    %79 = vector.broadcast %cst_61 : f32 to vector<2x2xf32>
    %80 = arith.maximumf %78, %79 : vector<2x2xf32>
    %c0_62 = arith.constant 0 : index
    %c1 = arith.constant 1 : index
    %c0_63 = arith.constant 0 : index
    %c0_64 = arith.constant 0 : index
    %81 = vector.load %arg31[%c0_62, %c1, %c0_63, %c0_64] : memref<1x5x2x2xf32, #tpu.memory_space<vmem>>, vector<1x1x2x2xf32>
    %82 = vector.shape_cast %81 : vector<1x1x2x2xf32> to vector<2x2xf32>
    %83 = vector.shape_cast %80 : vector<2x2xf32> to vector<1x1x2x2xf32>
    tpu.vector_store %arg31[%c0_62, %c1, %c0_63, %c0_64], %83 {strides = array<i32>} : memref<1x5x2x2xf32, #tpu.memory_space<vmem>>, vector<1x1x2x2xf32>,
    %c0_65 = arith.constant 0 : index
    %c0_66 = arith.constant 0 : index
    %84 = vector.load %arg13[%c0_65, %c0_66] : memref<32x64xf32, #tpu.memory_space<vmem>>, vector<32x64xf32>
    %c0_67 = arith.constant 0 : index
    %c0_68 = arith.constant 0 : index
    %85 = vector.load %arg14[%c0_67, %c0_68] : memref<64x32xf32, #tpu.memory_space<vmem>>, vector<64x32xf32>
    %cst_69 = arith.constant dense<0.000000e+00> : vector<32x64xf32>
    %86 = tpu.matmul %84, %43, %cst_69 {dimension_numbers = #tpu.dot_dimension_numbers<[1], [0], [0], [1], [0, 0, 1, 1], [], []>} : vector<32x64xf32>, vector<64x64xf32>, vector<32x64xf32> -> vector<32x64xf32>
    %cst_70 = arith.constant dense<0.000000e+00> : vector<32x32xf32>
    %87 = tpu.matmul %86, %85, %cst_70 {dimension_numbers = #tpu.dot_dimension_numbers<[1], [0], [0], [1], [0, 0, 1, 1], [], []>} : vector<32x64xf32>, vector<64x32xf32>, vector<32x32xf32> -> vector<32x32xf32>
    %cst_71 = arith.constant dense<0.000000e+00> : vector<32x64xf32>
    %88 = tpu.matmul %84, %45, %cst_71 {dimension_numbers = #tpu.dot_dimension_numbers<[1], [0], [0], [1], [0, 0, 1, 1], [], []>} : vector<32x64xf32>, vector<64x64xf32>, vector<32x64xf32> -> vector<32x64xf32>
    %cst_72 = arith.constant dense<0.000000e+00> : vector<32x32xf32>
    %89 = tpu.matmul %88, %85, %cst_72 {dimension_numbers = #tpu.dot_dimension_numbers<[1], [0], [0], [1], [0, 0, 1, 1], [], []>} : vector<32x64xf32>, vector<64x32xf32>, vector<32x32xf32> -> vector<32x32xf32>
    %c0_73 = arith.constant 0 : index
    %c0_74 = arith.constant 0 : index
    %90 = vector.load %arg15[%c0_73, %c0_74] : memref<28x32xf32, #tpu.memory_space<vmem>>, vector<28x32xf32>
    %c0_75 = arith.constant 0 : index
    %c0_76 = arith.constant 0 : index
    %91 = vector.load %arg16[%c0_75, %c0_76] : memref<32x28xf32, #tpu.memory_space<vmem>>, vector<32x28xf32>
    %c0_77 = arith.constant 0 : index
    %c0_78 = arith.constant 0 : index
    %92 = vector.load %arg17[%c0_77, %c0_78] : memref<2x28xf32, #tpu.memory_space<vmem>>, vector<2x28xf32>
    %c0_79 = arith.constant 0 : index
    %c0_80 = arith.constant 0 : index
    %93 = vector.load %arg18[%c0_79, %c0_80] : memref<28x2xf32, #tpu.memory_space<vmem>>, vector<28x2xf32>
    %cst_81 = arith.constant dense<0.000000e+00> : vector<28x32xf32>
    %94 = tpu.matmul %90, %87, %cst_81 {dimension_numbers = #tpu.dot_dimension_numbers<[1], [0], [0], [1], [0, 0, 1, 1], [], []>} : vector<28x32xf32>, vector<32x32xf32>, vector<28x32xf32> -> vector<28x32xf32>
    %cst_82 = arith.constant dense<0.000000e+00> : vector<28x28xf32>
    %95 = tpu.matmul %94, %91, %cst_82 {dimension_numbers = #tpu.dot_dimension_numbers<[1], [0], [0], [1], [0, 0, 1, 1], [], []>} : vector<28x32xf32>, vector<32x28xf32>, vector<28x28xf32> -> vector<28x28xf32>
    %cst_83 = arith.constant dense<0.000000e+00> : vector<28x32xf32>
    %96 = tpu.matmul %90, %89, %cst_83 {dimension_numbers = #tpu.dot_dimension_numbers<[1], [0], [0], [1], [0, 0, 1, 1], [], []>} : vector<28x32xf32>, vector<32x32xf32>, vector<28x32xf32> -> vector<28x32xf32>
    %cst_84 = arith.constant dense<0.000000e+00> : vector<28x28xf32>
    %97 = tpu.matmul %96, %91, %cst_84 {dimension_numbers = #tpu.dot_dimension_numbers<[1], [0], [0], [1], [0, 0, 1, 1], [], []>} : vector<28x32xf32>, vector<32x28xf32>, vector<28x28xf32> -> vector<28x28xf32>
    %98 = arith.mulf %95, %97 : vector<28x28xf32>
    %99 = arith.mulf %87, %89 : vector<32x32xf32>
    %cst_85 = arith.constant dense<0.000000e+00> : vector<28x32xf32>
    %100 = tpu.matmul %90, %99, %cst_85 {dimension_numbers = #tpu.dot_dimension_numbers<[1], [0], [0], [1], [0, 0, 1, 1], [], []>} : vector<28x32xf32>, vector<32x32xf32>, vector<28x32xf32> -> vector<28x32xf32>
    %cst_86 = arith.constant dense<0.000000e+00> : vector<28x28xf32>
    %101 = tpu.matmul %100, %91, %cst_86 {dimension_numbers = #tpu.dot_dimension_numbers<[1], [0], [0], [1], [0, 0, 1, 1], [], []>} : vector<28x32xf32>, vector<32x28xf32>, vector<28x28xf32> -> vector<28x28xf32>
    %102 = arith.subf %101, %98 : vector<28x28xf32>
    %103 = arith.mulf %87, %87 : vector<32x32xf32>
    %cst_87 = arith.constant dense<0.000000e+00> : vector<28x32xf32>
    %104 = tpu.matmul %90, %103, %cst_87 {dimension_numbers = #tpu.dot_dimension_numbers<[1], [0], [0], [1], [0, 0, 1, 1], [], []>} : vector<28x32xf32>, vector<32x32xf32>, vector<28x32xf32> -> vector<28x32xf32>
    %cst_88 = arith.constant dense<0.000000e+00> : vector<28x28xf32>
    %105 = tpu.matmul %104, %91, %cst_88 {dimension_numbers = #tpu.dot_dimension_numbers<[1], [0], [0], [1], [0, 0, 1, 1], [], []>} : vector<28x32xf32>, vector<32x28xf32>, vector<28x28xf32> -> vector<28x28xf32>
    %106 = arith.mulf %95, %95 : vector<28x28xf32>
    %107 = arith.subf %105, %106 : vector<28x28xf32>
    %108 = arith.mulf %89, %89 : vector<32x32xf32>
    %cst_89 = arith.constant dense<0.000000e+00> : vector<28x32xf32>
    %109 = tpu.matmul %90, %108, %cst_89 {dimension_numbers = #tpu.dot_dimension_numbers<[1], [0], [0], [1], [0, 0, 1, 1], [], []>} : vector<28x32xf32>, vector<32x32xf32>, vector<28x32xf32> -> vector<28x32xf32>
    %cst_90 = arith.constant dense<0.000000e+00> : vector<28x28xf32>
    %110 = tpu.matmul %109, %91, %cst_90 {dimension_numbers = #tpu.dot_dimension_numbers<[1], [0], [0], [1], [0, 0, 1, 1], [], []>} : vector<28x32xf32>, vector<32x28xf32>, vector<28x28xf32> -> vector<28x28xf32>
    %111 = arith.mulf %97, %97 : vector<28x28xf32>
    %112 = arith.subf %110, %111 : vector<28x28xf32>
    %113 = arith.addf %107, %112 : vector<28x28xf32>
    %cst_91 = arith.constant 2.000000e+00 : f32
    %114 = vector.broadcast %cst_91 : f32 to vector<28x28xf32>
    %115 = arith.mulf %114, %102 : vector<28x28xf32>
    %cst_92 = arith.constant 8.99999984E-4 : f32
    %116 = vector.broadcast %cst_92 : f32 to vector<28x28xf32>
    %117 = arith.addf %115, %116 : vector<28x28xf32>
    %cst_93 = arith.constant 8.99999984E-4 : f32
    %118 = vector.broadcast %cst_93 : f32 to vector<28x28xf32>
    %119 = arith.addf %113, %118 : vector<28x28xf32>
    %120 = arith.divf %117, %119 : vector<28x28xf32>
    %cst_94 = arith.constant dense<0.000000e+00> : vector<2x28xf32>
    %121 = tpu.matmul %92, %120, %cst_94 {dimension_numbers = #tpu.dot_dimension_numbers<[1], [0], [0], [1], [0, 0, 1, 1], [], []>} : vector<2x28xf32>, vector<28x28xf32>, vector<2x28xf32> -> vector<2x28xf32>
    %cst_95 = arith.constant dense<0.000000e+00> : vector<2x2xf32>
    %122 = tpu.matmul %121, %93, %cst_95 {dimension_numbers = #tpu.dot_dimension_numbers<[1], [0], [0], [1], [0, 0, 1, 1], [], []>} : vector<2x28xf32>, vector<28x2xf32>, vector<2x2xf32> -> vector<2x2xf32>
    %cst_96 = arith.constant 0.000000e+00 : f32
    %123 = vector.broadcast %cst_96 : f32 to vector<2x2xf32>
    %124 = arith.maximumf %122, %123 : vector<2x2xf32>
    %c0_97 = arith.constant 0 : index
    %c2 = arith.constant 2 : index
    %c0_98 = arith.constant 0 : index
    %c0_99 = arith.constant 0 : index
    %125 = vector.load %arg31[%c0_97, %c2, %c0_98, %c0_99] : memref<1x5x2x2xf32, #tpu.memory_space<vmem>>, vector<1x1x2x2xf32>
    %126 = vector.shape_cast %125 : vector<1x1x2x2xf32> to vector<2x2xf32>
    %127 = vector.shape_cast %124 : vector<2x2xf32> to vector<1x1x2x2xf32>
    tpu.vector_store %arg31[%c0_97, %c2, %c0_98, %c0_99], %127 {strides = array<i32>} : memref<1x5x2x2xf32, #tpu.memory_space<vmem>>, vector<1x1x2x2xf32>,
    %c0_100 = arith.constant 0 : index
    %c0_101 = arith.constant 0 : index
    %128 = vector.load %arg19[%c0_100, %c0_101] : memref<16x32xf32, #tpu.memory_space<vmem>>, vector<16x32xf32>
    %c0_102 = arith.constant 0 : index
    %c0_103 = arith.constant 0 : index
    %129 = vector.load %arg20[%c0_102, %c0_103] : memref<32x16xf32, #tpu.memory_space<vmem>>, vector<32x16xf32>
    %cst_104 = arith.constant dense<0.000000e+00> : vector<16x32xf32>
    %130 = tpu.matmul %128, %87, %cst_104 {dimension_numbers = #tpu.dot_dimension_numbers<[1], [0], [0], [1], [0, 0, 1, 1], [], []>} : vector<16x32xf32>, vector<32x32xf32>, vector<16x32xf32> -> vector<16x32xf32>
    %cst_105 = arith.constant dense<0.000000e+00> : vector<16x16xf32>
    %131 = tpu.matmul %130, %129, %cst_105 {dimension_numbers = #tpu.dot_dimension_numbers<[1], [0], [0], [1], [0, 0, 1, 1], [], []>} : vector<16x32xf32>, vector<32x16xf32>, vector<16x16xf32> -> vector<16x16xf32>
    %cst_106 = arith.constant dense<0.000000e+00> : vector<16x32xf32>
    %132 = tpu.matmul %128, %89, %cst_106 {dimension_numbers = #tpu.dot_dimension_numbers<[1], [0], [0], [1], [0, 0, 1, 1], [], []>} : vector<16x32xf32>, vector<32x32xf32>, vector<16x32xf32> -> vector<16x32xf32>
    %cst_107 = arith.constant dense<0.000000e+00> : vector<16x16xf32>
    %133 = tpu.matmul %132, %129, %cst_107 {dimension_numbers = #tpu.dot_dimension_numbers<[1], [0], [0], [1], [0, 0, 1, 1], [], []>} : vector<16x32xf32>, vector<32x16xf32>, vector<16x16xf32> -> vector<16x16xf32>
    %c0_108 = arith.constant 0 : index
    %c0_109 = arith.constant 0 : index
    %134 = vector.load %arg21[%c0_108, %c0_109] : memref<12x16xf32, #tpu.memory_space<vmem>>, vector<12x16xf32>
    %c0_110 = arith.constant 0 : index
    %c0_111 = arith.constant 0 : index
    %135 = vector.load %arg22[%c0_110, %c0_111] : memref<16x12xf32, #tpu.memory_space<vmem>>, vector<16x12xf32>
    %c0_112 = arith.constant 0 : index
    %c0_113 = arith.constant 0 : index
    %136 = vector.load %arg23[%c0_112, %c0_113] : memref<2x12xf32, #tpu.memory_space<vmem>>, vector<2x12xf32>
    %c0_114 = arith.constant 0 : index
    %c0_115 = arith.constant 0 : index
    %137 = vector.load %arg24[%c0_114, %c0_115] : memref<12x2xf32, #tpu.memory_space<vmem>>, vector<12x2xf32>
    %cst_116 = arith.constant dense<0.000000e+00> : vector<12x16xf32>
    %138 = tpu.matmul %134, %131, %cst_116 {dimension_numbers = #tpu.dot_dimension_numbers<[1], [0], [0], [1], [0, 0, 1, 1], [], []>} : vector<12x16xf32>, vector<16x16xf32>, vector<12x16xf32> -> vector<12x16xf32>
    %cst_117 = arith.constant dense<0.000000e+00> : vector<12x12xf32>
    %139 = tpu.matmul %138, %135, %cst_117 {dimension_numbers = #tpu.dot_dimension_numbers<[1], [0], [0], [1], [0, 0, 1, 1], [], []>} : vector<12x16xf32>, vector<16x12xf32>, vector<12x12xf32> -> vector<12x12xf32>
    %cst_118 = arith.constant dense<0.000000e+00> : vector<12x16xf32>
    %140 = tpu.matmul %134, %133, %cst_118 {dimension_numbers = #tpu.dot_dimension_numbers<[1], [0], [0], [1], [0, 0, 1, 1], [], []>} : vector<12x16xf32>, vector<16x16xf32>, vector<12x16xf32> -> vector<12x16xf32>
    %cst_119 = arith.constant dense<0.000000e+00> : vector<12x12xf32>
    %141 = tpu.matmul %140, %135, %cst_119 {dimension_numbers = #tpu.dot_dimension_numbers<[1], [0], [0], [1], [0, 0, 1, 1], [], []>} : vector<12x16xf32>, vector<16x12xf32>, vector<12x12xf32> -> vector<12x12xf32>
    %142 = arith.mulf %139, %141 : vector<12x12xf32>
    %143 = arith.mulf %131, %133 : vector<16x16xf32>
    %cst_120 = arith.constant dense<0.000000e+00> : vector<12x16xf32>
    %144 = tpu.matmul %134, %143, %cst_120 {dimension_numbers = #tpu.dot_dimension_numbers<[1], [0], [0], [1], [0, 0, 1, 1], [], []>} : vector<12x16xf32>, vector<16x16xf32>, vector<12x16xf32> -> vector<12x16xf32>
    %cst_121 = arith.constant dense<0.000000e+00> : vector<12x12xf32>
    %145 = tpu.matmul %144, %135, %cst_121 {dimension_numbers = #tpu.dot_dimension_numbers<[1], [0], [0], [1], [0, 0, 1, 1], [], []>} : vector<12x16xf32>, vector<16x12xf32>, vector<12x12xf32> -> vector<12x12xf32>
    %146 = arith.subf %145, %142 : vector<12x12xf32>
    %147 = arith.mulf %131, %131 : vector<16x16xf32>
    %cst_122 = arith.constant dense<0.000000e+00> : vector<12x16xf32>
    %148 = tpu.matmul %134, %147, %cst_122 {dimension_numbers = #tpu.dot_dimension_numbers<[1], [0], [0], [1], [0, 0, 1, 1], [], []>} : vector<12x16xf32>, vector<16x16xf32>, vector<12x16xf32> -> vector<12x16xf32>
    %cst_123 = arith.constant dense<0.000000e+00> : vector<12x12xf32>
    %149 = tpu.matmul %148, %135, %cst_123 {dimension_numbers = #tpu.dot_dimension_numbers<[1], [0], [0], [1], [0, 0, 1, 1], [], []>} : vector<12x16xf32>, vector<16x12xf32>, vector<12x12xf32> -> vector<12x12xf32>
    %150 = arith.mulf %139, %139 : vector<12x12xf32>
    %151 = arith.subf %149, %150 : vector<12x12xf32>
    %152 = arith.mulf %133, %133 : vector<16x16xf32>
    %cst_124 = arith.constant dense<0.000000e+00> : vector<12x16xf32>
    %153 = tpu.matmul %134, %152, %cst_124 {dimension_numbers = #tpu.dot_dimension_numbers<[1], [0], [0], [1], [0, 0, 1, 1], [], []>} : vector<12x16xf32>, vector<16x16xf32>, vector<12x16xf32> -> vector<12x16xf32>
    %cst_125 = arith.constant dense<0.000000e+00> : vector<12x12xf32>
    %154 = tpu.matmul %153, %135, %cst_125 {dimension_numbers = #tpu.dot_dimension_numbers<[1], [0], [0], [1], [0, 0, 1, 1], [], []>} : vector<12x16xf32>, vector<16x12xf32>, vector<12x12xf32> -> vector<12x12xf32>
    %155 = arith.mulf %141, %141 : vector<12x12xf32>
    %156 = arith.subf %154, %155 : vector<12x12xf32>
    %157 = arith.addf %151, %156 : vector<12x12xf32>
    %cst_126 = arith.constant 2.000000e+00 : f32
    %158 = vector.broadcast %cst_126 : f32 to vector<12x12xf32>
    %159 = arith.mulf %158, %146 : vector<12x12xf32>
    %cst_127 = arith.constant 8.99999984E-4 : f32
    %160 = vector.broadcast %cst_127 : f32 to vector<12x12xf32>
    %161 = arith.addf %159, %160 : vector<12x12xf32>
    %cst_128 = arith.constant 8.99999984E-4 : f32
    %162 = vector.broadcast %cst_128 : f32 to vector<12x12xf32>
    %163 = arith.addf %157, %162 : vector<12x12xf32>
    %164 = arith.divf %161, %163 : vector<12x12xf32>
    %cst_129 = arith.constant dense<0.000000e+00> : vector<2x12xf32>
    %165 = tpu.matmul %136, %164, %cst_129 {dimension_numbers = #tpu.dot_dimension_numbers<[1], [0], [0], [1], [0, 0, 1, 1], [], []>} : vector<2x12xf32>, vector<12x12xf32>, vector<2x12xf32> -> vector<2x12xf32>
    %cst_130 = arith.constant dense<0.000000e+00> : vector<2x2xf32>
    %166 = tpu.matmul %165, %137, %cst_130 {dimension_numbers = #tpu.dot_dimension_numbers<[1], [0], [0], [1], [0, 0, 1, 1], [], []>} : vector<2x12xf32>, vector<12x2xf32>, vector<2x2xf32> -> vector<2x2xf32>
    %cst_131 = arith.constant 0.000000e+00 : f32
    %167 = vector.broadcast %cst_131 : f32 to vector<2x2xf32>
    %168 = arith.maximumf %166, %167 : vector<2x2xf32>
    %c0_132 = arith.constant 0 : index
    %c3 = arith.constant 3 : index
    %c0_133 = arith.constant 0 : index
    %c0_134 = arith.constant 0 : index
    %169 = vector.load %arg31[%c0_132, %c3, %c0_133, %c0_134] : memref<1x5x2x2xf32, #tpu.memory_space<vmem>>, vector<1x1x2x2xf32>
    %170 = vector.shape_cast %169 : vector<1x1x2x2xf32> to vector<2x2xf32>
    %171 = vector.shape_cast %168 : vector<2x2xf32> to vector<1x1x2x2xf32>
    tpu.vector_store %arg31[%c0_132, %c3, %c0_133, %c0_134], %171 {strides = array<i32>} : memref<1x5x2x2xf32, #tpu.memory_space<vmem>>, vector<1x1x2x2xf32>,
    %c0_135 = arith.constant 0 : index
    %c0_136 = arith.constant 0 : index
    %172 = vector.load %arg25[%c0_135, %c0_136] : memref<8x16xf32, #tpu.memory_space<vmem>>, vector<8x16xf32>
    %c0_137 = arith.constant 0 : index
    %c0_138 = arith.constant 0 : index
    %173 = vector.load %arg26[%c0_137, %c0_138] : memref<16x8xf32, #tpu.memory_space<vmem>>, vector<16x8xf32>
    %cst_139 = arith.constant dense<0.000000e+00> : vector<8x16xf32>
    %174 = tpu.matmul %172, %131, %cst_139 {dimension_numbers = #tpu.dot_dimension_numbers<[1], [0], [0], [1], [0, 0, 1, 1], [], []>} : vector<8x16xf32>, vector<16x16xf32>, vector<8x16xf32> -> vector<8x16xf32>
    %cst_140 = arith.constant dense<0.000000e+00> : vector<8x8xf32>
    %175 = tpu.matmul %174, %173, %cst_140 {dimension_numbers = #tpu.dot_dimension_numbers<[1], [0], [0], [1], [0, 0, 1, 1], [], []>} : vector<8x16xf32>, vector<16x8xf32>, vector<8x8xf32> -> vector<8x8xf32>
    %cst_141 = arith.constant dense<0.000000e+00> : vector<8x16xf32>
    %176 = tpu.matmul %172, %133, %cst_141 {dimension_numbers = #tpu.dot_dimension_numbers<[1], [0], [0], [1], [0, 0, 1, 1], [], []>} : vector<8x16xf32>, vector<16x16xf32>, vector<8x16xf32> -> vector<8x16xf32>
    %cst_142 = arith.constant dense<0.000000e+00> : vector<8x8xf32>
    %177 = tpu.matmul %176, %173, %cst_142 {dimension_numbers = #tpu.dot_dimension_numbers<[1], [0], [0], [1], [0, 0, 1, 1], [], []>} : vector<8x16xf32>, vector<16x8xf32>, vector<8x8xf32> -> vector<8x8xf32>
    %c0_143 = arith.constant 0 : index
    %c0_144 = arith.constant 0 : index
    %178 = vector.load %arg27[%c0_143, %c0_144] : memref<4x8xf32, #tpu.memory_space<vmem>>, vector<4x8xf32>
    %c0_145 = arith.constant 0 : index
    %c0_146 = arith.constant 0 : index
    %179 = vector.load %arg28[%c0_145, %c0_146] : memref<8x4xf32, #tpu.memory_space<vmem>>, vector<8x4xf32>
    %c0_147 = arith.constant 0 : index
    %c0_148 = arith.constant 0 : index
    %180 = vector.load %arg29[%c0_147, %c0_148] : memref<2x4xf32, #tpu.memory_space<vmem>>, vector<2x4xf32>
    %c0_149 = arith.constant 0 : index
    %c0_150 = arith.constant 0 : index
    %181 = vector.load %arg30[%c0_149, %c0_150] : memref<4x2xf32, #tpu.memory_space<vmem>>, vector<4x2xf32>
    %cst_151 = arith.constant dense<0.000000e+00> : vector<4x8xf32>
    %182 = tpu.matmul %178, %175, %cst_151 {dimension_numbers = #tpu.dot_dimension_numbers<[1], [0], [0], [1], [0, 0, 1, 1], [], []>} : vector<4x8xf32>, vector<8x8xf32>, vector<4x8xf32> -> vector<4x8xf32>
    %cst_152 = arith.constant dense<0.000000e+00> : vector<4x4xf32>
    %183 = tpu.matmul %182, %179, %cst_152 {dimension_numbers = #tpu.dot_dimension_numbers<[1], [0], [0], [1], [0, 0, 1, 1], [], []>} : vector<4x8xf32>, vector<8x4xf32>, vector<4x4xf32> -> vector<4x4xf32>
    %cst_153 = arith.constant dense<0.000000e+00> : vector<4x8xf32>
    %184 = tpu.matmul %178, %177, %cst_153 {dimension_numbers = #tpu.dot_dimension_numbers<[1], [0], [0], [1], [0, 0, 1, 1], [], []>} : vector<4x8xf32>, vector<8x8xf32>, vector<4x8xf32> -> vector<4x8xf32>
    %cst_154 = arith.constant dense<0.000000e+00> : vector<4x4xf32>
    %185 = tpu.matmul %184, %179, %cst_154 {dimension_numbers = #tpu.dot_dimension_numbers<[1], [0], [0], [1], [0, 0, 1, 1], [], []>} : vector<4x8xf32>, vector<8x4xf32>, vector<4x4xf32> -> vector<4x4xf32>
    %186 = arith.mulf %183, %185 : vector<4x4xf32>
    %187 = arith.mulf %175, %177 : vector<8x8xf32>
    %cst_155 = arith.constant dense<0.000000e+00> : vector<4x8xf32>
    %188 = tpu.matmul %178, %187, %cst_155 {dimension_numbers = #tpu.dot_dimension_numbers<[1], [0], [0], [1], [0, 0, 1, 1], [], []>} : vector<4x8xf32>, vector<8x8xf32>, vector<4x8xf32> -> vector<4x8xf32>
    %cst_156 = arith.constant dense<0.000000e+00> : vector<4x4xf32>
    %189 = tpu.matmul %188, %179, %cst_156 {dimension_numbers = #tpu.dot_dimension_numbers<[1], [0], [0], [1], [0, 0, 1, 1], [], []>} : vector<4x8xf32>, vector<8x4xf32>, vector<4x4xf32> -> vector<4x4xf32>
    %190 = arith.subf %189, %186 : vector<4x4xf32>
    %191 = arith.mulf %175, %175 : vector<8x8xf32>
    %cst_157 = arith.constant dense<0.000000e+00> : vector<4x8xf32>
    %192 = tpu.matmul %178, %191, %cst_157 {dimension_numbers = #tpu.dot_dimension_numbers<[1], [0], [0], [1], [0, 0, 1, 1], [], []>} : vector<4x8xf32>, vector<8x8xf32>, vector<4x8xf32> -> vector<4x8xf32>
    %cst_158 = arith.constant dense<0.000000e+00> : vector<4x4xf32>
    %193 = tpu.matmul %192, %179, %cst_158 {dimension_numbers = #tpu.dot_dimension_numbers<[1], [0], [0], [1], [0, 0, 1, 1], [], []>} : vector<4x8xf32>, vector<8x4xf32>, vector<4x4xf32> -> vector<4x4xf32>
    %194 = arith.mulf %183, %183 : vector<4x4xf32>
    %195 = arith.subf %193, %194 : vector<4x4xf32>
    %196 = arith.mulf %177, %177 : vector<8x8xf32>
    %cst_159 = arith.constant dense<0.000000e+00> : vector<4x8xf32>
    %197 = tpu.matmul %178, %196, %cst_159 {dimension_numbers = #tpu.dot_dimension_numbers<[1], [0], [0], [1], [0, 0, 1, 1], [], []>} : vector<4x8xf32>, vector<8x8xf32>, vector<4x8xf32> -> vector<4x8xf32>
    %cst_160 = arith.constant dense<0.000000e+00> : vector<4x4xf32>
    %198 = tpu.matmul %197, %179, %cst_160 {dimension_numbers = #tpu.dot_dimension_numbers<[1], [0], [0], [1], [0, 0, 1, 1], [], []>} : vector<4x8xf32>, vector<8x4xf32>, vector<4x4xf32> -> vector<4x4xf32>
    %199 = arith.mulf %185, %185 : vector<4x4xf32>
    %200 = arith.subf %198, %199 : vector<4x4xf32>
    %201 = arith.addf %195, %200 : vector<4x4xf32>
    %cst_161 = arith.constant 2.000000e+00 : f32
    %202 = vector.broadcast %cst_161 : f32 to vector<4x4xf32>
    %203 = arith.mulf %202, %190 : vector<4x4xf32>
    %cst_162 = arith.constant 8.99999984E-4 : f32
    %204 = vector.broadcast %cst_162 : f32 to vector<4x4xf32>
    %205 = arith.addf %203, %204 : vector<4x4xf32>
    %cst_163 = arith.constant 8.99999984E-4 : f32
    %206 = vector.broadcast %cst_163 : f32 to vector<4x4xf32>
    %207 = arith.addf %201, %206 : vector<4x4xf32>
    %208 = arith.divf %205, %207 : vector<4x4xf32>
    %cst_164 = arith.constant 2.000000e+00 : f32
    %209 = vector.broadcast %cst_164 : f32 to vector<4x4xf32>
    %210 = arith.mulf %209, %186 : vector<4x4xf32>
    %cst_165 = arith.constant 9.99999974E-5 : f32
    %211 = vector.broadcast %cst_165 : f32 to vector<4x4xf32>
    %212 = arith.addf %210, %211 : vector<4x4xf32>
    %213 = arith.mulf %183, %183 : vector<4x4xf32>
    %214 = arith.mulf %185, %185 : vector<4x4xf32>
    %215 = arith.addf %213, %214 : vector<4x4xf32>
    %cst_166 = arith.constant 9.99999974E-5 : f32
    %216 = vector.broadcast %cst_166 : f32 to vector<4x4xf32>
    %217 = arith.addf %215, %216 : vector<4x4xf32>
    %218 = arith.divf %212, %217 : vector<4x4xf32>
    %219 = arith.mulf %218, %208 : vector<4x4xf32>
    %cst_167 = arith.constant dense<0.000000e+00> : vector<2x4xf32>
    %220 = tpu.matmul %180, %219, %cst_167 {dimension_numbers = #tpu.dot_dimension_numbers<[1], [0], [0], [1], [0, 0, 1, 1], [], []>} : vector<2x4xf32>, vector<4x4xf32>, vector<2x4xf32> -> vector<2x4xf32>
    %cst_168 = arith.constant dense<0.000000e+00> : vector<2x2xf32>
    %221 = tpu.matmul %220, %181, %cst_168 {dimension_numbers = #tpu.dot_dimension_numbers<[1], [0], [0], [1], [0, 0, 1, 1], [], []>} : vector<2x4xf32>, vector<4x2xf32>, vector<2x2xf32> -> vector<2x2xf32>
    %cst_169 = arith.constant 0.000000e+00 : f32
    %222 = vector.broadcast %cst_169 : f32 to vector<2x2xf32>
    %223 = arith.maximumf %221, %222 : vector<2x2xf32>
    %c0_170 = arith.constant 0 : index
    %c4 = arith.constant 4 : index
    %c0_171 = arith.constant 0 : index
    %c0_172 = arith.constant 0 : index
    %224 = vector.load %arg31[%c0_170, %c4, %c0_171, %c0_172] : memref<1x5x2x2xf32, #tpu.memory_space<vmem>>, vector<1x1x2x2xf32>
    %225 = vector.shape_cast %224 : vector<1x1x2x2xf32> to vector<2x2xf32>
    %226 = vector.shape_cast %223 : vector<2x2xf32> to vector<1x1x2x2xf32>
    tpu.vector_store %arg31[%c0_170, %c4, %c0_171, %c0_172], %226 {strides = array<i32>} : memref<1x5x2x2xf32, #tpu.memory_space<vmem>>, vector<1x1x2x2xf32>,
    return
  }
  func.func @transform_0(%arg0: i32) -> (i32, i32) {
    %c0_i32 = arith.constant 0 : i32
    %c0_i32_0 = arith.constant 0 : i32
    return %arg0, %c0_i32 : i32, i32
  }
  func.func @transform_1(%arg0: i32) -> (i32, i32) {
    %c0_i32 = arith.constant 0 : i32
    %c0_i32_0 = arith.constant 0 : i32
    return %arg0, %c0_i32 : i32, i32
  }
  func.func @transform_2(%arg0: i32) -> (i32, i32) {
    %c0_i32 = arith.constant 0 : i32
    %c0_i32_0 = arith.constant 0 : i32
    %c0_i32_1 = arith.constant 0 : i32
    return %c0_i32, %c0_i32_0 : i32, i32
  }
  func.func @transform_3(%arg0: i32) -> (i32, i32) {
    %c0_i32 = arith.constant 0 : i32
    %c0_i32_0 = arith.constant 0 : i32
    %c0_i32_1 = arith.constant 0 : i32
    return %c0_i32, %c0_i32_0 : i32, i32
  }
  func.func @transform_4(%arg0: i32) -> (i32, i32) {
    %c0_i32 = arith.constant 0 : i32
    %c0_i32_0 = arith.constant 0 : i32
    %c0_i32_1 = arith.constant 0 : i32
    return %c0_i32, %c0_i32_0 : i32, i32
  }
  func.func @transform_5(%arg0: i32) -> (i32, i32) {
    %c0_i32 = arith.constant 0 : i32
    %c0_i32_0 = arith.constant 0 : i32
    %c0_i32_1 = arith.constant 0 : i32
    return %c0_i32, %c0_i32_0 : i32, i32
  }
  func.func @transform_6(%arg0: i32) -> (i32, i32) {
    %c0_i32 = arith.constant 0 : i32
    %c0_i32_0 = arith.constant 0 : i32
    %c0_i32_1 = arith.constant 0 : i32
    return %c0_i32, %c0_i32_0 : i32, i32
  }
  func.func @transform_7(%arg0: i32) -> (i32, i32) {
    %c0_i32 = arith.constant 0 : i32
    %c0_i32_0 = arith.constant 0 : i32
    %c0_i32_1 = arith.constant 0 : i32
    return %c0_i32, %c0_i32_0 : i32, i32
  }
  func.func @transform_8(%arg0: i32) -> (i32, i32) {
    %c0_i32 = arith.constant 0 : i32
    %c0_i32_0 = arith.constant 0 : i32
    %c0_i32_1 = arith.constant 0 : i32
    return %c0_i32, %c0_i32_0 : i32, i32
  }
  func.func @transform_9(%arg0: i32) -> (i32, i32) {
    %c0_i32 = arith.constant 0 : i32
    %c0_i32_0 = arith.constant 0 : i32
    %c0_i32_1 = arith.constant 0 : i32
    return %c0_i32, %c0_i32_0 : i32, i32
  }
  func.func @transform_10(%arg0: i32) -> (i32, i32) {
    %c0_i32 = arith.constant 0 : i32
    %c0_i32_0 = arith.constant 0 : i32
    %c0_i32_1 = arith.constant 0 : i32
    return %c0_i32, %c0_i32_0 : i32, i32
  }
  func.func @transform_11(%arg0: i32) -> (i32, i32) {
    %c0_i32 = arith.constant 0 : i32
    %c0_i32_0 = arith.constant 0 : i32
    %c0_i32_1 = arith.constant 0 : i32
    return %c0_i32, %c0_i32_0 : i32, i32
  }
  func.func @transform_12(%arg0: i32) -> (i32, i32) {
    %c0_i32 = arith.constant 0 : i32
    %c0_i32_0 = arith.constant 0 : i32
    %c0_i32_1 = arith.constant 0 : i32
    return %c0_i32, %c0_i32_0 : i32, i32
  }
  func.func @transform_13(%arg0: i32) -> (i32, i32) {
    %c0_i32 = arith.constant 0 : i32
    %c0_i32_0 = arith.constant 0 : i32
    %c0_i32_1 = arith.constant 0 : i32
    return %c0_i32, %c0_i32_0 : i32, i32
  }
  func.func @transform_14(%arg0: i32) -> (i32, i32) {
    %c0_i32 = arith.constant 0 : i32
    %c0_i32_0 = arith.constant 0 : i32
    %c0_i32_1 = arith.constant 0 : i32
    return %c0_i32, %c0_i32_0 : i32, i32
  }
  func.func @transform_15(%arg0: i32) -> (i32, i32) {
    %c0_i32 = arith.constant 0 : i32
    %c0_i32_0 = arith.constant 0 : i32
    %c0_i32_1 = arith.constant 0 : i32
    return %c0_i32, %c0_i32_0 : i32, i32
  }
  func.func @transform_16(%arg0: i32) -> (i32, i32) {
    %c0_i32 = arith.constant 0 : i32
    %c0_i32_0 = arith.constant 0 : i32
    %c0_i32_1 = arith.constant 0 : i32
    return %c0_i32, %c0_i32_0 : i32, i32
  }
  func.func @transform_17(%arg0: i32) -> (i32, i32) {
    %c0_i32 = arith.constant 0 : i32
    %c0_i32_0 = arith.constant 0 : i32
    %c0_i32_1 = arith.constant 0 : i32
    return %c0_i32, %c0_i32_0 : i32, i32
  }
  func.func @transform_18(%arg0: i32) -> (i32, i32) {
    %c0_i32 = arith.constant 0 : i32
    %c0_i32_0 = arith.constant 0 : i32
    %c0_i32_1 = arith.constant 0 : i32
    return %c0_i32, %c0_i32_0 : i32, i32
  }
  func.func @transform_19(%arg0: i32) -> (i32, i32) {
    %c0_i32 = arith.constant 0 : i32
    %c0_i32_0 = arith.constant 0 : i32
    %c0_i32_1 = arith.constant 0 : i32
    return %c0_i32, %c0_i32_0 : i32, i32
  }
  func.func @transform_20(%arg0: i32) -> (i32, i32) {
    %c0_i32 = arith.constant 0 : i32
    %c0_i32_0 = arith.constant 0 : i32
    %c0_i32_1 = arith.constant 0 : i32
    return %c0_i32, %c0_i32_0 : i32, i32
  }
  func.func @transform_21(%arg0: i32) -> (i32, i32) {
    %c0_i32 = arith.constant 0 : i32
    %c0_i32_0 = arith.constant 0 : i32
    %c0_i32_1 = arith.constant 0 : i32
    return %c0_i32, %c0_i32_0 : i32, i32
  }
  func.func @transform_22(%arg0: i32) -> (i32, i32) {
    %c0_i32 = arith.constant 0 : i32
    %c0_i32_0 = arith.constant 0 : i32
    %c0_i32_1 = arith.constant 0 : i32
    return %c0_i32, %c0_i32_0 : i32, i32
  }
  func.func @transform_23(%arg0: i32) -> (i32, i32) {
    %c0_i32 = arith.constant 0 : i32
    %c0_i32_0 = arith.constant 0 : i32
    %c0_i32_1 = arith.constant 0 : i32
    return %c0_i32, %c0_i32_0 : i32, i32
  }
  func.func @transform_24(%arg0: i32) -> (i32, i32) {
    %c0_i32 = arith.constant 0 : i32
    %c0_i32_0 = arith.constant 0 : i32
    %c0_i32_1 = arith.constant 0 : i32
    return %c0_i32, %c0_i32_0 : i32, i32
  }
  func.func @transform_25(%arg0: i32) -> (i32, i32) {
    %c0_i32 = arith.constant 0 : i32
    %c0_i32_0 = arith.constant 0 : i32
    %c0_i32_1 = arith.constant 0 : i32
    return %c0_i32, %c0_i32_0 : i32, i32
  }
  func.func @transform_26(%arg0: i32) -> (i32, i32) {
    %c0_i32 = arith.constant 0 : i32
    %c0_i32_0 = arith.constant 0 : i32
    %c0_i32_1 = arith.constant 0 : i32
    return %c0_i32, %c0_i32_0 : i32, i32
  }
  func.func @transform_27(%arg0: i32) -> (i32, i32) {
    %c0_i32 = arith.constant 0 : i32
    %c0_i32_0 = arith.constant 0 : i32
    %c0_i32_1 = arith.constant 0 : i32
    return %c0_i32, %c0_i32_0 : i32, i32
  }
  func.func @transform_28(%arg0: i32) -> (i32, i32) {
    %c0_i32 = arith.constant 0 : i32
    %c0_i32_0 = arith.constant 0 : i32
    %c0_i32_1 = arith.constant 0 : i32
    return %c0_i32, %c0_i32_0 : i32, i32
  }
  func.func @transform_29(%arg0: i32) -> (i32, i32) {
    %c0_i32 = arith.constant 0 : i32
    %c0_i32_0 = arith.constant 0 : i32
    %c0_i32_1 = arith.constant 0 : i32
    return %c0_i32, %c0_i32_0 : i32, i32
  }
  func.func @transform_30(%arg0: i32) -> (i32, i32, i32, i32) {
    %c0_i32 = arith.constant 0 : i32
    %c0_i32_0 = arith.constant 0 : i32
    %c0_i32_1 = arith.constant 0 : i32
    %c0_i32_2 = arith.constant 0 : i32
    return %arg0, %c0_i32, %c0_i32_0, %c0_i32_1 : i32, i32, i32, i32
  }
}

</mosaic_0001>

<bundles_post_ra>
// kernel: ms_ssim_loss.1
= control target key start
LH: loop header
LB: loop body
LE: loop exit
PB: predicated region body
PF: predicated region fallthrough
CT: control target
= control target key end

     0   :  { %s11778_s6 = smov 1   ;;  %s11779_s10 = smov 2   ;;  %s13985_s0 = inlined_call_operand.smem [shape: u32[31], index: -1, kind: input, shape index: {}] }
   0x1   :  { %s11818_s5 = sld [smem:[%s13985_s0]]   ;;  %s11780_s14 = smov 3  }
   0x2   :  { %s11823_s9 = sld [smem:[%s13985_s0 + %s11778_s6]]   ;;  %s11781_s18 = smov 4  }
   0x3   :  { %s11828_s13 = sld [smem:[%s13985_s0 + %s11779_s10]]   ;;  %s11782_s22 = smov 5  }
   0x4   :  { %s11833_s17 = sld [smem:[%s13985_s0 + %s11780_s14]]   ;;  %s11783_s26 = smov 6  }
   0x5   :  { %s11838_s21 = sld [smem:[%s13985_s0 + %s11781_s18]]   ;;  %s11784_s30 = smov 7  }
   0x6   :  { %s11843_s25 = sld [smem:[%s13985_s0 + %s11782_s22]]   ;;  %s11785_s4 = smov 8  }
   0x7   :  { %s11848_s29 = sld [smem:[%s13985_s0 + %s11783_s26]]   ;;  %s11786_s10 = smov 9  }
   0x8   :  { %s11853_s3 = sld [smem:[%s13985_s0 + %s11784_s30]]   ;;  %s11787_s15 = smov 10  }
   0x9   :  { %s11858_s8 = sld [smem:[%s13985_s0 + %s11785_s4]]   ;;  %s11788_s20 = smov 11  }
   0xa   :  { %s11863_s14 = sld [smem:[%s13985_s0 + %s11786_s10]]   ;;  %s11789_s26 = smov 12  }
   0xb   :  { %s11868_s19 = sld [smem:[%s13985_s0 + %s11787_s15]]   ;;  %s11790_s1 = smov 13  }
   0xc   :  { %s11873_s24 = sld [smem:[%s13985_s0 + %s11788_s20]]   ;;  %s11791_s7 = smov 14  }
   0xd   :  { %s11878_s30 = sld [smem:[%s13985_s0 + %s11789_s26]]   ;;  %s11792_s15 = smov 15  }
   0xe   :  { %s11883_s6 = sld [smem:[%s13985_s0 + %s11790_s1]]   ;;  %s11793_s22 = smov 16  }
   0xf   :  { %s11888_s12 = sld [smem:[%s13985_s0 + %s11791_s7]]   ;;  %s11794_s28 = smov 17  }
  0x10   :  { %s11893_s20 = sld [smem:[%s13985_s0 + %s11792_s15]]   ;;  %s11795_s7 = smov 18  }
  0x11   :  { %s11898_s27 = sld [smem:[%s13985_s0 + %s11793_s22]]   ;;  %s11796_s15 = smov 19  }
  0x12   :  { %s11903_s4 = sld [smem:[%s13985_s0 + %s11794_s28]]   ;;  %s11797_s22 = smov 20  }
  0x13   :  { %s11798_s28 = smov 21  }
  0x15   :  { %14020 = sst [smem:[#allocation2_spill]] %s11888_s12 }
  0x16   :  { %14021 = sst [smem:[#allocation3_spill]] %s11893_s20 }
  0x17   :  { %14022 = sst [smem:[#allocation4_spill]] %s11898_s27 }
  0x18   :  { %14023 = sst [smem:[#allocation5_spill]] %s11903_s4 }
  0x19   :  { %s11908_s12 = sld [smem:[%s13985_s0 + %s11795_s7]]   ;;  %s11799_s7 = smov 22  }
  0x1a   :  { %s11913_s20 = sld [smem:[%s13985_s0 + %s11796_s15]]   ;;  %s11800_s15 = smov 23  }
  0x1b   :  { %s11918_s27 = sld [smem:[%s13985_s0 + %s11797_s22]]   ;;  %s11801_s22 = smov 24  }
  0x1c   :  { %s11923_s4 = sld [smem:[%s13985_s0 + %s11798_s28]]   ;;  %s11802_s28 = smov 25  }
  0x1f   :  { %14024 = sst [smem:[#allocation6_spill]] %s11908_s12 }
  0x20   :  { %14025 = sst [smem:[#allocation7_spill]] %s11913_s20 }
  0x21   :  { %14026 = sst [smem:[#allocation8_spill]] %s11918_s27 }
  0x22   :  { %14027 = sst [smem:[#allocation9_spill]] %s11923_s4 }
  0x23   :  { %s11928_s12 = sld [smem:[%s13985_s0 + %s11799_s7]]   ;;  %s11803_s7 = smov 26  }
  0x24   :  { %s11933_s20 = sld [smem:[%s13985_s0 + %s11800_s15]]   ;;  %s11804_s15 = smov 27  }
  0x25   :  { %s11938_s27 = sld [smem:[%s13985_s0 + %s11801_s22]]   ;;  %s11805_s22 = smov 28  }
  0x26   :  { %s11943_s4 = sld [smem:[%s13985_s0 + %s11802_s28]]   ;;  %s11806_s28 = smov 29  }
  0x29   :  { %14028 = sst [smem:[#allocation10_spill]] %s11928_s12 }
  0x2a   :  { %14029 = sst [smem:[#allocation11_spill]] %s11933_s20 }
  0x2b   :  { %14030 = sst [smem:[#allocation12_spill]] %s11938_s27 }
  0x2c   :  { %14031 = sst [smem:[#allocation13_spill]] %s11943_s4 }
  0x2d   :  { %s11948_s12 = sld [smem:[%s13985_s0 + %s11803_s7]]   ;;  %s11807_s7 = smov 30  }
  0x2e   :  { %s11953_s20 = sld [smem:[%s13985_s0 + %s11804_s15]]   ;;  %s11970_s15 = smov 0  }
  0x2f   :  { %s11958_s27 = sld [smem:[%s13985_s0 + %s11805_s22]]  }
  0x30   :  { %s11963_s4 = sld [smem:[%s13985_s0 + %s11806_s28]]  }
  0x33   :  { %14032 = sst [smem:[#allocation14_spill]] %s11948_s12 }
  0x34   :  { %s11968_s12 = sld [smem:[%s13985_s0 + %s11807_s7]]  }
  0x35 LB: > { %s11976_s16 = sadd.s32 4294967295, %s11776_s15   ;;  %p8961_p0 = scmp.ge.s32.totalorder %s11776_s15, 1  ;;  %s11776_s15 = sphi %s11970_s15, %s71_s15  }
  0x36   : > { %p855_p1 = scmp.lt.s32.totalorder %s11776_s15, 3 }
  0x38   : > { %p856_p2 = pnand %p8961_p0, %p855_p1 }
  0x3a   : > { %859 = sbr.rel (%p856_p2) target bundleno = 4588 (0x11ec), region = 140 }
  0x3f   : > { %s8962_s0 = sshll.u32 %s11976_s16, 4  ;;  %v11982_v0 = vld [vmem:[%s11828_s13] sm:$0xff]  ;;  %v12077_v17 = vld [vmem:[%s11828_s13 + $0x8] sm:$0xff]  ;;  %v12084_v19 = vld [vmem:[%s11828_s13 + $0x10] sm:$0xff]  ;;  %vm11809_vm0 = vmmov 0   ;;  %vm2730_vm1 = vcmask 1043456  }
  0x40   : > { %p939_p3 = scmp.lt.s32.totalorder %s8962_s0, 31  ;;  %10075 = vmatprep.mubr.f32.mxu0 %v11982_v0  ;;  %v12095_v21 = vld [vmem:[%s11828_s13 + $0x18] sm:$0xff]  ;;  %v12102_v23 = vld [vmem:[%s11828_s13 + $0x20] sm:$0xff]  ;;  %v12113_v25 = vld [vmem:[%s11828_s13 + $0x28] sm:$0xff]  ;;  %vm2726_vm2 = vcmask 1014784   ;;  %vm3352_vm3 = vcmask 523264  }
  0x41   : > { %v12120_v27 = vld [vmem:[%s11828_s13 + $0x30] sm:$0xff]  ;;  %v12131_v29 = vld [vmem:[%s11828_s13 + $0x38] sm:$0xff]  ;;  %v12138_v31 = vld [vmem:[%s11828_s13 + $0x40] sm:$0xff]  ;;  %p950_p4 = scmp.lt.s32.totalorder %s11976_s16, 1  ;;  %vm2881_vm4 = vcmask 9216   ;;  %vm4667_vm5 = vcmask 490496  }
  0x42   : > { %s14110_s0 = smov (!%p939_p3, %s8962_s0), 31  ;;  %v12149_v33 = vld [vmem:[%s11828_s13 + $0x48] sm:$0xff]  ;;  %v12156_v35 = vld [vmem:[%s11828_s13 + $0x50] sm:$0xff]  ;;  %v12167_v37 = vld [vmem:[%s11828_s13 + $0x58] sm:$0xff]  ;;  %s14096_s1 = sld [smem:[#allocation2_spill]]  ;;  %vm5224_vm6 = vcmask 261120  }
  0x43   : > { %s8963_s18 = sshll.u32 %s14110_s0, 3  ;;  %v12174_v39 = vld [vmem:[%s11828_s13 + $0x60] sm:$0xff]  ;;  %v12185_v41 = vld [vmem:[%s11828_s13 + $0x68] sm:$0xff]  ;;  %v12192_v43 = vld [vmem:[%s11828_s13 + $0x70] sm:$0xff]  ;;  %s14112_s16 = smov (!%p950_p4, %s11976_s16), 1  ;;  %vm6207_vm7 = vcmask 228352  }
  0x44   : > { %s11991_s22 = scalar_lea.vmem %s11818_s5, %s8963_s18  ;;  %s12068_s23 = scalar_lea.vmem %s11823_s9, %s8963_s18  ;;  %v12203_v45 = vld [vmem:[%s11828_s13 + $0x78] sm:$0xf]  ;;  %v12229_v51 = vld [vmem:[%s11833_s17 + $0x70] sm:$0xff]  ;;  %v12240_v54 = vld [vmem:[%s11833_s17 + $0x68] sm:$0xff]  ;;  %vm6694_vm8 = vcmask 130048   ;;  %vm7511_vm9 = vcmask 97280  }
  0x45   : > { %v11994_v1 = vld [vmem:[%s11991_s22 + $0x78] sm:$0xff]  ;;  %v11997_v2 = vld [vmem:[%s11991_s22 + $0x70] sm:$0xff]  ;;  %v12002_v3 = vld [vmem:[%s11991_s22 + $0x68] sm:$0xff]  ;;  %s11633_s26 = smul.u32 10, %s14112_s16  ;;  %s14097_s2 = sld [smem:[#allocation3_spill]]  ;;  %vm7963_vm10 = vcmask 64512  }
  0x46   : > { %10043 = vmatprep.subr.mxu0 %v11994_v1  ;;  %v12007_v4 = vld [vmem:[%s11991_s22 + $0x60] sm:$0xff]  ;;  %v12012_v5 = vld [vmem:[%s11991_s22 + $0x58] sm:$0xff]  ;;  %v12017_v6 = vld [vmem:[%s11991_s22 + $0x50] sm:$0xff]  ;;  %s14098_s7 = sld [smem:[#allocation5_spill]]  ;;  %vm8704_vm11 = vcmask 31744  }
  0x47   : > { %10044 = vmatpush3.msra.mxu0 %v11994_v1  ;;  %v12022_v7 = vld [vmem:[%s11991_s22 + $0x48] sm:$0xff]  ;;  %v12027_v8 = vld [vmem:[%s11991_s22 + $0x40] sm:$0xff]  ;;  %v12032_v9 = vld [vmem:[%s11991_s22 + $0x38] sm:$0xff]  ;;  %s13044_s28 = scalar_lea.vmem %s11968_s12, %s11633_s26  ;;  %s14099_s10 = sld [smem:[#allocation4_spill]] }
  0x48   : > { %10045 = vmatprep.subr.mxu0 %v11997_v2  ;;  %v12037_v10 = vld [vmem:[%s11991_s22 + $0x30] sm:$0xff]  ;;  %v12042_v11 = vld [vmem:[%s11991_s22 + $0x28] sm:$0xff]  ;;  %v12047_v12 = vld [vmem:[%s11991_s22 + $0x20] sm:$0xff]  ;;  %s14100_s11 = sld [smem:[#allocation6_spill]] }
  0x49   : > { %10046 = vmatpush3.msra.mxu0 %v11997_v2  ;;  %v12052_v13 = vld [vmem:[%s11991_s22 + $0x18] sm:$0xff]  ;;  %v12057_v14 = vld [vmem:[%s11991_s22 + $0x10] sm:$0xff]  ;;  %v12062_v15 = vld [vmem:[%s11991_s22 + $0x8] sm:$0xff]  ;;  %s14101_s16 = sld [smem:[#allocation7_spill]] }
  0x4a   : > { %10047 = vmatprep.subr.mxu0 %v12002_v3  ;;  %v12072_v16 = vld [vmem:[%s11991_s22] sm:$0xff]  ;;  %v12080_v18 = vld [vmem:[%s12068_s23 + $0x78] sm:$0xff]  ;;  %v12088_v20 = vld [vmem:[%s12068_s23 + $0x70] sm:$0xff]  ;;  %s14102_s0 = sld [smem:[#allocation8_spill]] }
  0x4b   : > { %10048 = vmatpush3.msra.mxu0 %v12002_v3  ;;  %v12098_v22 = vld [vmem:[%s12068_s23 + $0x68] sm:$0xff]  ;;  %v12106_v24 = vld [vmem:[%s12068_s23 + $0x60] sm:$0xff]  ;;  %v12116_v26 = vld [vmem:[%s12068_s23 + $0x58] sm:$0xff]  ;;  %v1647_v48 = vmul.f32 %v12080_v18, %v11994_v1  ;;  %v1646_v50 = vmul.f32 %v12088_v20, %v11997_v2  ;;  %s14103_s18 = sld [smem:[#allocation9_spill]] }
  0x4c   : > { %10049 = vmatprep.subr.mxu0 %v12007_v4  ;;  %v12124_v28 = vld [vmem:[%s12068_s23 + $0x50] sm:$0xff]  ;;  %v12134_v30 = vld [vmem:[%s12068_s23 + $0x48] sm:$0xff]  ;;  %v12142_v32 = vld [vmem:[%s12068_s23 + $0x40] sm:$0xff]  ;;  %v1645_v52 = vmul.f32 %v12098_v22, %v12002_v3  ;;  %v1644_v53 = vmul.f32 %v12106_v24, %v12007_v4  ;;  %v1643_v55 = vmul.f32 %v12116_v26, %v12012_v5  ;;  %s14106_s26 = sld [smem:[#allocation12_spill]] }
  0x4d   : > { %10050 = vmatpush3.msra.mxu0 %v12007_v4  ;;  %v12152_v34 = vld [vmem:[%s12068_s23 + $0x38] sm:$0xff]  ;;  %v12160_v36 = vld [vmem:[%s12068_s23 + $0x30] sm:$0xff]  ;;  %v12170_v38 = vld [vmem:[%s12068_s23 + $0x28] sm:$0xff]  ;;  %v1642_v56 = vmul.f32 %v12124_v28, %v12017_v6  ;;  %v1641_v58 = vmul.f32 %v12134_v30, %v12022_v7  ;;  %v1640_v59 = vmul.f32 %v12142_v32, %v12027_v8 }
  0x4e   : > { %10051 = vmatprep.subr.mxu0 %v12012_v5  ;;  %v12178_v40 = vld [vmem:[%s12068_s23 + $0x20] sm:$0xff]  ;;  %v12188_v42 = vld [vmem:[%s12068_s23 + $0x18] sm:$0xff]  ;;  %v12196_v44 = vld [vmem:[%s12068_s23 + $0x10] sm:$0xff]  ;;  %v1639_v61 = vmul.f32 %v12152_v34, %v12032_v9  ;;  %v1638_v62 = vmul.f32 %v12160_v36, %v12037_v10 }
  0x4f   : > { %10052 = vmatpush3.msra.mxu0 %v12012_v5  ;;  %v12206_v46 = vld [vmem:[%s12068_s23 + $0x8] sm:$0xff]  ;;  %v12211_v47 = vld [vmem:[%s12068_s23] sm:$0xff]  ;;  %v12218_v49 = vld [vmem:[%s11833_s17 + $0x78] sm:$0xff] }
  0x50   : > { %10053 = vmatprep.subr.mxu0 %v12017_v6  ;;  %10099 = vmatprep.subr.mxu1 %v12218_v49  ;;  %v12251_v57 = vld [vmem:[%s11833_s17 + $0x60] sm:$0xff]  ;;  %v12262_v60 = vld [vmem:[%s11833_s17 + $0x58] sm:$0xff]  ;;  %v12273_v63 = vld [vmem:[%s11833_s17 + $0x50] sm:$0xff] }
  0x51   : > { %10054 = vmatpush3.msra.mxu0 %v12017_v6  ;;  %10100 = vmatpush3.msra.mxu1 %v12218_v49 }
  0x52   : > { %10055 = vmatprep.subr.mxu0 %v12022_v7  ;;  %10101 = vmatprep.subr.mxu1 %v12229_v51 }
  0x53   : > { %10056 = vmatpush3.msra.mxu0 %v12022_v7  ;;  %10102 = vmatpush3.msra.mxu1 %v12229_v51 }
  0x54   : > { %10057 = vmatprep.subr.mxu0 %v12027_v8  ;;  %10103 = vmatprep.subr.mxu1 %v12240_v54 }
  0x55   : > { %10058 = vmatpush3.msra.mxu0 %v12027_v8  ;;  %10104 = vmatpush3.msra.mxu1 %v12240_v54 }
  0x56   : > { %10059 = vmatprep.subr.mxu0 %v12032_v9  ;;  %10105 = vmatprep.subr.mxu1 %v12251_v57 }
  0x57   : > { %10060 = vmatpush3.msra.mxu0 %v12032_v9  ;;  %10106 = vmatpush3.msra.mxu1 %v12251_v57 }
  0x58   : > { %10061 = vmatprep.subr.mxu0 %v12037_v10  ;;  %10107 = vmatprep.subr.mxu1 %v12262_v60 }
  0x59   : > { %10062 = vmatpush3.msra.mxu0 %v12037_v10  ;;  %10108 = vmatpush3.msra.mxu1 %v12262_v60 }
  0x5a   : > { %10063 = vmatprep.subr.mxu0 %v12042_v11  ;;  %10109 = vmatprep.subr.mxu1 %v12273_v63 }
  0x5b   : > { %10064 = vmatpush3.msra.mxu0 %v12042_v11  ;;  %10110 = vmatpush3.msra.mxu1 %v12273_v63 }
  0x5c   : > { %10065 = vmatprep.subr.mxu0 %v12047_v12 }
  0x5d   : > { %10066 = vmatpush3.msra.mxu0 %v12047_v12 }
  0x5e   : > { %10067 = vmatprep.subr.mxu0 %v12052_v13 }
  0x5f   : > { %10068 = vmatpush3.msra.mxu0 %v12052_v13 }
  0x60   : > { %10069 = vmatprep.subr.mxu0 %v12057_v14 }
  0x61   : > { %10070 = vmatpush3.msra.mxu0 %v12057_v14 }
  0x62   : > { %10071 = vmatprep.subr.mxu0 %v12062_v15 }
  0x63   : > { %10072 = vmatpush3.msra.mxu0 %v12062_v15 }
  0x64   : > { %10073 = vmatprep.subr.mxu0 %v12072_v16 }
  0x65   : > { %10074 = vmatpush3.msra.mxu0 %v12072_v16 }
  0x66   : > { %10076 = vmatmul.mubr.f32.vlgmr.msra.gmra.mxu0 %v12077_v17  ;;  %10155 = vmatprep.subr.mxu0 %v12080_v18 }
  0x67   : > { %10156 = vmatpush3.msra.mxu0 %v12080_v18  ;;  %10078 = vmatprep.mubr.f32.mxu0 %v12084_v19 }
  0x68   : > { %10157 = vmatprep.subr.mxu0 %v12088_v20 }
  0x69   : > { %10158 = vmatpush3.msra.mxu0 %v12088_v20 }
  0x6a   : > { %10079 = vmatmul.mubr.f32.gmra.mxu0 %v12095_v21  ;;  %10159 = vmatprep.subr.mxu0 %v12098_v22 }
  0x6b   : > { %10160 = vmatpush3.msra.mxu0 %v12098_v22  ;;  %10081 = vmatprep.mubr.f32.mxu0 %v12102_v23 }
  0x6c   : > { %10161 = vmatprep.subr.mxu0 %v12106_v24 }
  0x6d   : > { %10162 = vmatpush3.msra.mxu0 %v12106_v24 }
  0x6e   : > { %10082 = vmatmul.mubr.f32.gmra.mxu0 %v12113_v25  ;;  %10163 = vmatprep.subr.mxu0 %v12116_v26 }
  0x6f   : > { %10164 = vmatpush3.msra.mxu0 %v12116_v26  ;;  %10084 = vmatprep.mubr.f32.mxu0 %v12120_v27 }
  0x70   : > { %10165 = vmatprep.subr.mxu0 %v12124_v28 }
  0x71   : > { %10166 = vmatpush3.msra.mxu0 %v12124_v28 }
  0x72   : > { %10085 = vmatmul.mubr.f32.gmra.mxu0 %v12131_v29  ;;  %10167 = vmatprep.subr.mxu0 %v12134_v30 }
  0x73   : > { %10168 = vmatpush3.msra.mxu0 %v12134_v30  ;;  %10087 = vmatprep.mubr.f32.mxu0 %v12138_v31 }
  0x74   : > { %10169 = vmatprep.subr.mxu0 %v12142_v32 }
  0x75   : > { %10170 = vmatpush3.msra.mxu0 %v12142_v32 }
  0x76   : > { %10088 = vmatmul.mubr.f32.gmra.mxu0 %v12149_v33  ;;  %10171 = vmatprep.subr.mxu0 %v12152_v34 }
  0x77   : > { %10172 = vmatpush3.msra.mxu0 %v12152_v34  ;;  %10090 = vmatprep.mubr.f32.mxu0 %v12156_v35 }
  0x78   : > { %10173 = vmatprep.subr.mxu0 %v12160_v36 }
  0x79   : > { %10174 = vmatpush3.msra.mxu0 %v12160_v36 }
  0x7a   : > { %10091 = vmatmul.mubr.f32.gmra.mxu0 %v12167_v37  ;;  %10175 = vmatprep.subr.mxu0 %v12170_v38 }
  0x7b   : > { %10176 = vmatpush3.msra.mxu0 %v12170_v38  ;;  %10093 = vmatprep.mubr.f32.mxu0 %v12174_v39 }
  0x7c   : > { %10177 = vmatprep.subr.mxu0 %v12178_v40 }
  0x7d   : > { %10178 = vmatpush3.msra.mxu0 %v12178_v40 }
  0x7e   : > { %10094 = vmatmul.mubr.f32.gmra.mxu0 %v12185_v41  ;;  %10179 = vmatprep.subr.mxu0 %v12188_v42 }
  0x7f   : > { %10180 = vmatpush3.msra.mxu0 %v12188_v42  ;;  %10096 = vmatprep.mubr.f32.mxu0 %v12192_v43 }
  0x80   : > { %10181 = vmatprep.subr.mxu0 %v12196_v44 }
  0x81   : > { %10182 = vmatpush3.msra.mxu0 %v12196_v44 }
  0x82   : > { %10097 = vmatmul.mubr.f32.gmra.mxu0 %v12203_v45  ;;  %10183 = vmatprep.subr.mxu0 %v12206_v46 }
  0x83   : > { %10184 = vmatpush3.msra.mxu0 %v12206_v46  ;;  %10187 = vmatprep.mubr.f32.mxu0 %v11982_v0 }
  0x84   : > { %10185 = vmatprep.subr.mxu0 %v12211_v47 }
  0x85   : > { %10186 = vmatpush3.msra.mxu0 %v12211_v47 }
  0x86   : > { %10188 = vmatmul.mubr.f32.vlgmr.msra.gmra.mxu0 %v12077_v17  ;;  %10267 = vmatprep.subr.mxu0 %v1647_v48 }
  0x87   : > { %10268 = vmatpush3.msra.mxu0 %v1647_v48  ;;  %10190 = vmatprep.mubr.f32.mxu0 %v12084_v19  ;;  %v1637_v48 = vmul.f32 %v12170_v38, %v12042_v11 }
  0x88   : > { %10269 = vmatprep.subr.mxu0 %v1646_v50 }
  0x89   : > { %10270 = vmatpush3.msra.mxu0 %v1646_v50  ;;  %v1636_v50 = vmul.f32 %v12178_v40, %v12047_v12 }
  0x8a   : > { %10191 = vmatmul.mubr.f32.gmra.mxu0 %v12095_v21  ;;  %10271 = vmatprep.subr.mxu0 %v1645_v52 }
  0x8b   : > { %10272 = vmatpush3.msra.mxu0 %v1645_v52  ;;  %10193 = vmatprep.mubr.f32.mxu0 %v12102_v23  ;;  %v12284_v52 = vld [vmem:[%s11833_s17 + $0x48] sm:$0xff] }
  0x8c   : > { %10273 = vmatprep.subr.mxu0 %v1644_v53  ;;  %10111 = vmatprep.subr.mxu1 %v12284_v52 }
  0x8d   : > { %10274 = vmatpush3.msra.mxu0 %v1644_v53  ;;  %v1635_v53 = vmul.f32 %v12188_v42, %v12052_v13  ;;  %10112 = vmatpush3.msra.mxu1 %v12284_v52 }
  0x8e   : > { %10194 = vmatmul.mubr.f32.gmra.mxu0 %v12113_v25  ;;  %10275 = vmatprep.subr.mxu0 %v1643_v55 }
  0x8f   : > { %10276 = vmatpush3.msra.mxu0 %v1643_v55  ;;  %10196 = vmatprep.mubr.f32.mxu0 %v12120_v27  ;;  %v1634_v55 = vmul.f32 %v12196_v44, %v12057_v14 }
  0x90   : > { %10277 = vmatprep.subr.mxu0 %v1642_v56 }
  0x91   : > { %10278 = vmatpush3.msra.mxu0 %v1642_v56  ;;  %v12295_v56 = vld [vmem:[%s11833_s17 + $0x40] sm:$0xff] }
  0x92   : > { %10197 = vmatmul.mubr.f32.gmra.mxu0 %v12131_v29  ;;  %10279 = vmatprep.subr.mxu0 %v1641_v58 }
  0x93   : > { %10280 = vmatpush3.msra.mxu0 %v1641_v58  ;;  %10199 = vmatprep.mubr.f32.mxu0 %v12138_v31  ;;  %v1633_v58 = vmul.f32 %v12206_v46, %v12062_v15 }
  0x94   : > { %10281 = vmatprep.subr.mxu0 %v1640_v59  ;;  %10113 = vmatprep.subr.mxu1 %v12295_v56 }
  0x95   : > { %10282 = vmatpush3.msra.mxu0 %v1640_v59  ;;  %v1632_v59 = vmul.f32 %v12211_v47, %v12072_v16  ;;  %10114 = vmatpush3.msra.mxu1 %v12295_v56 }
  0x96   : > { %10200 = vmatmul.mubr.f32.gmra.mxu0 %v12149_v33  ;;  %10283 = vmatprep.subr.mxu0 %v1639_v61 }
  0x97   : > { %10284 = vmatpush3.msra.mxu0 %v1639_v61  ;;  %10202 = vmatprep.mubr.f32.mxu0 %v12156_v35  ;;  %v12306_v61 = vld [vmem:[%s11833_s17 + $0x38] sm:$0xff] }
  0x98   : > { %10285 = vmatprep.subr.mxu0 %v1638_v62  ;;  %10115 = vmatprep.subr.mxu1 %v12306_v61 }
  0x99   : > { %10286 = vmatpush3.msra.mxu0 %v1638_v62  ;;  %v1969_v62 = vmul.f32 %v11994_v1, %v11994_v1  ;;  %10116 = vmatpush3.msra.mxu1 %v12306_v61  ;;  %v1967_v1 = vmul.f32 %v12002_v3, %v12002_v3  ;;  %v1965_v3 = vmul.f32 %v12012_v5, %v12012_v5 }
  0x9a   : > { %10203 = vmatmul.mubr.f32.gmra.mxu0 %v12167_v37  ;;  %10287 = vmatprep.subr.mxu0 %v1637_v48  ;;  %v1963_v5 = vmul.f32 %v12022_v7, %v12022_v7  ;;  %v1961_v7 = vmul.f32 %v12032_v9, %v12032_v9  ;;  %v1959_v9 = vmul.f32 %v12042_v11, %v12042_v11 }
  0x9b   : > { %10288 = vmatpush3.msra.mxu0 %v1637_v48  ;;  %10205 = vmatprep.mubr.f32.mxu0 %v12174_v39  ;;  %v1968_v48 = vmul.f32 %v11997_v2, %v11997_v2  ;;  %v1966_v2 = vmul.f32 %v12007_v4, %v12007_v4  ;;  %v1964_v4 = vmul.f32 %v12017_v6, %v12017_v6 }
  0x9c   : > { %10289 = vmatprep.subr.mxu0 %v1636_v50  ;;  %v1962_v6 = vmul.f32 %v12027_v8, %v12027_v8  ;;  %v1960_v8 = vmul.f32 %v12037_v10, %v12037_v10  ;;  %v1958_v10 = vmul.f32 %v12047_v12, %v12047_v12  ;;  %v1957_v11 = vmul.f32 %v12052_v13, %v12052_v13 }
  0x9d   : > { %10290 = vmatpush3.msra.mxu0 %v1636_v50  ;;  %v12317_v50 = vld [vmem:[%s11833_s17 + $0x30] sm:$0xff]  ;;  %v1956_v12 = vmul.f32 %v12057_v14, %v12057_v14  ;;  %v1955_v13 = vmul.f32 %v12062_v15, %v12062_v15  ;;  %v1954_v14 = vmul.f32 %v12072_v16, %v12072_v16  ;;  %v2306_v15 = vmul.f32 %v12088_v20, %v12088_v20 }
  0x9e   : > { %10206 = vmatmul.mubr.f32.gmra.mxu0 %v12185_v41  ;;  %10291 = vmatprep.subr.mxu0 %v1635_v53  ;;  %v2305_v16 = vmul.f32 %v12098_v22, %v12098_v22  ;;  %v2303_v20 = vmul.f32 %v12116_v26, %v12116_v26  ;;  %v2302_v22 = vmul.f32 %v12124_v28, %v12124_v28 }
  0x9f   : > { %10292 = vmatpush3.msra.mxu0 %v1635_v53  ;;  %10208 = vmatprep.mubr.f32.mxu0 %v12192_v43  ;;  %v12328_v53 = vld [vmem:[%s11833_s17 + $0x28] sm:$0xff]  ;;  %v2300_v26 = vmul.f32 %v12142_v32, %v12142_v32  ;;  %v2299_v28 = vmul.f32 %v12152_v34, %v12152_v34  ;;  %v2297_v32 = vmul.f32 %v12170_v38, %v12170_v38 }
  0xa0   : > { %10293 = vmatprep.subr.mxu0 %v1634_v55  ;;  %10117 = vmatprep.subr.mxu1 %v12317_v50  ;;  %v2296_v34 = vmul.f32 %v12178_v40, %v12178_v40  ;;  %v2294_v38 = vmul.f32 %v12196_v44, %v12196_v44  ;;  %v2293_v40 = vmul.f32 %v12206_v46, %v12206_v46 }
  0xa1   : > { %10294 = vmatpush3.msra.mxu0 %v1634_v55  ;;  %10118 = vmatpush3.msra.mxu1 %v12317_v50  ;;  %v12339_v55 = vld [vmem:[%s11833_s17 + $0x20] sm:$0xff] }
  0xa2   : > { %10209 = vmatmul.mubr.f32.gmra.mxu0 %v12203_v45  ;;  %10295 = vmatprep.subr.mxu0 %v1633_v58 }
  0xa3   : > { %10296 = vmatpush3.msra.mxu0 %v1633_v58  ;;  %10299 = vmatprep.mubr.f32.mxu0 %v11982_v0  ;;  %v12350_v58 = vld [vmem:[%s11833_s17 + $0x18] sm:$0xff] }
  0xa4   : > { %10297 = vmatprep.subr.mxu0 %v1632_v59  ;;  %10119 = vmatprep.subr.mxu1 %v12328_v53 }
  0xa5   : > { %10298 = vmatpush3.msra.mxu0 %v1632_v59  ;;  %10120 = vmatpush3.msra.mxu1 %v12328_v53  ;;  %v12361_v59 = vld [vmem:[%s11833_s17 + $0x10] sm:$0xff] }
  0xa6   : > { %10300 = vmatmul.mubr.f32.vlgmr.msra.gmra.mxu0 %v12077_v17  ;;  %10379 = vmatprep.subr.mxu0 %v1969_v62 }
  0xa7   : > { %10380 = vmatpush3.msra.mxu0 %v1969_v62  ;;  %10302 = vmatprep.mubr.f32.mxu0 %v12084_v19  ;;  %v12372_v62 = vld [vmem:[%s11833_s17 + $0x8] sm:$0xff] }
  0xa8   : > { %10381 = vmatprep.subr.mxu0 %v1968_v48  ;;  %10121 = vmatprep.subr.mxu1 %v12339_v55 }
  0xa9   : > { %10382 = vmatpush3.msra.mxu0 %v1968_v48  ;;  %10122 = vmatpush3.msra.mxu1 %v12339_v55  ;;  %v12383_v48 = vld [vmem:[%s11833_s17] sm:$0xff] }
  0xaa   : > { %10303 = vmatmul.mubr.f32.gmra.mxu0 %v12095_v21  ;;  %10383 = vmatprep.subr.mxu0 %v1967_v1 }
  0xab   : > { %10384 = vmatpush3.msra.mxu0 %v1967_v1  ;;  %10305 = vmatprep.mubr.f32.mxu0 %v12102_v23  ;;  %v2307_v1 = vmul.f32 %v12080_v18, %v12080_v18  ;;  %v2304_v18 = vmul.f32 %v12106_v24, %v12106_v24  ;;  %v2301_v24 = vmul.f32 %v12134_v30, %v12134_v30 }
  0xac   : > { %10385 = vmatprep.subr.mxu0 %v1966_v2  ;;  %10123 = vmatprep.subr.mxu1 %v12350_v58  ;;  %v2298_v30 = vmul.f32 %v12160_v36, %v12160_v36  ;;  %v2295_v36 = vmul.f32 %v12188_v42, %v12188_v42  ;;  %v2292_v42 = vmul.f32 %v12211_v47, %v12211_v47 }
  0xad   : > { %10386 = vmatpush3.msra.mxu0 %v1966_v2  ;;  %10124 = vmatpush3.msra.mxu1 %v12350_v58 }
  0xae   : > { %10306 = vmatmul.mubr.f32.gmra.mxu0 %v12113_v25  ;;  %10387 = vmatprep.subr.mxu0 %v1965_v3 }
  0xaf   : > { %10388 = vmatpush3.msra.mxu0 %v1965_v3  ;;  %10308 = vmatprep.mubr.f32.mxu0 %v12120_v27 }
  0xb0   : > { %10389 = vmatprep.subr.mxu0 %v1964_v4  ;;  %10125 = vmatprep.subr.mxu1 %v12361_v59 }
  0xb1   : > { %10390 = vmatpush3.msra.mxu0 %v1964_v4  ;;  %10126 = vmatpush3.msra.mxu1 %v12361_v59 }
  0xb2   : > { %10309 = vmatmul.mubr.f32.gmra.mxu0 %v12131_v29  ;;  %10391 = vmatprep.subr.mxu0 %v1963_v5 }
  0xb3   : > { %10392 = vmatpush3.msra.mxu0 %v1963_v5  ;;  %10311 = vmatprep.mubr.f32.mxu0 %v12138_v31 }
  0xb4   : > { %10393 = vmatprep.subr.mxu0 %v1962_v6  ;;  %10127 = vmatprep.subr.mxu1 %v12372_v62 }
  0xb5   : > { %10394 = vmatpush3.msra.mxu0 %v1962_v6  ;;  %10128 = vmatpush3.msra.mxu1 %v12372_v62 }
  0xb6   : > { %10312 = vmatmul.mubr.f32.gmra.mxu0 %v12149_v33  ;;  %10395 = vmatprep.subr.mxu0 %v1961_v7 }
  0xb7   : > { %10396 = vmatpush3.msra.mxu0 %v1961_v7  ;;  %10314 = vmatprep.mubr.f32.mxu0 %v12156_v35 }
  0xb8   : > { %10397 = vmatprep.subr.mxu0 %v1960_v8  ;;  %10129 = vmatprep.subr.mxu1 %v12383_v48 }
  0xb9   : > { %10398 = vmatpush3.msra.mxu0 %v1960_v8  ;;  %10130 = vmatpush3.msra.mxu1 %v12383_v48 }
  0xba   : > { %10315 = vmatmul.mubr.f32.gmra.mxu0 %v12167_v37  ;;  %10399 = vmatprep.subr.mxu0 %v1959_v9 }
  0xbb   : > { %10400 = vmatpush3.msra.mxu0 %v1959_v9  ;;  %10317 = vmatprep.mubr.f32.mxu0 %v12174_v39 }
  0xbc   : > { %10401 = vmatprep.subr.mxu0 %v1958_v10  ;;  %10211 = vmatprep.subr.mxu1 %v12218_v49 }
  0xbd   : > { %10402 = vmatpush3.msra.mxu0 %v1958_v10 }
  0xbe   : > { %10318 = vmatmul.mubr.f32.gmra.mxu0 %v12185_v41  ;;  %10403 = vmatprep.subr.mxu0 %v1957_v11 }
  0xbf   : > { %10404 = vmatpush3.msra.mxu0 %v1957_v11  ;;  %10320 = vmatprep.mubr.f32.mxu0 %v12192_v43 }
  0xc0   : > { %10405 = vmatprep.subr.mxu0 %v1956_v12 }
  0xc1   : > { %10406 = vmatpush3.msra.mxu0 %v1956_v12 }
  0xc2   : > { %10321 = vmatmul.mubr.f32.gmra.mxu0 %v12203_v45  ;;  %10407 = vmatprep.subr.mxu0 %v1955_v13 }
  0xc3   : > { %10408 = vmatpush3.msra.mxu0 %v1955_v13  ;;  %10411 = vmatprep.mubr.f32.mxu0 %v11982_v0 }
  0xc4   : > { %10409 = vmatprep.subr.mxu0 %v1954_v14 }
  0xc5   : > { %10410 = vmatpush3.msra.mxu0 %v1954_v14 }
  0xc6   : > { %10412 = vmatmul.mubr.f32.vlgmr.msra.gmra.mxu0 %v12077_v17  ;;  %10491 = vmatprep.subr.mxu0 %v2307_v1 }
  0xc7   : > { %10492 = vmatpush3.msra.mxu0 %v2307_v1  ;;  %10414 = vmatprep.mubr.f32.mxu0 %v12084_v19 }
  0xc8   : > { %10493 = vmatprep.subr.mxu0 %v2306_v15 }
  0xc9   : > { %10494 = vmatpush3.msra.mxu0 %v2306_v15 }
  0xca   : > { %10415 = vmatmul.mubr.f32.gmra.mxu0 %v12095_v21  ;;  %10495 = vmatprep.subr.mxu0 %v2305_v16 }
  0xcb   : > { %10496 = vmatpush3.msra.mxu0 %v2305_v16  ;;  %10417 = vmatprep.mubr.f32.mxu0 %v12102_v23 }
  0xcc   : > { %10497 = vmatprep.subr.mxu0 %v2304_v18 }
  0xcd   : > { %10498 = vmatpush3.msra.mxu0 %v2304_v18 }
  0xce   : > { %10418 = vmatmul.mubr.f32.gmra.mxu0 %v12113_v25  ;;  %10499 = vmatprep.subr.mxu0 %v2303_v20 }
  0xcf   : > { %10500 = vmatpush3.msra.mxu0 %v2303_v20  ;;  %10420 = vmatprep.mubr.f32.mxu0 %v12120_v27 }
  0xd0   : > { %10501 = vmatprep.subr.mxu0 %v2302_v22 }
  0xd1   : > { %10502 = vmatpush3.msra.mxu0 %v2302_v22 }
  0xd2   : > { %10421 = vmatmul.mubr.f32.gmra.mxu0 %v12131_v29  ;;  %10503 = vmatprep.subr.mxu0 %v2301_v24 }
  0xd3   : > { %10504 = vmatpush3.msra.mxu0 %v2301_v24  ;;  %10423 = vmatprep.mubr.f32.mxu0 %v12138_v31 }
  0xd4   : > { %10505 = vmatprep.subr.mxu0 %v2300_v26 }
  0xd5   : > { %10506 = vmatpush3.msra.mxu0 %v2300_v26 }
  0xd6   : > { %10424 = vmatmul.mubr.f32.gmra.mxu0 %v12149_v33  ;;  %10507 = vmatprep.subr.mxu0 %v2299_v28 }
  0xd7   : > { %10508 = vmatpush3.msra.mxu0 %v2299_v28  ;;  %10426 = vmatprep.mubr.f32.mxu0 %v12156_v35 }
  0xd8   : > { %10509 = vmatprep.subr.mxu0 %v2298_v30 }
  0xd9   : > { %10510 = vmatpush3.msra.mxu0 %v2298_v30 }
  0xda   : > { %10427 = vmatmul.mubr.f32.gmra.mxu0 %v12167_v37  ;;  %10511 = vmatprep.subr.mxu0 %v2297_v32 }
  0xdb   : > { %10512 = vmatpush3.msra.mxu0 %v2297_v32  ;;  %10429 = vmatprep.mubr.f32.mxu0 %v12174_v39 }
  0xdc   : > { %10513 = vmatprep.subr.mxu0 %v2296_v34 }
  0xdd   : > { %10514 = vmatpush3.msra.mxu0 %v2296_v34 }
  0xde   : > { %10430 = vmatmul.mubr.f32.gmra.mxu0 %v12185_v41  ;;  %10515 = vmatprep.subr.mxu0 %v2295_v36 }
  0xdf   : > { %10516 = vmatpush3.msra.mxu0 %v2295_v36  ;;  %10432 = vmatprep.mubr.f32.mxu0 %v12192_v43 }
  0xe0   : > { %10517 = vmatprep.subr.mxu0 %v2294_v38 }
  0xe1   : > { %10518 = vmatpush3.msra.mxu0 %v2294_v38 }
  0xe2   : > { %10433 = vmatmul.mubr.f32.gmra.mxu0 %v12203_v45  ;;  %10519 = vmatprep.subr.mxu0 %v2293_v40 }
  0xe3   : > { %10520 = vmatpush3.msra.mxu0 %v2293_v40  ;;  %10523 = vmatprep.mubr.f32.mxu0 %v11982_v0 }
  0xe4   : > { %10521 = vmatprep.subr.mxu0 %v2292_v42 }
  0xe5   : > { %10522 = vmatpush3.msra.mxu0 %v2292_v42 }
  0xe6   : > { %10524 = vmatmul.mubr.f32.vlgmr.msra.gmra.mxu0 %v12077_v17 }
  0xe7   : > { %10526 = vmatprep.mubr.f32.mxu0 %v12084_v19 }
  0xea   : > { %10527 = vmatmul.mubr.f32.gmra.mxu0 %v12095_v21 }
  0xeb   : > { %10529 = vmatprep.mubr.f32.mxu0 %v12102_v23 }
  0xee   : > { %10530 = vmatmul.mubr.f32.gmra.mxu0 %v12113_v25 }
  0xef   : > { %10532 = vmatprep.mubr.f32.mxu0 %v12120_v27 }
  0xf2   : > { %10533 = vmatmul.mubr.f32.gmra.mxu0 %v12131_v29 }
  0xf3   : > { %10535 = vmatprep.mubr.f32.mxu0 %v12138_v31 }
  0xf6   : > { %10536 = vmatmul.mubr.f32.gmra.mxu0 %v12149_v33 }
  0xf7   : > { %10538 = vmatprep.mubr.f32.mxu0 %v12156_v35 }
  0xfa   : > { %10539 = vmatmul.mubr.f32.gmra.mxu0 %v12167_v37 }
  0xfb   : > { %10541 = vmatprep.mubr.f32.mxu0 %v12174_v39 }
  0xfe   : > { %10542 = vmatmul.mubr.f32.gmra.mxu0 %v12185_v41 }
  0xff   : > { %10544 = vmatprep.mubr.f32.mxu0 %v12192_v43 }
 0x102   : > { %10545 = vmatmul.mubr.f32.gmra.mxu0 %v12203_v45 }
 0x126   : > { %v10077_v0 = vpop.f32.mrf.mxu0 }
 0x128   : > { %v1102_v17 = vpop.f32.mrf.mxu0 }
 0x129   : > { %10131 = vmatprep.mubr.f32.mxu1 %v1102_v17 }
 0x12a   : > { %v10080_v19 = vpop.f32.mrf.mxu0  ;;  %10132 = vmatmul.mubr.f32.vlgmr.msra.gmra.mxu1 %v10077_v0 }
 0x12b   : > { %10212 = vmatpush3.msra.mxu1 %v12218_v49 }
 0x12c   : > { %v1112_v21 = vpop.f32.mrf.mxu0  ;;  %10213 = vmatprep.subr.mxu1 %v12229_v51 }
 0x12d   : > { %10134 = vmatprep.mubr.f32.mxu1 %v1112_v21  ;;  %10214 = vmatpush3.msra.mxu1 %v12229_v51 }
 0x12e   : > { %v10083_v23 = vpop.f32.mrf.mxu0  ;;  %10135 = vmatmul.mubr.f32.gmra.mxu1 %v10080_v19  ;;  %10215 = vmatprep.subr.mxu1 %v12240_v54 }
 0x12f   : > { %10216 = vmatpush3.msra.mxu1 %v12240_v54 }
 0x130   : > { %v1122_v25 = vpop.f32.mrf.mxu0  ;;  %10217 = vmatprep.subr.mxu1 %v12251_v57 }
 0x131   : > { %10137 = vmatprep.mubr.f32.mxu1 %v1122_v25  ;;  %10218 = vmatpush3.msra.mxu1 %v12251_v57 }
 0x132   : > { %v10086_v27 = vpop.f32.mrf.mxu0  ;;  %10138 = vmatmul.mubr.f32.gmra.mxu1 %v10083_v23  ;;  %10219 = vmatprep.subr.mxu1 %v12262_v60 }
 0x133   : > { %10220 = vmatpush3.msra.mxu1 %v12262_v60 }
 0x134   : > { %v1132_v29 = vpop.f32.mrf.mxu0  ;;  %10221 = vmatprep.subr.mxu1 %v12273_v63 }
 0x135   : > { %10140 = vmatprep.mubr.f32.mxu1 %v1132_v29  ;;  %10222 = vmatpush3.msra.mxu1 %v12273_v63 }
 0x136   : > { %v10089_v31 = vpop.f32.mrf.mxu0  ;;  %10141 = vmatmul.mubr.f32.gmra.mxu1 %v10086_v27  ;;  %10223 = vmatprep.subr.mxu1 %v12284_v52 }
 0x137   : > { %10224 = vmatpush3.msra.mxu1 %v12284_v52 }
 0x138   : > { %v1142_v33 = vpop.f32.mrf.mxu0  ;;  %10225 = vmatprep.subr.mxu1 %v12295_v56 }
 0x139   : > { %10143 = vmatprep.mubr.f32.mxu1 %v1142_v33  ;;  %10226 = vmatpush3.msra.mxu1 %v12295_v56 }
 0x13a   : > { %v10092_v35 = vpop.f32.mrf.mxu0  ;;  %10144 = vmatmul.mubr.f32.gmra.mxu1 %v10089_v31  ;;  %10227 = vmatprep.subr.mxu1 %v12306_v61 }
 0x13b   : > { %10228 = vmatpush3.msra.mxu1 %v12306_v61 }
 0x13c   : > { %v1152_v37 = vpop.f32.mrf.mxu0  ;;  %10229 = vmatprep.subr.mxu1 %v12317_v50 }
 0x13d   : > { %10146 = vmatprep.mubr.f32.mxu1 %v1152_v37  ;;  %10230 = vmatpush3.msra.mxu1 %v12317_v50 }
 0x13e   : > { %v10095_v39 = vpop.f32.mrf.mxu0  ;;  %10147 = vmatmul.mubr.f32.gmra.mxu1 %v10092_v35  ;;  %10231 = vmatprep.subr.mxu1 %v12328_v53 }
 0x13f   : > { %10232 = vmatpush3.msra.mxu1 %v12328_v53 }
 0x140   : > { %v1162_v41 = vpop.f32.mrf.mxu0  ;;  %10233 = vmatprep.subr.mxu1 %v12339_v55 }
 0x141   : > { %10149 = vmatprep.mubr.f32.mxu1 %v1162_v41  ;;  %10234 = vmatpush3.msra.mxu1 %v12339_v55 }
 0x142   : > { %v10098_v43 = vpop.f32.mrf.mxu0  ;;  %10150 = vmatmul.mubr.f32.gmra.mxu1 %v10095_v39  ;;  %10235 = vmatprep.subr.mxu1 %v12350_v58 }
 0x143   : > { %10236 = vmatpush3.msra.mxu1 %v12350_v58 }
 0x144   : > { %v1172_v44 = vpop.f32.mrf.mxu0  ;;  %10237 = vmatprep.subr.mxu1 %v12361_v59 }
 0x145   : > { %10152 = vmatprep.mubr.f32.mxu1 %v1172_v44  ;;  %10238 = vmatpush3.msra.mxu1 %v12361_v59 }
 0x146   : > { %10153 = vmatmul.mubr.f32.gmra.mxu1 %v10098_v43  ;;  %v10189_v45 = vpop.f32.mrf.mxu0  ;;  %10239 = vmatprep.subr.mxu1 %v12372_v62 }
 0x147   : > { %10240 = vmatpush3.msra.mxu1 %v12372_v62 }
 0x148   : > { %v1392_v46 = vpop.f32.mrf.mxu0  ;;  %10241 = vmatprep.subr.mxu1 %v12383_v48 }
 0x149   : > { %10242 = vmatpush3.msra.mxu1 %v12383_v48  ;;  %10243 = vmatprep.mubr.f32.mxu1 %v1392_v46 }
 0x14a   : > { %v10192_v47 = vpop.f32.mrf.mxu0  ;;  %10244 = vmatmul.mubr.f32.vlgmr.msra.gmra.mxu1 %v10189_v45  ;;  %10323 = vmatprep.subr.mxu1 %v12218_v49 }
 0x14b   : > { %10324 = vmatpush3.msra.mxu1 %v12218_v49 }
 0x14c   : > { %v1402_v2 = vpop.f32.mrf.mxu0  ;;  %10325 = vmatprep.subr.mxu1 %v12229_v51 }
 0x14d   : > { %10246 = vmatprep.mubr.f32.mxu1 %v1402_v2  ;;  %10326 = vmatpush3.msra.mxu1 %v12229_v51 }
 0x14e   : > { %v10195_v3 = vpop.f32.mrf.mxu0  ;;  %10247 = vmatmul.mubr.f32.gmra.mxu1 %v10192_v47  ;;  %10327 = vmatprep.subr.mxu1 %v12240_v54 }
 0x14f   : > { %10328 = vmatpush3.msra.mxu1 %v12240_v54 }
 0x150   : > { %v1412_v4 = vpop.f32.mrf.mxu0  ;;  %10329 = vmatprep.subr.mxu1 %v12251_v57 }
 0x151   : > { %10249 = vmatprep.mubr.f32.mxu1 %v1412_v4  ;;  %10330 = vmatpush3.msra.mxu1 %v12251_v57 }
 0x152   : > { %v10198_v5 = vpop.f32.mrf.mxu0  ;;  %10250 = vmatmul.mubr.f32.gmra.mxu1 %v10195_v3  ;;  %10331 = vmatprep.subr.mxu1 %v12262_v60 }
 0x153   : > { %10332 = vmatpush3.msra.mxu1 %v12262_v60 }
 0x154   : > { %v1422_v6 = vpop.f32.mrf.mxu0  ;;  %10333 = vmatprep.subr.mxu1 %v12273_v63 }
 0x155   : > { %10252 = vmatprep.mubr.f32.mxu1 %v1422_v6  ;;  %10334 = vmatpush3.msra.mxu1 %v12273_v63 }
 0x156   : > { %v10201_v7 = vpop.f32.mrf.mxu0  ;;  %10253 = vmatmul.mubr.f32.gmra.mxu1 %v10198_v5  ;;  %10335 = vmatprep.subr.mxu1 %v12284_v52 }
 0x157   : > { %10336 = vmatpush3.msra.mxu1 %v12284_v52 }
 0x158   : > { %v1432_v8 = vpop.f32.mrf.mxu0  ;;  %10337 = vmatprep.subr.mxu1 %v12295_v56 }
 0x159   : > { %10255 = vmatprep.mubr.f32.mxu1 %v1432_v8  ;;  %10338 = vmatpush3.msra.mxu1 %v12295_v56 }
 0x15a   : > { %v10204_v9 = vpop.f32.mrf.mxu0  ;;  %10256 = vmatmul.mubr.f32.gmra.mxu1 %v10201_v7  ;;  %10339 = vmatprep.subr.mxu1 %v12306_v61 }
 0x15b   : > { %10340 = vmatpush3.msra.mxu1 %v12306_v61 }
 0x15c   : > { %v1442_v10 = vpop.f32.mrf.mxu0  ;;  %10341 = vmatprep.subr.mxu1 %v12317_v50 }
 0x15d   : > { %10258 = vmatprep.mubr.f32.mxu1 %v1442_v10  ;;  %10342 = vmatpush3.msra.mxu1 %v12317_v50 }
 0x15e   : > { %v10207_v11 = vpop.f32.mrf.mxu0  ;;  %10259 = vmatmul.mubr.f32.gmra.mxu1 %v10204_v9  ;;  %10343 = vmatprep.subr.mxu1 %v12328_v53 }
 0x15f   : > { %10344 = vmatpush3.msra.mxu1 %v12328_v53 }
 0x160   : > { %v1452_v12 = vpop.f32.mrf.mxu0  ;;  %10345 = vmatprep.subr.mxu1 %v12339_v55 }
 0x161   : > { %10261 = vmatprep.mubr.f32.mxu1 %v1452_v12  ;;  %10346 = vmatpush3.msra.mxu1 %v12339_v55 }
 0x162   : > { %v10210_v13 = vpop.f32.mrf.mxu0  ;;  %10262 = vmatmul.mubr.f32.gmra.mxu1 %v10207_v11  ;;  %10347 = vmatprep.subr.mxu1 %v12350_v58 }
 0x163   : > { %10348 = vmatpush3.msra.mxu1 %v12350_v58 }
 0x164   : > { %v1462_v14 = vpop.f32.mrf.mxu0  ;;  %10349 = vmatprep.subr.mxu1 %v12361_v59 }
 0x165   : > { %10264 = vmatprep.mubr.f32.mxu1 %v1462_v14  ;;  %10350 = vmatpush3.msra.mxu1 %v12361_v59 }
 0x166   : > { %10265 = vmatmul.mubr.f32.gmra.mxu1 %v10210_v13  ;;  %v10301_v1 = vpop.f32.mrf.mxu0  ;;  %10351 = vmatprep.subr.mxu1 %v12372_v62 }
 0x167   : > { %10352 = vmatpush3.msra.mxu1 %v12372_v62 }
 0x168   : > { %v1714_v15 = vpop.f32.mrf.mxu0  ;;  %10353 = vmatprep.subr.mxu1 %v12383_v48 }
 0x169   : > { %10354 = vmatpush3.msra.mxu1 %v12383_v48  ;;  %10355 = vmatprep.mubr.f32.mxu1 %v1714_v15 }
 0x16a   : > { %v10304_v16 = vpop.f32.mrf.mxu0  ;;  %10356 = vmatmul.mubr.f32.vlgmr.msra.gmra.mxu1 %v10301_v1  ;;  %10435 = vmatprep.subr.mxu1 %v12218_v49 }
 0x16b   : > { %10436 = vmatpush3.msra.mxu1 %v12218_v49 }
 0x16c   : > { %v1724_v18 = vpop.f32.mrf.mxu0  ;;  %10437 = vmatprep.subr.mxu1 %v12229_v51 }
 0x16d   : > { %10358 = vmatprep.mubr.f32.mxu1 %v1724_v18  ;;  %10438 = vmatpush3.msra.mxu1 %v12229_v51 }
 0x16e   : > { %v10307_v20 = vpop.f32.mrf.mxu0  ;;  %10359 = vmatmul.mubr.f32.gmra.mxu1 %v10304_v16  ;;  %10439 = vmatprep.subr.mxu1 %v12240_v54 }
 0x16f   : > { %10440 = vmatpush3.msra.mxu1 %v12240_v54 }
 0x170   : > { %v1734_v22 = vpop.f32.mrf.mxu0  ;;  %10441 = vmatprep.subr.mxu1 %v12251_v57 }
 0x171   : > { %10361 = vmatprep.mubr.f32.mxu1 %v1734_v22  ;;  %10442 = vmatpush3.msra.mxu1 %v12251_v57 }
 0x172   : > { %v10310_v24 = vpop.f32.mrf.mxu0  ;;  %10362 = vmatmul.mubr.f32.gmra.mxu1 %v10307_v20  ;;  %10443 = vmatprep.subr.mxu1 %v12262_v60 }
 0x173   : > { %10444 = vmatpush3.msra.mxu1 %v12262_v60 }
 0x174   : > { %v1744_v26 = vpop.f32.mrf.mxu0  ;;  %10445 = vmatprep.subr.mxu1 %v12273_v63 }
 0x175   : > { %10364 = vmatprep.mubr.f32.mxu1 %v1744_v26  ;;  %10446 = vmatpush3.msra.mxu1 %v12273_v63 }
 0x176   : > { %v10313_v28 = vpop.f32.mrf.mxu0  ;;  %10365 = vmatmul.mubr.f32.gmra.mxu1 %v10310_v24  ;;  %10447 = vmatprep.subr.mxu1 %v12284_v52  ;;  %v13995_v24 = vmov 0.0  }
 0x177   : > { %10448 = vmatpush3.msra.mxu1 %v12284_v52  ;;  %10603 = vmatprep.subr.mxu0 %v13995_v24 }
 0x178   : > { %v1754_v30 = vpop.f32.mrf.mxu0  ;;  %10449 = vmatprep.subr.mxu1 %v12295_v56  ;;  %10635 = vmatprep.mubr.msk.f32.mxu0 %vm11809_vm0, %v13995_v24 }
 0x179   : > { %10367 = vmatprep.mubr.f32.mxu1 %v1754_v30  ;;  %10450 = vmatpush3.msra.mxu1 %v12295_v56 }
 0x17a   : > { %v10316_v32 = vpop.f32.mrf.mxu0  ;;  %10368 = vmatmul.mubr.f32.gmra.mxu1 %v10313_v28  ;;  %10451 = vmatprep.subr.mxu1 %v12306_v61 }
 0x17b   : > { %10452 = vmatpush3.msra.mxu1 %v12306_v61 }
 0x17c   : > { %v1764_v34 = vpop.f32.mrf.mxu0  ;;  %10453 = vmatprep.subr.mxu1 %v12317_v50 }
 0x17d   : > { %10370 = vmatprep.mubr.f32.mxu1 %v1764_v34  ;;  %10454 = vmatpush3.msra.mxu1 %v12317_v50 }
 0x17e   : > { %v10319_v36 = vpop.f32.mrf.mxu0  ;;  %10371 = vmatmul.mubr.f32.gmra.mxu1 %v10316_v32  ;;  %10455 = vmatprep.subr.mxu1 %v12328_v53 }
 0x17f   : > { %10456 = vmatpush3.msra.mxu1 %v12328_v53 }
 0x180   : > { %v1774_v38 = vpop.f32.mrf.mxu0  ;;  %10457 = vmatprep.subr.mxu1 %v12339_v55 }
 0x181   : > { %10373 = vmatprep.mubr.f32.mxu1 %v1774_v38  ;;  %10458 = vmatpush3.msra.mxu1 %v12339_v55 }
 0x182   : > { %v10322_v40 = vpop.f32.mrf.mxu0  ;;  %10374 = vmatmul.mubr.f32.gmra.mxu1 %v10319_v36  ;;  %10459 = vmatprep.subr.mxu1 %v12350_v58 }
 0x183   : > { %10460 = vmatpush3.msra.mxu1 %v12350_v58 }
 0x184   : > { %v1784_v42 = vpop.f32.mrf.mxu0  ;;  %10461 = vmatprep.subr.mxu1 %v12361_v59 }
 0x185   : > { %10376 = vmatprep.mubr.f32.mxu1 %v1784_v42  ;;  %10462 = vmatpush3.msra.mxu1 %v12361_v59 }
 0x186   : > { %10377 = vmatmul.mubr.f32.gmra.mxu1 %v10322_v40  ;;  %v10413_v0 = vpop.f32.mrf.mxu0  ;;  %10463 = vmatprep.subr.mxu1 %v12372_v62 }
 0x187   : > { %10464 = vmatpush3.msra.mxu1 %v12372_v62 }
 0x188   : > { %v2036_v17 = vpop.f32.mrf.mxu0  ;;  %10465 = vmatprep.subr.mxu1 %v12383_v48 }
 0x189   : > { %10466 = vmatpush3.msra.mxu1 %v12383_v48  ;;  %10467 = vmatprep.mubr.f32.mxu1 %v2036_v17 }
 0x18a   : > { %v10416_v19 = vpop.f32.mrf.mxu0  ;;  %10468 = vmatmul.mubr.f32.vlgmr.msra.gmra.mxu1 %v10413_v0  ;;  %10547 = vmatprep.subr.mxu1 %v12218_v49 }
 0x18b   : > { %10548 = vmatpush3.msra.mxu1 %v12218_v49 }
 0x18c   : > { %v2046_v21 = vpop.f32.mrf.mxu0  ;;  %10549 = vmatprep.subr.mxu1 %v12229_v51 }
 0x18d   : > { %10470 = vmatprep.mubr.f32.mxu1 %v2046_v21  ;;  %10550 = vmatpush3.msra.mxu1 %v12229_v51 }
 0x18e   : > { %v10419_v23 = vpop.f32.mrf.mxu0  ;;  %10471 = vmatmul.mubr.f32.gmra.mxu1 %v10416_v19  ;;  %10551 = vmatprep.subr.mxu1 %v12240_v54 }
 0x18f   : > { %10552 = vmatpush3.msra.mxu1 %v12240_v54 }
 0x190   : > { %v2056_v25 = vpop.f32.mrf.mxu0  ;;  %10553 = vmatprep.subr.mxu1 %v12251_v57 }
 0x191   : > { %10473 = vmatprep.mubr.f32.mxu1 %v2056_v25  ;;  %10554 = vmatpush3.msra.mxu1 %v12251_v57 }
 0x192   : > { %v10422_v27 = vpop.f32.mrf.mxu0  ;;  %10474 = vmatmul.mubr.f32.gmra.mxu1 %v10419_v23  ;;  %10555 = vmatprep.subr.mxu1 %v12262_v60 }
 0x193   : > { %10556 = vmatpush3.msra.mxu1 %v12262_v60 }
 0x194   : > { %v2066_v49 = vpop.f32.mrf.mxu0  ;;  %10557 = vmatprep.subr.mxu1 %v12273_v63 }
 0x195   : > { %10476 = vmatprep.mubr.f32.mxu1 %v2066_v49  ;;  %10558 = vmatpush3.msra.mxu1 %v12273_v63 }
 0x196   : > { %v10425_v51 = vpop.f32.mrf.mxu0  ;;  %10477 = vmatmul.mubr.f32.gmra.mxu1 %v10422_v27  ;;  %10559 = vmatprep.subr.mxu1 %v12284_v52 }
 0x197   : > { %10560 = vmatpush3.msra.mxu1 %v12284_v52 }
 0x198   : > { %v2076_v54 = vpop.f32.mrf.mxu0  ;;  %10561 = vmatprep.subr.mxu1 %v12295_v56 }
 0x199   : > { %10479 = vmatprep.mubr.f32.mxu1 %v2076_v54  ;;  %10562 = vmatpush3.msra.mxu1 %v12295_v56 }
 0x19a   : > { %v10428_v57 = vpop.f32.mrf.mxu0  ;;  %10480 = vmatmul.mubr.f32.gmra.mxu1 %v10425_v51  ;;  %10563 = vmatprep.subr.mxu1 %v12306_v61 }
 0x19b   : > { %10564 = vmatpush3.msra.mxu1 %v12306_v61 }
 0x19c   : > { %v2086_v60 = vpop.f32.mrf.mxu0  ;;  %10565 = vmatprep.subr.mxu1 %v12317_v50 }
 0x19d   : > { %10482 = vmatprep.mubr.f32.mxu1 %v2086_v60  ;;  %10566 = vmatpush3.msra.mxu1 %v12317_v50 }
 0x19e   : > { %v10431_v63 = vpop.f32.mrf.mxu0  ;;  %10483 = vmatmul.mubr.f32.gmra.mxu1 %v10428_v57  ;;  %10567 = vmatprep.subr.mxu1 %v12328_v53 }
 0x19f   : > { %10568 = vmatpush3.msra.mxu1 %v12328_v53 }
 0x1a0   : > { %v2096_v52 = vpop.f32.mrf.mxu0  ;;  %10569 = vmatprep.subr.mxu1 %v12339_v55 }
 0x1a1   : > { %10485 = vmatprep.mubr.f32.mxu1 %v2096_v52  ;;  %10570 = vmatpush3.msra.mxu1 %v12339_v55 }
 0x1a2   : > { %v10434_v56 = vpop.f32.mrf.mxu0  ;;  %10486 = vmatmul.mubr.f32.gmra.mxu1 %v10431_v63  ;;  %10571 = vmatprep.subr.mxu1 %v12350_v58 }
 0x1a3   : > { %10572 = vmatpush3.msra.mxu1 %v12350_v58 }
 0x1a4   : > { %v2106_v61 = vpop.f32.mrf.mxu0  ;;  %10573 = vmatprep.subr.mxu1 %v12361_v59 }
 0x1a5   : > { %10488 = vmatprep.mubr.f32.mxu1 %v2106_v61  ;;  %10574 = vmatpush3.msra.mxu1 %v12361_v59 }
 0x1a6   : > { %10489 = vmatmul.mubr.f32.gmra.mxu1 %v10434_v56  ;;  %v10525_v50 = vpop.f32.mrf.mxu0  ;;  %10575 = vmatprep.subr.mxu1 %v12372_v62 }
 0x1a7   : > { %10576 = vmatpush3.msra.mxu1 %v12372_v62 }
 0x1a8   : > { %v2374_v53 = vpop.f32.mrf.mxu0  ;;  %10577 = vmatprep.subr.mxu1 %v12383_v48 }
 0x1a9   : > { %10578 = vmatpush3.msra.mxu1 %v12383_v48  ;;  %10579 = vmatprep.mubr.f32.mxu1 %v2374_v53 }
 0x1aa   : > { %v10528_v55 = vpop.f32.mrf.mxu0  ;;  %10580 = vmatmul.mubr.f32.vlgmr.msra.gmra.mxu1 %v10525_v50  ;;  %10638 = vmatprep.subr.mxu1 %v13995_v24 }
 0x1ac   : > { %v2384_v58 = vpop.f32.mrf.mxu0 }
 0x1ad   : > { %10582 = vmatprep.mubr.f32.mxu1 %v2384_v58 }
 0x1ae   : > { %v10531_v29 = vpop.f32.mrf.mxu0  ;;  %10583 = vmatmul.mubr.f32.gmra.mxu1 %v10528_v55 }
 0x1b0   : > { %v2394_v31 = vpop.f32.mrf.mxu0 }
 0x1b1   : > { %10585 = vmatprep.mubr.f32.mxu1 %v2394_v31 }
 0x1b2   : > { %v10534_v59 = vpop.f32.mrf.mxu0  ;;  %10586 = vmatmul.mubr.f32.gmra.mxu1 %v10531_v29 }
 0x1b4   : > { %v2404_v33 = vpop.f32.mrf.mxu0 }
 0x1b5   : > { %10588 = vmatprep.mubr.f32.mxu1 %v2404_v33 }
 0x1b6   : > { %v10537_v35 = vpop.f32.mrf.mxu0  ;;  %10589 = vmatmul.mubr.f32.gmra.mxu1 %v10534_v59 }
 0x1b8   : > { %v2414_v62 = vpop.f32.mrf.mxu0 }
 0x1b9   : > { %10591 = vmatprep.mubr.f32.mxu1 %v2414_v62 }
 0x1ba   : > { %v10540_v37 = vpop.f32.mrf.mxu0  ;;  %10592 = vmatmul.mubr.f32.gmra.mxu1 %v10537_v35 }
 0x1bc   : > { %v2424_v48 = vpop.f32.mrf.mxu0 }
 0x1bd   : > { %10594 = vmatprep.mubr.f32.mxu1 %v2424_v48 }
 0x1be   : > { %v10543_v39 = vpop.f32.mrf.mxu0  ;;  %10595 = vmatmul.mubr.f32.gmra.mxu1 %v10540_v37 }
 0x1c0   : > { %v2434_v41 = vpop.f32.mrf.mxu0 }
 0x1c1   : > { %10597 = vmatprep.mubr.f32.mxu1 %v2434_v41 }
 0x1c2   : > { %v10546_v43 = vpop.f32.mrf.mxu0  ;;  %10598 = vmatmul.mubr.f32.gmra.mxu1 %v10543_v39 }
 0x1c4   : > { %v2444_v44 = vpop.f32.mrf.mxu0 }
 0x1c5   : > { %10600 = vmatprep.mubr.f32.mxu1 %v2444_v44 }
 0x1c6   : > { %10601 = vmatmul.mubr.f32.gmra.mxu1 %v10546_v43 }
 0x1c7   : > { %10670 = vmatprep.mubr.msk.f32.mxu1 %vm11809_vm0, %v13995_v24 }
 0x1ea   : > { %v12586_v45 = vpop.f32.mrf.mxu1 }
 0x1eb   : > { %v2261_v59 = vmul.f32 %v12586_v45, %v12586_v45 }
 0x1ec   : > { %v12588_v46 = vpop.f32.mrf.mxu1 }
 0x1ed   : > { %14033 = vst [vmem:[#allocation15_spill] sm:$0xff] %v12588_v46 }
 0x1ee   : > { %v12590_v47 = vpop.f32.mrf.mxu1 }
 0x1ef   : > { %v2263_v52 = vmul.f32 %v12590_v47, %v12590_v47 }
 0x1f0   : > { %v12592_v2 = vpop.f32.mrf.mxu1 }
 0x1f1   : > { %14034 = vst [vmem:[#allocation16_spill] sm:$0xff] %v12592_v2 }
 0x1f2   : > { %v12594_v3 = vpop.f32.mrf.mxu1 }
 0x1f4   : > { %v12596_v4 = vpop.f32.mrf.mxu1 }
 0x1f5   : > { %14035 = vst [vmem:[#allocation17_spill] sm:$0xff] %v12596_v4 }
 0x1f6   : > { %v12598_v5 = vpop.f32.mrf.mxu1 }
 0x1f8   : > { %v12600_v6 = vpop.f32.mrf.mxu1 }
 0x1fa   : > { %v12602_v7 = vpop.f32.mrf.mxu1 }
 0x1fc   : > { %v12604_v8 = vpop.f32.mrf.mxu1 }
 0x1fe   : > { %v12606_v9 = vpop.f32.mrf.mxu1 }
 0x200   : > { %v12608_v10 = vpop.f32.mrf.mxu1 }
 0x202   : > { %v12610_v11 = vpop.f32.mrf.mxu1 }
 0x204   : > { %v12612_v12 = vpop.f32.mrf.mxu1 }
 0x206   : > { %v12614_v13 = vpop.f32.mrf.mxu1 }
 0x208   : > { %v12616_v14 = vpop.f32.mrf.mxu1 }
 0x20a   : > { %v12618_v1 = vpop.f32.mrf.mxu1 }
 0x20b   : > { %v12622_v15 = vmul.f32 %v12618_v1, %v12586_v45  ;;  %v2267_v45 = vmul.f32 %v12598_v5, %v12598_v5 }
 0x20c   : > { %v12624_v16 = vpop.f32.mrf.mxu1 }
 0x20d   : > { %14036 = vst [vmem:[#allocation18_spill] sm:$0xff] %v12624_v16 }
 0x20e   : > { %v12626_v18 = vpop.f32.mrf.mxu1 }
 0x20f   : > { %v12630_v20 = vmul.f32 %v12626_v18, %v12590_v47 }
 0x210   : > { %v12632_v22 = vpop.f32.mrf.mxu1 }
 0x211   : > { %14037 = vst [vmem:[#allocation19_spill] sm:$0xff] %v12632_v22 }
 0x212   : > { %v12636_v26 = vpop.f32.mrf.mxu1 }
 0x213   : > { %v12640_v28 = vmul.f32 %v12636_v26, %v12594_v3 }
 0x214   : > { %v12642_v30 = vpop.f32.mrf.mxu1 }
 0x216   : > { %v12644_v32 = vpop.f32.mrf.mxu1 }
 0x217   : > { %v12648_v34 = vmul.f32 %v12644_v32, %v12598_v5  ;;  %v2599_v5 = vmul.f32 %v12618_v1, %v12618_v1 }
 0x218   : > { %v12650_v36 = vpop.f32.mrf.mxu1 }
 0x21a   : > { %v12652_v38 = vpop.f32.mrf.mxu1 }
 0x21b   : > { %v12656_v40 = vmul.f32 %v12652_v38, %v12602_v7 }
 0x21c   : > { %v12658_v42 = vpop.f32.mrf.mxu1 }
 0x21e   : > { %v12660_v0 = vpop.f32.mrf.mxu1 }
 0x21f   : > { %v12664_v17 = vmul.f32 %v12660_v0, %v12606_v9 }
 0x220   : > { %v12666_v19 = vpop.f32.mrf.mxu1 }
 0x222   : > { %v12668_v21 = vpop.f32.mrf.mxu1 }
 0x223   : > { %v12672_v23 = vmul.f32 %v12668_v21, %v12610_v11 }
 0x224   : > { %v12674_v25 = vpop.f32.mrf.mxu1 }
 0x226   : > { %v12676_v27 = vpop.f32.mrf.mxu1 }
 0x227   : > { %v12680_v49 = vmul.f32 %v12676_v27, %v12614_v13 }
 0x228   : > { %v12682_v51 = vpop.f32.mrf.mxu1 }
 0x229   : > { %14038 = vst [vmem:[#allocation20_spill] sm:$0xff] %v12680_v49  ;;  %v2603_v49 = vmul.f32 %v12636_v26, %v12636_v26  ;;  %v2269_v26 = vmul.f32 %v12602_v7, %v12602_v7  ;;  %v2609_v7 = vmul.f32 %v12660_v0, %v12660_v0  ;;  %v2273_v0 = vmul.f32 %v12610_v11, %v12610_v11 }
 0x22a   : > { %v12684_v54 = vpop.f32.mrf.mxu1  ;;  %v2610_v11 = vmul.f32 %v12674_v25, %v12674_v25 }
 0x22c   : > { %v12688_v60 = vpop.f32.mrf.mxu1 }
 0x22d   : > { %14039 = vst [vmem:[#allocation21_spill] sm:$0xff] %v12688_v60 }
 0x22e   : > { %v12690_v63 = vpop.f32.mrf.mxu1 }
 0x230   : > { %v12694_v56 = vpop.f32.mrf.mxu1 }
 0x231   : > { %14040 = vst [vmem:[#allocation22_spill] sm:$0xff] %v12694_v56  ;;  %v2265_v56 = vmul.f32 %v12594_v3, %v12594_v3 }
 0x232   : > { %v12696_v61 = vpop.f32.mrf.mxu1 }
 0x234   : > { %v12700_v53 = vpop.f32.mrf.mxu1 }
 0x235   : > { %14041 = vst [vmem:[#allocation23_spill] sm:$0xff] %v12700_v53 }
 0x236   : > { %v12702_v55 = vpop.f32.mrf.mxu1 }
 0x238   : > { %v12706_v29 = vpop.f32.mrf.mxu1 }
 0x239   : > { %14042 = vst [vmem:[#allocation24_spill] sm:$0xff] %v12706_v29 }
 0x23a   : > { %v12708_v31 = vpop.f32.mrf.mxu1 }
 0x23c   : > { %v12712_v33 = vpop.f32.mrf.mxu1 }
 0x23d   : > { %14043 = vst [vmem:[#allocation25_spill] sm:$0xff] %v12712_v33 }
 0x23e   : > { %v12718_v35 = vpop.f32.mrf.mxu1 }
 0x240   : > { %v12722_v37 = vpop.f32.mrf.mxu1 }
 0x241   : > { %14044 = vst [vmem:[#allocation26_spill] sm:$0xff] %v12722_v37  ;;  %v2601_v37 = vmul.f32 %v12626_v18, %v12626_v18 }
 0x242   : > { %v12724_v48 = vpop.f32.mrf.mxu1 }
 0x244   : > { %v12728_v41 = vpop.f32.mrf.mxu1 }
 0x245   : > { %14045 = vst [vmem:[#allocation27_spill] sm:$0xff] %v12728_v41 }
 0x246   : > { %v12730_v43 = vpop.f32.mrf.mxu1 }
 0x247   : > { %14046 = vst [vmem:[#allocation28_spill] sm:$0xff] %v12730_v43 }
 0x248   : > { %v12734_v24 = vpop.f32.mrf.mxu1 }
 0x24a   : > { %v10469_v62 = vpop.f32.mrf.mxu1 }
 0x24b   : > { %v2277_v58 = vsub.f32 %v10469_v62, %v2261_v59 }
 0x24c   : > { %v12738_v50 = vpop.f32.mrf.mxu1 }
 0x24d   : > { %14047 = vst [vmem:[#allocation29_spill] sm:$0xff] %v12738_v50 }
 0x24e   : > { %v10472_v39 = vpop.f32.mrf.mxu1 }
 0x24f   : > { %v2279_v57 = vsub.f32 %v10472_v39, %v2263_v52 }
 0x250   : > { %v12742_v60 = vpop.f32.mrf.mxu1 }
 0x251   : > { %14048 = vst [vmem:[#allocation30_spill] sm:$0xff] %v12742_v60 }
 0x252   : > { %v10475_v44 = vpop.f32.mrf.mxu1 }
 0x253   : > { %v2281_v53 = vsub.f32 %v10475_v44, %v2265_v56 }
 0x254   : > { %v12746_v29 = vpop.f32.mrf.mxu1 }
 0x255   : > { %14049 = vst [vmem:[#allocation31_spill] sm:$0xff] %v12746_v29 }
 0x256   : > { %v10478_v59 = vpop.f32.mrf.mxu1 }
 0x257   : > { %v2283_v62 = vsub.f32 %v10478_v59, %v2267_v45 }
 0x258   : > { %v12750_v50 = vpop.f32.mrf.mxu1 }
 0x259   : > { %14050 = vst [vmem:[#allocation32_spill] sm:$0xff] %v12750_v50 }
 0x25a   : > { %v10481_v33 = vpop.f32.mrf.mxu1 }
 0x25c   : > { %v12752_v47 = vpop.f32.mrf.mxu1 }
 0x25e   : > { %v10484_v52 = vpop.f32.mrf.mxu1 }
 0x260   : > { %v12754_v39 = vpop.f32.mrf.mxu1 }
 0x262   : > { %v12756_v46 = vpop.f32.mrf.mxu1 }
 0x264   : > { %v12758_v3 = vpop.f32.mrf.mxu1 }
 0x266   : > { %v12760_v56 = vpop.f32.mrf.mxu1 }
 0x268   : > { %v12762_v44 = vpop.f32.mrf.mxu1 }
 0x26a   : > { %v10581_v45 = vpop.f32.mrf.mxu1 }
 0x26b   : > { %v2615_v59 = vsub.f32 %v10581_v45, %v2599_v5  ;;  %v2605_v45 = vmul.f32 %v12644_v32, %v12644_v32 }
 0x26c   : > { %v12766_v60 = vpop.f32.mrf.mxu1 }
 0x26d   : > { %v2631_v16 = vadd.f32 %v2615_v59, %v2277_v58  ;;  %v2271_v59 = vmul.f32 %v12606_v9, %v12606_v9 }
 0x26e   : > { %v10584_v2 = vpop.f32.mrf.mxu1 }
 0x26f   : > { %v2679_v29 = vadd.f32 0.0009, %v2631_v16  ;;  %v2617_v41 = vsub.f32 %v10584_v2, %v2601_v37 }
 0x270   : > { %v12770_v22 = vpop.f32.mrf.mxu1 }
 0x271   : > { %11674 = vrcp.f32 %v2679_v29  ;;  %v2633_v43 = vadd.f32 %v2617_v41, %v2279_v57  ;;  %v2607_v57 = vmul.f32 %v12652_v38, %v12652_v38  ;;  %v2285_v41 = vsub.f32 %v10481_v33, %v2269_v26 }
 0x272   : > { %v10587_v4 = vpop.f32.mrf.mxu1  ;;  %v2287_v33 = vsub.f32 %v10484_v52, %v2271_v59  ;;  %v2611_v26 = vmul.f32 %v12668_v21, %v12668_v21  ;;  %v2272_v52 = vmul.f32 %v12612_v12, %v12612_v12  ;;  %v2289_v21 = vsub.f32 %v12756_v46, %v2273_v0 }
 0x273   : > { %v2681_v1 = vadd.f32 0.0009, %v2633_v43  ;;  %v2619_v50 = vsub.f32 %v10587_v4, %v2603_v49  ;;  %v14051_v49 = vsub.f32 %v12684_v54, %v12622_v15  ;;  %v14052_v15 = vsub.f32 %v12690_v63, %v12630_v20 }
 0x274   : > { %v12774_v5 = vpop.f32.mrf.mxu1  ;;  %v2275_v59 = vmul.f32 %v12614_v13, %v12614_v13  ;;  %v2612_v13 = vmul.f32 %v12682_v51, %v12682_v51 }
 0x275   : > { %11676 = vrcp.f32 %v2681_v1  ;;  %v2635_v18 = vadd.f32 %v2619_v50, %v2281_v53  ;;  %v2647_v29 = vmul.f32 2.0, %v14051_v49  ;;  %v2649_v54 = vmul.f32 2.0, %v14052_v15 }
 0x276   : > { %v10590_v58 = vpop.f32.mrf.mxu1 }
 0x277   : > { %v2683_v16 = vadd.f32 0.0009, %v2635_v18  ;;  %v2621_v2 = vsub.f32 %v10590_v58, %v2605_v45 }
 0x278   : > { %v12778_v37 = vpop.f32.mrf.mxu1 }
 0x279   : > { %11678 = vrcp.f32 %v2683_v16  ;;  %v2637_v4 = vadd.f32 %v2621_v2, %v2283_v62  ;;  %v2663_v62 = vadd.f32 0.0009, %v2647_v29  ;;  %v12798_v16 = vmul.f32 %v12608_v10, %v12608_v10 }
 0x27a   : > { %v10593_v32 = vpop.f32.mrf.mxu1  ;;  %v14054_v29 = vsub.f32 %v12702_v55, %v12648_v34  ;;  %v2613_v34 = vmul.f32 %v12676_v27, %v12676_v27 }
 0x27b   : > { %v2685_v50 = vadd.f32 0.0009, %v2637_v4  ;;  %v2623_v53 = vsub.f32 %v10593_v32, %v2607_v57  ;;  %v2665_v57 = vadd.f32 0.0009, %v2649_v54  ;;  %v14053_v4 = vsub.f32 %v12696_v61, %v12640_v28 }
 0x27c   : > { %v12787_v43 = vpop.f32.mrf.mxu1  ;;  %v2653_v32 = vmul.f32 2.0, %v14054_v29 }
 0x27d   : > { %11680 = vrcp.f32 %v2685_v50  ;;  %v2639_v38 = vadd.f32 %v2623_v53, %v2285_v41  ;;  %v2651_v49 = vmul.f32 2.0, %v14053_v4  ;;  %v1035_v4 = vld [vmem:[%s11843_s25 + $0x78] sm:$0xf] }
 0x27e   : > { %v11675_v1 = vpop.eup %11674  ;;  %v10596_v45 = vpop.f32.mrf.mxu1  ;;  %v2669_v15 = vadd.f32 0.0009, %v2653_v32  ;;  %10639 = vmatpush3.msk.msra.mxu1 %vm2730_vm1, %v1035_v4  ;;  %v14062_v4 = vld [vmem:[#allocation20_spill] sm:$0xff] }
 0x27f   : > { %v2687_v18 = vadd.f32 0.0009, %v2639_v38  ;;  %v2625_v58 = vsub.f32 %v10596_v45, %v2609_v7  ;;  %v12802_v2 = vmul.f32 %v11675_v1, %v2663_v62  ;;  %v2274_v7 = vmul.f32 %v12616_v14, %v12616_v14 }
 0x280   : > { %v12800_v9 = vpop.f32.mrf.mxu1  ;;  %v2608_v1 = vmul.f32 %v12666_v19, %v12666_v19  ;;  %v2667_v62 = vadd.f32 0.0009, %v2651_v49  ;;  %v2288_v45 = vsub.f32 %v12758_v3, %v2272_v52  ;;  %v1034_v49 = vld [vmem:[%s11843_s25 + $0x70] sm:$0xff] }
 0x281   : > { %11682 = vrcp.f32 %v2687_v18  ;;  %v2641_v20 = vadd.f32 %v2625_v58, %v2287_v33  ;;  %v2291_v33 = vsub.f32 %v12760_v56, %v2275_v59  ;;  %v14055_v58 = vsub.f32 %v12708_v31, %v12656_v40 }
 0x282   : > { %v11677_v63 = vpop.eup %11676  ;;  %v10599_v41 = vpop.f32.mrf.mxu1  ;;  %v2606_v40 = vmul.f32 %v12658_v42, %v12658_v42  ;;  %v14056_v31 = vmov 0.0  }
 0x283   : > { %v2689_v50 = vadd.f32 0.0009, %v2641_v20  ;;  %v2627_v53 = vsub.f32 %v10599_v41, %v2611_v26  ;;  %v12823_v61 = vmul.f32 %v11677_v63, %v2665_v57  ;;  %v2655_v0 = vmul.f32 2.0, %v14055_v58  ;;  %10640 = vmatprep.subr.mxu1 %v14056_v31 }
 0x284   : > { %v2579_v28 = vpop.f32.mrf.mxu1  ;;  %v2290_v26 = vsub.f32 %v12762_v44, %v2274_v7  ;;  %v2624_v20 = vsub.f32 %v12800_v9, %v2608_v1  ;;  %v1033_v44 = vld [vmem:[%s11843_s25 + $0x68] sm:$0xff]  ;;  %v2286_v9 = vsub.f32 %v12754_v39, %v12798_v16  ;;  %10641 = vmatpush3.msra.mxu1 %v1034_v49  ;;  %v2622_v7 = vsub.f32 %v12787_v43, %v2606_v40 }
 0x285   : > { %11684 = vrcp.f32 %v2689_v50  ;;  %v2643_v55 = vadd.f32 %v2627_v53, %v2289_v21  ;;  %v2626_v38 = vsub.f32 %v2579_v28, %v2610_v11  ;;  %v2268_v21 = vmul.f32 %v12604_v8, %v12604_v8  ;;  %10642 = vmatprep.subr.mxu1 %v14056_v31  ;;  %v1032_v28 = vld [vmem:[%s11843_s25 + $0x60] sm:$0xff] }
 0x286   : > { %v11679_v46 = vpop.eup %11678  ;;  %v10602_v54 = vpop.f32.mrf.mxu1  ;;  %v2671_v50 = vadd.f32 0.0009, %v2655_v0  ;;  %v14057_v53 = vsub.f32 %v12718_v35, %v12664_v17  ;;  %v2640_v39 = vadd.f32 %v2624_v20, %v2286_v9  ;;  %10643 = vmatpush3.msra.mxu1 %v1033_v44  ;;  %v2266_v43 = vmul.f32 %v12600_v6, %v12600_v6  ;;  %v14064_v44 = vld [vmem:[#allocation19_spill] sm:$0xff] }
 0x287   : > { %v2691_v27 = vadd.f32 0.0009, %v2643_v55  ;;  %v2629_v18 = vsub.f32 %v10602_v54, %v2613_v34  ;;  %v12838_v57 = vmul.f32 %v11679_v46, %v2667_v62  ;;  %v2642_v3 = vadd.f32 %v2626_v38, %v2288_v45  ;;  %10644 = vmatprep.subr.mxu1 %v14056_v31  ;;  %v1031_v38 = vld [vmem:[%s11843_s25 + $0x58] sm:$0xff]  ;;  %v1030_v54 = vld [vmem:[%s11843_s25 + $0x50] sm:$0xff] }
 0x288   : > { %v2589_v63 = vpop.f32.mrf.mxu1  ;;  %v2657_v59 = vmul.f32 2.0, %v14057_v53  ;;  %v2604_v46 = vmul.f32 %v12650_v36, %v12650_v36  ;;  %v2284_v17 = vsub.f32 %v12752_v47, %v2268_v21  ;;  %10645 = vmatpush3.msra.mxu1 %v1032_v28  ;;  %v1630_v1 = vmul.f32 %v12682_v51, %v12616_v14  ;;  %v14059_v51 = vld [vmem:[#allocation32_spill] sm:$0xff]  ;;  %v14066_v21 = vld [vmem:[#allocation31_spill] sm:$0xff] }
 0x289   : > { %11686 = vrcp.f32 %v2691_v27  ;;  %v2645_v52 = vadd.f32 %v2629_v18, %v2291_v33  ;;  %v2628_v56 = vsub.f32 %v2589_v63, %v2612_v13  ;;  %v2690_v16 = vadd.f32 0.0009, %v2642_v3  ;;  %10646 = vmatprep.subr.mxu1 %v14056_v31  ;;  %v1029_v18 = vld [vmem:[%s11843_s25 + $0x48] sm:$0xff] }
 0x28a   : > { %v11681_v29 = vpop.eup %11680  ;;  %v2673_v13 = vadd.f32 0.0009, %v2657_v59  ;;  %v14058_v62 = vsub.f32 %v12724_v48, %v12672_v23  ;;  %v2620_v47 = vsub.f32 %v12778_v37, %v2604_v46  ;;  %v2638_v45 = vadd.f32 %v2622_v7, %v2284_v17  ;;  %10647 = vmatpush3.msra.mxu1 %v1031_v38  ;;  %v14060_v37 = vld [vmem:[#allocation17_spill] sm:$0xff]  ;;  %v14061_v63 = vld [vmem:[#allocation28_spill] sm:$0xff]  ;;  %v14068_v46 = vld [vmem:[#allocation18_spill] sm:$0xff] }
 0x28b   : > { %v2693_v32 = vadd.f32 0.0009, %v2645_v52  ;;  %v2644_v41 = vadd.f32 %v2628_v56, %v2290_v26  ;;  %v12849_v11 = vmul.f32 %v11681_v29, %v2669_v15  ;;  %v2688_v33 = vadd.f32 0.0009, %v2640_v39  ;;  %10648 = vmatprep.subr.mxu1 %v14056_v31  ;;  %v1026_v39 = vld [vmem:[%s11843_s25 + $0x30] sm:$0xff] }
 0x28c   : > { %v2659_v15 = vmul.f32 2.0, %v14058_v62  ;;  %v2602_v14 = vmul.f32 %v12642_v30, %v12642_v30  ;;  %v1952_v23 = vsub.f32 %v12734_v24, %v1630_v1  ;;  %v2282_v48 = vsub.f32 %v14059_v51, %v2266_v43  ;;  %10649 = vmatpush3.msra.mxu1 %v1030_v54  ;;  %v1028_v24 = vld [vmem:[%s11843_s25 + $0x40] sm:$0xff]  ;;  %v14069_v43 = vld [vmem:[#allocation26_spill] sm:$0xff] }
 0x28d   : > { %11688 = vrcp.f32 %v2693_v32  ;;  %v2692_v34 = vadd.f32 0.0009, %v2644_v41  ;;  %v2264_v0 = vmul.f32 %v14060_v37, %v14060_v37  ;;  %v1628_v26 = vmul.f32 %v12674_v25, %v12612_v12  ;;  %10650 = vmatprep.subr.mxu1 %v14056_v31  ;;  %v1027_v12 = vld [vmem:[%s11843_s25 + $0x38] sm:$0xff]  ;;  %v14065_v25 = vld [vmem:[#allocation27_spill] sm:$0xff] }
 0x28e   : > { %v11683_v55 = vpop.eup %11682  ;;  %v2675_v20 = vadd.f32 0.0009, %v2659_v15  ;;  %v14063_v49 = vsub.f32 %v14061_v63, %v14062_v4  ;;  %v2618_v52 = vsub.f32 %v12774_v5, %v2602_v14  ;;  %v2636_v56 = vadd.f32 %v2620_v47, %v2282_v48  ;;  %10651 = vmatpush3.msra.mxu1 %v1029_v18  ;;  %v14067_v5 = vld [vmem:[#allocation16_spill] sm:$0xff]  ;;  %v14070_v62 = vld [vmem:[#allocation30_spill] sm:$0xff]  ;;  %v14071_v47 = vld [vmem:[#allocation15_spill] sm:$0xff] }
 0x28f   : > { %11690 = vrcp.f32 %v2692_v34  ;;  %v12864_v35 = vmul.f32 %v11683_v55, %v2671_v50  ;;  %v2686_v29 = vadd.f32 0.0009, %v2638_v45  ;;  %v2600_v9 = vmul.f32 %v14064_v44, %v14064_v44  ;;  %10652 = vmatprep.subr.mxu1 %v14056_v31  ;;  %v1024_v18 = vld [vmem:[%s11843_s25 + $0x20] sm:$0xff] }
 0x290   : > { %11692 = vrcp.f32 %v2690_v16  ;;  %v2661_v3 = vmul.f32 2.0, %v14063_v49  ;;  %v1950_v32 = vsub.f32 %v14065_v25, %v1628_v26  ;;  %v2660_v41 = vmul.f32 2.0, %v1952_v23  ;;  %10653 = vmatpush3.msra.mxu1 %v1028_v24  ;;  %v1022_v49 = vld [vmem:[%s11843_s25 + $0x10] sm:$0xff] }
 0x291   : > { %11694 = vrcp.f32 %v2688_v33  ;;  %v2280_v50 = vsub.f32 %v14066_v21, %v2264_v0  ;;  %v2262_v59 = vmul.f32 %v14067_v5, %v14067_v5  ;;  %v1626_v7 = vmul.f32 %v12666_v19, %v12608_v10  ;;  %10654 = vmatprep.subr.mxu1 %v14056_v31  ;;  %v1025_v10 = vld [vmem:[%s11843_s25 + $0x28] sm:$0xff]  ;;  %v1023_v0 = vld [vmem:[%s11843_s25 + $0x18] sm:$0xff]  ;;  %v14075_v21 = vld [vmem:[#allocation23_spill] sm:$0xff] }
 0x292   : > { %v11685_v27 = vpop.eup %11684  ;;  %v2677_v28 = vadd.f32 0.0009, %v2661_v3  ;;  %v2616_v16 = vsub.f32 %v12770_v22, %v2600_v9  ;;  %v2684_v55 = vadd.f32 0.0009, %v2636_v56  ;;  %11696 = vrcp.f32 %v2686_v29  ;;  %10655 = vmatpush3.msra.mxu1 %v1027_v12  ;;  %v1021_v29 = vld [vmem:[%s11843_s25 + $0x8] sm:$0xff] }
 0x293   : > { %v12882_v58 = vmul.f32 %v11685_v27, %v2673_v13  ;;  %v2634_v34 = vadd.f32 %v2618_v52, %v2280_v50  ;;  %v2598_v17 = vmul.f32 %v14068_v46, %v14068_v46  ;;  %v1948_v1 = vsub.f32 %v14069_v43, %v1626_v7  ;;  %10656 = vmatprep.subr.mxu1 %v14056_v31  ;;  %v14076_v7 = vld [vmem:[#allocation22_spill] sm:$0xff] }
 0x294   : > { %v2658_v19 = vmul.f32 2.0, %v1950_v32  ;;  %v2676_v13 = vadd.f32 0.0009, %v2660_v41  ;;  %v2278_v15 = vsub.f32 %v14070_v62, %v2262_v59  ;;  %10657 = vmatpush3.msra.mxu1 %v1026_v39  ;;  %v2260_v45 = vmul.f32 %v14071_v47, %v14071_v47  ;;  %v1019_v62 = vld [vmem:[%s11838_s21] sm:$0x3] }
 0x295   : > { %v1624_v33 = vmul.f32 %v12658_v42, %v12604_v8  ;;  %v2614_v27 = vsub.f32 %v12766_v60, %v2598_v17  ;;  %10658 = vmatprep.subr.mxu1 %v14056_v31  ;;  %v2682_v23 = vadd.f32 0.0009, %v2634_v34  ;;  %11698 = vrcp.f32 %v2684_v55  ;;  %v14072_v8 = vld [vmem:[#allocation25_spill] sm:$0xff] }
 0x296   : > { %v11687_v40 = vpop.eup %11686  ;;  %v2632_v14 = vadd.f32 %v2616_v16, %v2278_v15  ;;  %10659 = vmatpush3.msra.mxu1 %v1025_v10  ;;  %v2656_v60 = vmul.f32 2.0, %v1948_v1  ;;  %v2674_v26 = vadd.f32 0.0009, %v2658_v19  ;;  %v1622_v4 = vmul.f32 %v12650_v36, %v12600_v6  ;;  %v12966_v15 = vld [vmem:[%s11848_s29] sm:$0xff] }
 0x297   : > { %v2721_v53 = vmul.f32 %v11687_v40, %v2675_v20  ;;  %10660 = vmatprep.subr.mxu1 %v14056_v31  ;;  %v1946_v42 = vsub.f32 %v14072_v8, %v1624_v33  ;;  %v14073_v20 = vld [vmem:[#allocation29_spill] sm:$0xff]  ;;  %11700 = vrcp.f32 %v2682_v23  ;;  %v14074_v40 = vld [vmem:[#allocation24_spill] sm:$0xff]  ;;  %v1620_v12 = vmul.f32 %v12642_v30, %v14060_v37 }
 0x298   : > { %v2276_v63 = vsub.f32 %v14073_v20, %v2260_v45  ;;  %10661 = vmatpush3.msra.mxu1 %v1024_v18  ;;  %v2680_v24 = vadd.f32 0.0009, %v2632_v14  ;;  %v1944_v9 = vsub.f32 %v14074_v40, %v1622_v4  ;;  %v2672_v36 = vadd.f32 0.0009, %v2656_v60  ;;  %v11743_v45 = vld [vmem:[%s11991_s22 + $0x50] sm:$0xff]  ;;  %v11744_v33 = vld [vmem:[%s11991_s22 + $0x48] sm:$0xff] }
 0x299   : > { %10662 = vmatprep.subr.mxu1 %v14056_v31  ;;  %v2654_v6 = vmul.f32 2.0, %v1946_v42  ;;  %v1942_v50 = vsub.f32 %v14075_v21, %v1620_v12  ;;  %v1618_v30 = vmul.f32 %v14064_v44, %v14067_v5  ;;  %v1616_v34 = vmul.f32 %v14068_v46, %v14071_v47  ;;  %v11742_v47 = vld [vmem:[%s11991_s22 + $0x58] sm:$0xff]  ;;  %v11747_v14 = vld [vmem:[%s11991_s22 + $0x30] sm:$0xff]  ;;  %v11748_v23 = vld [vmem:[%s11991_s22 + $0x28] sm:$0xff] }
 0x29a   : > { %v11689_v38 = vpop.eup %11688  ;;  %v2630_v3 = vadd.f32 %v2614_v27, %v2276_v63  ;;  %10663 = vmatpush3.msra.mxu1 %v1023_v0  ;;  %11702 = vrcp.f32 %v2680_v24  ;;  %v11745_v27 = vld [vmem:[%s11991_s22 + $0x40] sm:$0xff]  ;;  %v11746_v18 = vld [vmem:[%s11991_s22 + $0x38] sm:$0xff]  ;;  %v11751_v0 = vld [vmem:[%s11991_s22 + $0x10] sm:$0xff] }
 0x29b   : > { %v2725_v54 = vmul.f32 %v11689_v38, %v2677_v28  ;;  %10664 = vmatprep.subr.mxu1 %v14056_v31  ;;  %v2670_v59 = vadd.f32 0.0009, %v2654_v6  ;;  %v1940_v28 = vsub.f32 %v14076_v7, %v1618_v30  ;;  %v2650_v39 = vmul.f32 2.0, %v1942_v50  ;;  %v11752_v8 = vld [vmem:[%s11991_s22 + $0x8] sm:$0xff]  ;;  %v11753_v60 = vld [vmem:[%s11991_s22] sm:$0xff]  ;;  %v11754_v20 = vld [vmem:[%s12068_s23 + $0x78] sm:$0xff] }
 0x29c   : > { %v11691_v22 = vpop.eup %11690  ;;  %10665 = vmatpush3.msra.mxu1 %v1022_v49  ;;  %v2678_v25 = vadd.f32 0.0009, %v2630_v3  ;;  %v12986_v42 = vld [vmem:[%s11848_s29 + $0x8] sm:$0xff]  ;;  %v2886_v63 = vld [vmem:[%s11848_s29 + $0x18] sm:$0xff]  ;;  %v11755_v4 = vld [vmem:[%s12068_s23 + $0x70] sm:$0xff] }
 0x29d   : > { %10604 = vmatpush3.msk.msra.mxu0 %vm2730_vm1, %v2725_v54  ;;  %v2723_v51 = vmul.f32 %v11691_v22, %v2676_v13  ;;  %v11693_v48 = vpop.eup %11692  ;;  %10666 = vmatprep.subr.mxu1 %v14056_v31  ;;  %v2648_v38 = vmul.f32 2.0, %v1940_v28  ;;  %v2666_v17 = vadd.f32 0.0009, %v2650_v39  ;;  %v11740_v54 = vld [vmem:[%s11991_s22 + $0x68] sm:$0xff]  ;;  %v11741_v22 = vld [vmem:[%s11991_s22 + $0x60] sm:$0xff]  ;;  %v2890_v40 = vld [vmem:[%s11848_s29 + $0x38] sm:$0xff] }
 0x29e   : > { %10605 = vmatprep.subr.mxu0 %v14056_v31  ;;  %v2719_v52 = vmul.f32 %v11693_v48, %v2674_v26  ;;  %v11695_v56 = vpop.eup %11694  ;;  %10667 = vmatpush3.msra.mxu1 %v1021_v29  ;;  %11704 = vrcp.f32 %v2678_v25  ;;  %v11750_v48 = vld [vmem:[%s11991_s22 + $0x18] sm:$0xff]  ;;  %v12990_v26 = vld [vmem:[%s11848_s29 + $0x10] sm:$0xff]  ;;  %v2887_v49 = vld [vmem:[%s11848_s29 + $0x20] sm:$0xff] }
 0x29f   : > { %10606 = vmatpush3.msra.mxu0 %v2723_v51  ;;  %v2715_v32 = vmul.f32 %v11695_v56, %v2672_v36  ;;  %v11697_v41 = vpop.eup %11696  ;;  %10668 = vmatprep.subr.mxu1 %v14056_v31  ;;  %v11749_v51 = vld [vmem:[%s11991_s22 + $0x20] sm:$0xff]  ;;  %v11756_v3 = vld [vmem:[%s12068_s23 + $0x68] sm:$0xff]  ;;  %v2889_v56 = vld [vmem:[%s11848_s29 + $0x30] sm:$0xff] }
 0x2a0   : > { %10607 = vmatprep.subr.mxu0 %v14056_v31  ;;  %v2888_v24 = vld [vmem:[%s11848_s29 + $0x28] sm:$0xff]  ;;  %v11758_v29 = vld [vmem:[%s12068_s23 + $0x58] sm:$0xff]  ;;  %v11761_v36 = vld [vmem:[%s12068_s23 + $0x40] sm:$0xff] }
 0x2a1   : > { %10608 = vmatpush3.msra.mxu0 %v2721_v53  ;;  %v2652_v53 = vmul.f32 2.0, %v1944_v9  ;;  %v11759_v9 = vld [vmem:[%s12068_s23 + $0x50] sm:$0xff]  ;;  %v11760_v6 = vld [vmem:[%s12068_s23 + $0x48] sm:$0xff]  ;;  %v11762_v12 = vld [vmem:[%s12068_s23 + $0x38] sm:$0xff] }
 0x2a2   : > { %10609 = vmatprep.subr.mxu0 %v14056_v31  ;;  %v11699_v37 = vpop.eup %11698  ;;  %v11763_v25 = vld [vmem:[%s12068_s23 + $0x30] sm:$0xff]  ;;  %v11766_v21 = vld [vmem:[%s12068_s23 + $0x18] sm:$0xff]  ;;  %v1020_v30 = vld [vmem:[%s11843_s25] sm:$0xff] }
 0x2a3   : > { %10610 = vmatpush3.msra.mxu0 %v2719_v52  ;;  %v2668_v16 = vadd.f32 0.0009, %v2652_v53  ;;  %v11757_v52 = vld [vmem:[%s12068_s23 + $0x60] sm:$0xff]  ;;  %v11767_v50 = vld [vmem:[%s12068_s23 + $0x10] sm:$0xff]  ;;  %v11768_v53 = vld [vmem:[%s12068_s23 + $0x8] sm:$0xff]  ;;  %10669 = vmatpush3.msra.mxu1 %v1020_v30 }
 0x2a4   : > { %10611 = vmatprep.subr.mxu0 %v14056_v31  ;;  %v11701_v5 = vpop.eup %11700  ;;  %v2905_v7 = vld [vmem:[%s11853_s3 + $0x70] sm:$0xff]  ;;  %v2904_v39 = vld [vmem:[%s11853_s3 + $0x68] sm:$0xff]  ;;  %v13149_v30 = vld [vmem:[%s11858_s8 + $0x38] sm:$0xf] }
 0x2a5   : > { %10612 = vmatpush3.msra.mxu0 %v12882_v58  ;;  %v2711_v58 = vmul.f32 %v11697_v41, %v2670_v59  ;;  %v2707_v44 = vmul.f32 %v11699_v37, %v2668_v16  ;;  %v2703_v43 = vmul.f32 %v11701_v5, %v2666_v17  ;;  %v11765_v41 = vld [vmem:[%s12068_s23 + $0x20] sm:$0xff]  ;;  %v2900_v5 = vld [vmem:[%s11853_s3 + $0x48] sm:$0xff] }
 0x2a6   : > { %10613 = vmatprep.subr.mxu0 %v14056_v31  ;;  %v11769_v59 = vld [vmem:[%s12068_s23] sm:$0xff]  ;;  %v2896_v17 = vld [vmem:[%s11853_s3 + $0x28] sm:$0xff] }
 0x2a7   : > { %10614 = vmatpush3.msra.mxu0 %v2715_v32  ;;  %v11703_v1 = vpop.eup %11702  ;;  %v11764_v32 = vld [vmem:[%s12068_s23 + $0x28] sm:$0xff]  ;;  %v2903_v16 = vld [vmem:[%s11853_s3 + $0x60] sm:$0xff]  ;;  %s14105_s23 = sld [smem:[#allocation10_spill]] }
 0x2a8   : > { %10615 = vmatprep.subr.mxu0 %v14056_v31 }
 0x2a9   : > { %10616 = vmatpush3.msra.mxu0 %v12864_v35  ;;  %v14077_v35 = vld [vmem:[#allocation21_spill] sm:$0xff] }
 0x2aa   : > { %10617 = vmatprep.subr.mxu0 %v14056_v31  ;;  %v1938_v55 = vsub.f32 %v14077_v35, %v1616_v34  ;;  %v2902_v34 = vld [vmem:[%s11853_s3 + $0x58] sm:$0xff]  ;;  %v2899_v35 = vld [vmem:[%s11853_s3 + $0x40] sm:$0xff] }
 0x2ab   : > { %10618 = vmatpush3.msra.mxu0 %v2711_v58  ;;  %v11705_v19 = vpop.eup %11704  ;;  %v2906_v58 = vld [vmem:[%s11853_s3 + $0x78] sm:$0xff] }
 0x2ac   : > { %10619 = vmatprep.subr.mxu0 %v14056_v31  ;;  %v2646_v46 = vmul.f32 2.0, %v1938_v55  ;;  %10717 = vmatprep.subr.mxu1 %v2906_v58  ;;  %v2898_v55 = vld [vmem:[%s11853_s3 + $0x38] sm:$0xff] }
 0x2ad   : > { %10620 = vmatpush3.msra.mxu0 %v12849_v11  ;;  %v2664_v11 = vadd.f32 0.0009, %v2648_v38  ;;  %v2897_v38 = vld [vmem:[%s11853_s3 + $0x30] sm:$0xff] }
 0x2ae   : > { %10621 = vmatprep.subr.mxu0 %v14056_v31 }
 0x2af   : > { %10622 = vmatpush3.msra.mxu0 %v2707_v44  ;;  %v2699_v10 = vmul.f32 %v11703_v1, %v2664_v11  ;;  %v2901_v44 = vld [vmem:[%s11853_s3 + $0x50] sm:$0xff]  ;;  %v2894_v1 = vld [vmem:[%s11853_s3 + $0x18] sm:$0xff]  ;;  %v2892_v11 = vld [vmem:[%s11853_s3 + $0x8] sm:$0xff] }
 0x2b0   : > { %10623 = vmatprep.subr.mxu0 %v14056_v31 }
 0x2b1   : > { %10624 = vmatpush3.msra.mxu0 %v12838_v57  ;;  %v2662_v57 = vadd.f32 0.0009, %v2646_v46  ;;  %v2893_v46 = vld [vmem:[%s11853_s3 + $0x10] sm:$0xff] }
 0x2b2   : > { %10625 = vmatprep.subr.mxu0 %v14056_v31 }
 0x2b3   : > { %10626 = vmatpush3.msra.mxu0 %v2703_v43  ;;  %v2695_v13 = vmul.f32 %v11705_v19, %v2662_v57  ;;  %v2895_v43 = vld [vmem:[%s11853_s3 + $0x20] sm:$0xff] }
 0x2b4   : > { %10627 = vmatprep.subr.mxu0 %v14056_v31 }
 0x2b5   : > { %10628 = vmatpush3.msra.mxu0 %v12823_v61  ;;  %v11738_v61 = vld [vmem:[%s11991_s22 + $0x78] sm:$0xff] }
 0x2b6   : > { %10629 = vmatprep.subr.mxu0 %v14056_v31 }
 0x2b7   : > { %10630 = vmatpush3.msra.mxu0 %v2699_v10  ;;  %v2891_v10 = vld [vmem:[%s11853_s3] sm:$0xff] }
 0x2b8   : > { %10631 = vmatprep.subr.mxu0 %v14056_v31 }
 0x2b9   : > { %10632 = vmatpush3.msra.mxu0 %v12802_v2  ;;  %v11739_v2 = vld [vmem:[%s11991_s22 + $0x70] sm:$0xff]  ;;  %s14104_s22 = sld [smem:[#allocation11_spill]] }
 0x2ba   : > { %10633 = vmatprep.subr.mxu0 %v14056_v31 }
 0x2bb   : > { %10634 = vmatpush3.msra.mxu0 %v2695_v13 }
 0x2bc   : > { %10636 = vmatmul.mubr.msk.f32.vlgmr.msra.gmra.mxu0 %vm2726_vm2, %v1019_v62  ;;  %10673 = vmatprep.subr.mxu0 %v11738_v61 }
 0x2bd   : > { %10674 = vmatpush3.msra.mxu0 %v11738_v61  ;;  %10705 = vmatprep.mubr.f32.mxu0 %v12966_v15 }
 0x2be   : > { %10675 = vmatprep.subr.mxu0 %v11739_v2 }
 0x2bf   : > { %10676 = vmatpush3.msra.mxu0 %v11739_v2 }
 0x2c0   : > { %10677 = vmatprep.subr.mxu0 %v11740_v54 }
 0x2c1   : > { %10678 = vmatpush3.msra.mxu0 %v11740_v54 }
 0x2c2   : > { %10679 = vmatprep.subr.mxu0 %v11741_v22 }
 0x2c3   : > { %10680 = vmatpush3.msra.mxu0 %v11741_v22 }
 0x2c4   : > { %10681 = vmatprep.subr.mxu0 %v11742_v47 }
 0x2c5   : > { %10682 = vmatpush3.msra.mxu0 %v11742_v47 }
 0x2c6   : > { %10683 = vmatprep.subr.mxu0 %v11743_v45 }
 0x2c7   : > { %10684 = vmatpush3.msra.mxu0 %v11743_v45 }
 0x2c8   : > { %10685 = vmatprep.subr.mxu0 %v11744_v33 }
 0x2c9   : > { %10686 = vmatpush3.msra.mxu0 %v11744_v33 }
 0x2ca   : > { %10687 = vmatprep.subr.mxu0 %v11745_v27 }
 0x2cb   : > { %10688 = vmatpush3.msra.mxu0 %v11745_v27 }
 0x2cc   : > { %10689 = vmatprep.subr.mxu0 %v11746_v18 }
 0x2cd   : > { %10690 = vmatpush3.msra.mxu0 %v11746_v18 }
 0x2ce   : > { %10691 = vmatprep.subr.mxu0 %v11747_v14 }
 0x2cf   : > { %10692 = vmatpush3.msra.mxu0 %v11747_v14 }
 0x2d0   : > { %10693 = vmatprep.subr.mxu0 %v11748_v23 }
 0x2d1   : > { %10694 = vmatpush3.msra.mxu0 %v11748_v23 }
 0x2d2   : > { %10695 = vmatprep.subr.mxu0 %v11749_v51 }
 0x2d3   : > { %10696 = vmatpush3.msra.mxu0 %v11749_v51  ;;  %v13037_v51 = vld [vmem:[%s11858_s8] sm:$0xff] }
 0x2d4   : > { %10697 = vmatprep.subr.mxu0 %v11750_v48 }
 0x2d5   : > { %10698 = vmatpush3.msra.mxu0 %v11750_v48 }
 0x2d6   : > { %10699 = vmatprep.subr.mxu0 %v11751_v0 }
 0x2d7   : > { %10700 = vmatpush3.msra.mxu0 %v11751_v0 }
 0x2d8   : > { %10701 = vmatprep.subr.mxu0 %v11752_v8 }
 0x2d9   : > { %10702 = vmatpush3.msra.mxu0 %v11752_v8 }
 0x2da   : > { %10703 = vmatprep.subr.mxu0 %v11753_v60 }
 0x2db   : > { %10704 = vmatpush3.msra.mxu0 %v11753_v60  ;;  %v13052_v60 = vld [vmem:[%s11863_s14 + $0x30] sm:$0xff] }
 0x2dc   : > { %10706 = vmatmul.mubr.f32.vlgmr.msra.gmra.mxu0 %v12986_v42  ;;  %10761 = vmatprep.subr.mxu0 %v11754_v20 }
 0x2dd   : > { %10762 = vmatpush3.msra.mxu0 %v11754_v20  ;;  %10708 = vmatprep.mubr.f32.mxu0 %v12990_v26  ;;  %v13062_v20 = vld [vmem:[%s11863_s14 + $0x20] sm:$0xff] }
 0x2de   : > { %10763 = vmatprep.subr.mxu0 %v11755_v4 }
 0x2df   : > { %10764 = vmatpush3.msra.mxu0 %v11755_v4 }
 0x2e0   : > { %10709 = vmatmul.mubr.f32.gmra.mxu0 %v2886_v63  ;;  %10765 = vmatprep.subr.mxu0 %v11756_v3 }
 0x2e1   : > { %10766 = vmatpush3.msra.mxu0 %v11756_v3  ;;  %10711 = vmatprep.mubr.f32.mxu0 %v2887_v49 }
 0x2e2   : > { %10767 = vmatprep.subr.mxu0 %v11757_v52 }
 0x2e3   : > { %10768 = vmatpush3.msra.mxu0 %v11757_v52 }
 0x2e4   : > { %10712 = vmatmul.mubr.f32.gmra.mxu0 %v2888_v24  ;;  %10769 = vmatprep.subr.mxu0 %v11758_v29 }
 0x2e5   : > { %10770 = vmatpush3.msra.mxu0 %v11758_v29  ;;  %10714 = vmatprep.mubr.f32.mxu0 %v2889_v56 }
 0x2e6   : > { %10771 = vmatprep.subr.mxu0 %v11759_v9 }
 0x2e7   : > { %10772 = vmatpush3.msra.mxu0 %v11759_v9 }
 0x2e8   : > { %10715 = vmatmul.mubr.f32.gmra.mxu0 %v2890_v40  ;;  %10773 = vmatprep.subr.mxu0 %v11760_v6 }
 0x2e9   : > { %10774 = vmatpush3.msra.mxu0 %v11760_v6  ;;  %10793 = vmatprep.mubr.f32.mxu0 %v12966_v15  ;;  %v13109_v6 = vld [vmem:[%s11858_s8 + $0x8] sm:$0xff] }
 0x2ea   : > { %10775 = vmatprep.subr.mxu0 %v11761_v36 }
 0x2eb   : > { %10776 = vmatpush3.msra.mxu0 %v11761_v36  ;;  %v13113_v36 = vld [vmem:[%s11858_s8 + $0x10] sm:$0xff] }
 0x2ec   : > { %10777 = vmatprep.subr.mxu0 %v11762_v12 }
 0x2ed   : > { %10778 = vmatpush3.msra.mxu0 %v11762_v12  ;;  %v13121_v12 = vld [vmem:[%s11858_s8 + $0x18] sm:$0xff] }
 0x2ee   : > { %10779 = vmatprep.subr.mxu0 %v11763_v25 }
 0x2ef   : > { %10780 = vmatpush3.msra.mxu0 %v11763_v25  ;;  %v13124_v25 = vld [vmem:[%s11858_s8 + $0x20] sm:$0xff] }
 0x2f0   : > { %10781 = vmatprep.subr.mxu0 %v11764_v32 }
 0x2f1   : > { %10782 = vmatpush3.msra.mxu0 %v11764_v32 }
 0x2f2   : > { %10783 = vmatprep.subr.mxu0 %v11765_v41 }
 0x2f3   : > { %10784 = vmatpush3.msra.mxu0 %v11765_v41 }
 0x2f4   : > { %10785 = vmatprep.subr.mxu0 %v11766_v21 }
 0x2f5   : > { %10786 = vmatpush3.msra.mxu0 %v11766_v21  ;;  %v13135_v21 = vld [vmem:[%s11858_s8 + $0x28] sm:$0xff] }
 0x2f6   : > { %10787 = vmatprep.subr.mxu0 %v11767_v50 }
 0x2f7   : > { %10788 = vmatpush3.msra.mxu0 %v11767_v50  ;;  %v13138_v50 = vld [vmem:[%s11858_s8 + $0x30] sm:$0xff] }
 0x2f8   : > { %10789 = vmatprep.subr.mxu0 %v11768_v53 }
 0x2f9   : > { %10790 = vmatpush3.msra.mxu0 %v11768_v53 }
 0x2fa   : > { %10791 = vmatprep.subr.mxu0 %v11769_v59 }
 0x2fb   : > { %10792 = vmatpush3.msra.mxu0 %v11769_v59 }
 0x2fc   : > { %10794 = vmatmul.mubr.f32.vlgmr.msra.gmra.mxu0 %v12986_v42  ;;  %v13049_v42 = vld [vmem:[%s11863_s14 + $0x38] sm:$0xff] }
 0x2fd   : > { %10796 = vmatprep.mubr.f32.mxu0 %v12990_v26  ;;  %v13057_v26 = vld [vmem:[%s11863_s14 + $0x28] sm:$0xff] }
 0x300   : > { %10797 = vmatmul.mubr.f32.gmra.mxu0 %v2886_v63  ;;  %v13067_v63 = vld [vmem:[%s11863_s14 + $0x18] sm:$0xff] }
 0x301   : > { %10799 = vmatprep.mubr.f32.mxu0 %v2887_v49  ;;  %v13074_v49 = vld [vmem:[%s11863_s14 + $0x10] sm:$0xff] }
 0x304   : > { %10800 = vmatmul.mubr.f32.gmra.mxu0 %v2888_v24 }
 0x305   : > { %10802 = vmatprep.mubr.f32.mxu0 %v2889_v56 }
 0x308   : > { %10803 = vmatmul.mubr.f32.gmra.mxu0 %v2890_v40 }
 0x309   : > { %10865 = vmatprep.mubr.msk.f32.mxu0 %vm3352_vm3, %v13037_v51 }
 0x37c   : > { %v2800_v37 = vpop.f32.mrf.mxu0 }
 0x37d   : > { %10671 = vmatmul.mubr.msk.f32.vlgmr.msra.gmra.mxu1 %vm2726_vm2, %v2800_v37 }
 0x37e   : > { %v10637_v28 = vpop.f32.mrf.mxu0  ;;  %10718 = vmatpush3.msra.mxu1 %v2906_v58 }
 0x37f   : > { %10719 = vmatprep.subr.mxu1 %v2905_v7 }
 0x380   : > { %10720 = vmatpush3.msra.mxu1 %v2905_v7 }
 0x381   : > { %10721 = vmatprep.subr.mxu1 %v2904_v39 }
 0x382   : > { %10722 = vmatpush3.msra.mxu1 %v2904_v39 }
 0x383   : > { %10723 = vmatprep.subr.mxu1 %v2903_v16 }
 0x384   : > { %10724 = vmatpush3.msra.mxu1 %v2903_v16 }
 0x385   : > { %10725 = vmatprep.subr.mxu1 %v2902_v34 }
 0x386   : > { %10726 = vmatpush3.msra.mxu1 %v2902_v34 }
 0x387   : > { %10727 = vmatprep.subr.mxu1 %v2901_v44 }
 0x388   : > { %10728 = vmatpush3.msra.mxu1 %v2901_v44 }
 0x389   : > { %10729 = vmatprep.subr.mxu1 %v2900_v5 }
 0x38a   : > { %10730 = vmatpush3.msra.mxu1 %v2900_v5 }
 0x38b   : > { %10731 = vmatprep.subr.mxu1 %v2899_v35 }
 0x38c   : > { %10732 = vmatpush3.msra.mxu1 %v2899_v35 }
 0x38d   : > { %10733 = vmatprep.subr.mxu1 %v2898_v55 }
 0x38e   : > { %10734 = vmatpush3.msra.mxu1 %v2898_v55 }
 0x38f   : > { %10735 = vmatprep.subr.mxu1 %v2897_v38 }
 0x390   : > { %10736 = vmatpush3.msra.mxu1 %v2897_v38 }
 0x391   : > { %10737 = vmatprep.subr.mxu1 %v2896_v17 }
 0x392   : > { %10738 = vmatpush3.msra.mxu1 %v2896_v17 }
 0x393   : > { %10739 = vmatprep.subr.mxu1 %v2895_v43 }
 0x394   : > { %10740 = vmatpush3.msra.mxu1 %v2895_v43 }
 0x395   : > { %10741 = vmatprep.subr.mxu1 %v2894_v1 }
 0x396   : > { %10742 = vmatpush3.msra.mxu1 %v2894_v1 }
 0x397   : > { %10743 = vmatprep.subr.mxu1 %v2893_v46 }
 0x398   : > { %10744 = vmatpush3.msra.mxu1 %v2893_v46 }
 0x399   : > { %10745 = vmatprep.subr.mxu1 %v2892_v11 }
 0x39a   : > { %10746 = vmatpush3.msra.mxu1 %v2892_v11 }
 0x39b   : > { %10747 = vmatprep.subr.mxu1 %v2891_v10 }
 0x39c   : > { %v10707_v19 = vpop.f32.mrf.mxu0  ;;  %10748 = vmatpush3.msra.mxu1 %v2891_v10 }
 0x39d   : > { %10805 = vmatprep.subr.mxu1 %v2906_v58 }
 0x39e   : > { %v2973_v57 = vpop.f32.mrf.mxu0 }
 0x39f   : > { %10749 = vmatprep.mubr.f32.mxu1 %v2973_v57 }
 0x3a0   : > { %v10710_v13 = vpop.f32.mrf.mxu0  ;;  %10750 = vmatmul.mubr.f32.vlgmr.msra.gmra.mxu1 %v10707_v19 }
 0x3a1   : > { %10806 = vmatpush3.msra.mxu1 %v2906_v58 }
 0x3a2   : > { %v2983_v62 = vpop.f32.mrf.mxu0  ;;  %10807 = vmatprep.subr.mxu1 %v2905_v7 }
 0x3a3   : > { %10752 = vmatprep.mubr.f32.mxu1 %v2983_v62  ;;  %10808 = vmatpush3.msra.mxu1 %v2905_v7 }
 0x3a4   : > { %v10713_v15 = vpop.f32.mrf.mxu0  ;;  %10753 = vmatmul.mubr.f32.gmra.mxu1 %v10710_v13  ;;  %10809 = vmatprep.subr.mxu1 %v2904_v39 }
 0x3a5   : > { %10810 = vmatpush3.msra.mxu1 %v2904_v39 }
 0x3a6   : > { %v2993_v61 = vpop.f32.mrf.mxu0  ;;  %10811 = vmatprep.subr.mxu1 %v2903_v16 }
 0x3a7   : > { %10755 = vmatprep.mubr.f32.mxu1 %v2993_v61  ;;  %10812 = vmatpush3.msra.mxu1 %v2903_v16 }
 0x3a8   : > { %v10716_v2 = vpop.f32.mrf.mxu0  ;;  %10756 = vmatmul.mubr.f32.gmra.mxu1 %v10713_v15  ;;  %10813 = vmatprep.subr.mxu1 %v2902_v34  ;;  %v13250_v15 = vld [vmem:[%s11863_s14 + $0x8] sm:$0xff] }
 0x3a9   : > { %10814 = vmatpush3.msra.mxu1 %v2902_v34 }
 0x3aa   : > { %v3003_v54 = vpop.f32.mrf.mxu0  ;;  %10815 = vmatprep.subr.mxu1 %v2901_v44 }
 0x3ab   : > { %10758 = vmatprep.mubr.f32.mxu1 %v3003_v54  ;;  %10816 = vmatpush3.msra.mxu1 %v2901_v44 }
 0x3ac   : > { %10759 = vmatmul.mubr.f32.gmra.mxu1 %v10716_v2  ;;  %10817 = vmatprep.subr.mxu1 %v2900_v5  ;;  %v13259_v2 = vld [vmem:[%s11863_s14] sm:$0xff] }
 0x3ad   : > { %10818 = vmatpush3.msra.mxu1 %v2900_v5 }
 0x3ae   : > { %10819 = vmatprep.subr.mxu1 %v2899_v35 }
 0x3af   : > { %10820 = vmatpush3.msra.mxu1 %v2899_v35 }
 0x3b0   : > { %10821 = vmatprep.subr.mxu1 %v2898_v55 }
 0x3b1   : > { %10822 = vmatpush3.msra.mxu1 %v2898_v55 }
 0x3b2   : > { %10823 = vmatprep.subr.mxu1 %v2897_v38 }
 0x3b3   : > { %10824 = vmatpush3.msra.mxu1 %v2897_v38 }
 0x3b4   : > { %10825 = vmatprep.subr.mxu1 %v2896_v17 }
 0x3b5   : > { %10826 = vmatpush3.msra.mxu1 %v2896_v17 }
 0x3b6   : > { %10827 = vmatprep.subr.mxu1 %v2895_v43 }
 0x3b7   : > { %10828 = vmatpush3.msra.mxu1 %v2895_v43 }
 0x3b8   : > { %10829 = vmatprep.subr.mxu1 %v2894_v1 }
 0x3b9   : > { %10830 = vmatpush3.msra.mxu1 %v2894_v1 }
 0x3ba   : > { %10831 = vmatprep.subr.mxu1 %v2893_v46 }
 0x3bb   : > { %10832 = vmatpush3.msra.mxu1 %v2893_v46 }
 0x3bc   : > { %v10795_v22 = vpop.f32.mrf.mxu0  ;;  %10833 = vmatprep.subr.mxu1 %v2892_v11 }
 0x3bd   : > { %10834 = vmatpush3.msra.mxu1 %v2892_v11 }
 0x3be   : > { %v3183_v47 = vpop.f32.mrf.mxu0  ;;  %10835 = vmatprep.subr.mxu1 %v2891_v10 }
 0x3bf   : > { %10836 = vmatpush3.msra.mxu1 %v2891_v10  ;;  %10837 = vmatprep.mubr.f32.mxu1 %v3183_v47 }
 0x3c0   : > { %v10798_v45 = vpop.f32.mrf.mxu0  ;;  %10838 = vmatmul.mubr.f32.vlgmr.msra.gmra.mxu1 %v10795_v22  ;;  %10877 = vmatprep.subr.mxu1 %v13049_v42 }
 0x3c1   : > { %10878 = vmatpush3.msra.mxu1 %v13049_v42 }
 0x3c2   : > { %v3193_v33 = vpop.f32.mrf.mxu0  ;;  %10879 = vmatprep.subr.mxu1 %v13052_v60 }
 0x3c3   : > { %10840 = vmatprep.mubr.f32.mxu1 %v3193_v33  ;;  %10880 = vmatpush3.msra.mxu1 %v13052_v60 }
 0x3c4   : > { %v10801_v27 = vpop.f32.mrf.mxu0  ;;  %10841 = vmatmul.mubr.f32.gmra.mxu1 %v10798_v45  ;;  %10881 = vmatprep.subr.mxu1 %v13057_v26 }
 0x3c5   : > { %10882 = vmatpush3.msra.mxu1 %v13057_v26 }
 0x3c6   : > { %v3203_v18 = vpop.f32.mrf.mxu0  ;;  %10883 = vmatprep.subr.mxu1 %v13062_v20 }
 0x3c7   : > { %10843 = vmatprep.mubr.f32.mxu1 %v3203_v18  ;;  %10884 = vmatpush3.msra.mxu1 %v13062_v20 }
 0x3c8   : > { %v10804_v14 = vpop.f32.mrf.mxu0  ;;  %10844 = vmatmul.mubr.f32.gmra.mxu1 %v10801_v27  ;;  %10885 = vmatprep.subr.mxu1 %v13067_v63 }
 0x3c9   : > { %10886 = vmatpush3.msra.mxu1 %v13067_v63 }
 0x3ca   : > { %v3213_v23 = vpop.f32.mrf.mxu0  ;;  %10887 = vmatprep.subr.mxu1 %v13074_v49 }
 0x3cb   : > { %10846 = vmatprep.mubr.f32.mxu1 %v3213_v23  ;;  %10888 = vmatpush3.msra.mxu1 %v13074_v49 }
 0x3cc   : > { %10847 = vmatmul.mubr.f32.gmra.mxu1 %v10804_v14  ;;  %10889 = vmatprep.subr.mxu1 %v13250_v15 }
 0x3cd   : > { %10890 = vmatpush3.msra.mxu1 %v13250_v15 }
 0x3ce   : > { %10891 = vmatprep.subr.mxu1 %v13259_v2 }
 0x3cf   : > { %10892 = vmatpush3.msra.mxu1 %v13259_v2 }
 0x3d0   : > { %10933 = vmatprep.subr.mxu1 %v13049_v42 }
 0x43d   : > { %v2876_v48 = vpop.f32.mrf.mxu1 }
 0x43e   : > { %v2880_v0 = vmax.f32 %v2876_v48, 0.0 }
 0x43f   : > { %v10672_v8 = vpop.f32.mrf.mxu1 }
 0x440   : > { %2882 = vst.msk [vmem:[%s13044_s28] sm:$0x3] %vm2881_vm4, %v2880_v0 }
 0x460   : > { %v13069_v4 = vpop.f32.mrf.mxu1 }
 0x461   : > { %v4104_v19 = vmul.f32 %v13069_v4, %v13069_v4 }
 0x462   : > { %v13076_v3 = vpop.f32.mrf.mxu1 }
 0x463   : > { %v4103_v57 = vmul.f32 %v13076_v3, %v13076_v3 }
 0x464   : > { %v13080_v24 = vpop.f32.mrf.mxu1 }
 0x465   : > { %v4106_v11 = vmul.f32 %v13080_v24, %v13080_v24 }
 0x466   : > { %v13084_v52 = vpop.f32.mrf.mxu1 }
 0x467   : > { %v4105_v10 = vmul.f32 %v13084_v52, %v13084_v52 }
 0x468   : > { %v13086_v56 = vpop.f32.mrf.mxu1 }
 0x469   : > { %v4108_v1 = vmul.f32 %v13086_v56, %v13086_v56 }
 0x46a   : > { %v13088_v29 = vpop.f32.mrf.mxu1 }
 0x46b   : > { %v4107_v46 = vmul.f32 %v13088_v29, %v13088_v29 }
 0x46c   : > { %v13090_v40 = vpop.f32.mrf.mxu1 }
 0x46d   : > { %10849 = vmatprep.subr.mxu0 %v13090_v40  ;;  %v4110_v17 = vmul.f32 %v13090_v40, %v13090_v40 }
 0x46e   : > { %v13093_v9 = vpop.f32.mrf.mxu1  ;;  %10850 = vmatpush3.msra.mxu0 %v13090_v40 }
 0x46f   : > { %10851 = vmatprep.subr.mxu0 %v13093_v9  ;;  %v4109_v43 = vmul.f32 %v13093_v9, %v13093_v9 }
 0x470   : > { %10852 = vmatpush3.msra.mxu0 %v13093_v9 }
 0x471   : > { %10853 = vmatprep.subr.mxu0 %v13086_v56 }
 0x472   : > { %10854 = vmatpush3.msra.mxu0 %v13086_v56 }
 0x473   : > { %10855 = vmatprep.subr.mxu0 %v13088_v29 }
 0x474   : > { %10856 = vmatpush3.msra.mxu0 %v13088_v29 }
 0x475   : > { %10857 = vmatprep.subr.mxu0 %v13080_v24 }
 0x476   : > { %10858 = vmatpush3.msra.mxu0 %v13080_v24 }
 0x477   : > { %10859 = vmatprep.subr.mxu0 %v13084_v52 }
 0x478   : > { %10860 = vmatpush3.msra.mxu0 %v13084_v52 }
 0x479   : > { %10861 = vmatprep.subr.mxu0 %v13069_v4 }
 0x47a   : > { %10862 = vmatpush3.msra.mxu0 %v13069_v4 }
 0x47b   : > { %10863 = vmatprep.subr.mxu0 %v13076_v3 }
 0x47c   : > { %10864 = vmatpush3.msra.mxu0 %v13076_v3 }
 0x47d   : > { %10866 = vmatmul.mubr.msk.f32.vlgmr.msra.gmra.mxu0 %vm3352_vm3, %v13109_v6 }
 0x47e   : > { %10868 = vmatprep.mubr.msk.f32.mxu0 %vm3352_vm3, %v13113_v36 }
 0x480   : > { %v13126_v32 = vpop.f32.mrf.mxu1 }
 0x481   : > { %14078 = vst [vmem:[#allocation32_spill] sm:$0xff] %v13126_v32  ;;  %10869 = vmatmul.mubr.msk.f32.gmra.mxu0 %vm3352_vm3, %v13121_v12  ;;  %v3854_v55 = vmul.f32 %v13126_v32, %v13069_v4  ;;  %v4362_v45 = vmul.f32 %v13126_v32, %v13126_v32 }
 0x482   : > { %v13130_v41 = vpop.f32.mrf.mxu1  ;;  %10871 = vmatprep.mubr.msk.f32.mxu0 %vm3352_vm3, %v13124_v25 }
 0x483   : > { %14079 = vst [vmem:[#allocation17_spill] sm:$0xff] %v13130_v41  ;;  %v3853_v38 = vmul.f32 %v13130_v41, %v13076_v3  ;;  %v4361_v33 = vmul.f32 %v13130_v41, %v13130_v41 }
 0x484   : > { %v13140_v53 = vpop.f32.mrf.mxu1 }
 0x485   : > { %14080 = vst [vmem:[#allocation28_spill] sm:$0xff] %v13140_v53  ;;  %10872 = vmatmul.mubr.msk.f32.gmra.mxu0 %vm3352_vm3, %v13135_v21  ;;  %v3856_v5 = vmul.f32 %v13140_v53, %v13080_v24  ;;  %v4364_v22 = vmul.f32 %v13140_v53, %v13140_v53 }
 0x486   : > { %v13144_v59 = vpop.f32.mrf.mxu1  ;;  %10874 = vmatprep.mubr.msk.f32.mxu0 %vm3352_vm3, %v13138_v50 }
 0x487   : > { %14081 = vst [vmem:[#allocation20_spill] sm:$0xff] %v13144_v59  ;;  %v3855_v35 = vmul.f32 %v13144_v59, %v13084_v52  ;;  %v4363_v47 = vmul.f32 %v13144_v59, %v13144_v59 }
 0x488   : > { %v13151_v58 = vpop.f32.mrf.mxu1 }
 0x489   : > { %14082 = vst [vmem:[#allocation19_spill] sm:$0xff] %v13151_v58  ;;  %10875 = vmatmul.mubr.msk.f32.gmra.mxu0 %vm3352_vm3, %v13149_v30  ;;  %v3858_v34 = vmul.f32 %v13151_v58, %v13086_v56  ;;  %v4366_v61 = vmul.f32 %v13151_v58, %v13151_v58 }
 0x48a   : > { %v13155_v37 = vpop.f32.mrf.mxu1  ;;  %10921 = vmatprep.mubr.msk.f32.mxu0 %vm3352_vm3, %v13037_v51 }
 0x48b   : > { %14083 = vst [vmem:[#allocation27_spill] sm:$0xff] %v13155_v37  ;;  %v3857_v44 = vmul.f32 %v13155_v37, %v13088_v29  ;;  %v4365_v54 = vmul.f32 %v13155_v37, %v13155_v37 }
 0x48c   : > { %v13159_v7 = vpop.f32.mrf.mxu1 }
 0x48d   : > { %14084 = vst [vmem:[#allocation31_spill] sm:$0xff] %v13159_v7  ;;  %10905 = vmatprep.subr.mxu0 %v13159_v7  ;;  %v3860_v39 = vmul.f32 %v13159_v7, %v13090_v40  ;;  %v4368_v13 = vmul.f32 %v13159_v7, %v13159_v7 }
 0x48e   : > { %v13162_v28 = vpop.f32.mrf.mxu1  ;;  %10906 = vmatpush3.msra.mxu0 %v13159_v7 }
 0x48f   : > { %14085 = vst [vmem:[#allocation16_spill] sm:$0xff] %v13162_v28  ;;  %10907 = vmatprep.subr.mxu0 %v13162_v28  ;;  %v3859_v16 = vmul.f32 %v13162_v28, %v13093_v9  ;;  %v4367_v62 = vmul.f32 %v13162_v28, %v13162_v28 }
 0x490   : > { %10908 = vmatpush3.msra.mxu0 %v13162_v28 }
 0x491   : > { %10909 = vmatprep.subr.mxu0 %v13151_v58 }
 0x492   : > { %10910 = vmatpush3.msra.mxu0 %v13151_v58 }
 0x493   : > { %10911 = vmatprep.subr.mxu0 %v13155_v37 }
 0x494   : > { %10912 = vmatpush3.msra.mxu0 %v13155_v37 }
 0x495   : > { %10913 = vmatprep.subr.mxu0 %v13140_v53 }
 0x496   : > { %10914 = vmatpush3.msra.mxu0 %v13140_v53 }
 0x497   : > { %10915 = vmatprep.subr.mxu0 %v13144_v59 }
 0x498   : > { %10916 = vmatpush3.msra.mxu0 %v13144_v59 }
 0x499   : > { %10917 = vmatprep.subr.mxu0 %v13126_v32 }
 0x49a   : > { %10918 = vmatpush3.msra.mxu0 %v13126_v32 }
 0x49b   : > { %10919 = vmatprep.subr.mxu0 %v13130_v41 }
 0x49c   : > { %10920 = vmatpush3.msra.mxu0 %v13130_v41 }
 0x49d   : > { %10922 = vmatmul.mubr.msk.f32.vlgmr.msra.gmra.mxu0 %vm3352_vm3, %v13109_v6  ;;  %10961 = vmatprep.subr.mxu0 %v3860_v39 }
 0x49e   : > { %10962 = vmatpush3.msra.mxu0 %v3860_v39  ;;  %10924 = vmatprep.mubr.msk.f32.mxu0 %vm3352_vm3, %v13113_v36 }
 0x49f   : > { %10963 = vmatprep.subr.mxu0 %v3859_v16 }
 0x4a0   : > { %10964 = vmatpush3.msra.mxu0 %v3859_v16 }
 0x4a1   : > { %10925 = vmatmul.mubr.msk.f32.gmra.mxu0 %vm3352_vm3, %v13121_v12  ;;  %10965 = vmatprep.subr.mxu0 %v3858_v34 }
 0x4a2   : > { %10966 = vmatpush3.msra.mxu0 %v3858_v34  ;;  %10927 = vmatprep.mubr.msk.f32.mxu0 %vm3352_vm3, %v13124_v25 }
 0x4a3   : > { %10967 = vmatprep.subr.mxu0 %v3857_v44 }
 0x4a4   : > { %10968 = vmatpush3.msra.mxu0 %v3857_v44 }
 0x4a5   : > { %10928 = vmatmul.mubr.msk.f32.gmra.mxu0 %vm3352_vm3, %v13135_v21  ;;  %10969 = vmatprep.subr.mxu0 %v3856_v5 }
 0x4a6   : > { %10970 = vmatpush3.msra.mxu0 %v3856_v5  ;;  %10930 = vmatprep.mubr.msk.f32.mxu0 %vm3352_vm3, %v13138_v50 }
 0x4a7   : > { %10971 = vmatprep.subr.mxu0 %v3855_v35 }
 0x4a8   : > { %10972 = vmatpush3.msra.mxu0 %v3855_v35 }
 0x4a9   : > { %10931 = vmatmul.mubr.msk.f32.gmra.mxu0 %vm3352_vm3, %v13149_v30  ;;  %10973 = vmatprep.subr.mxu0 %v3854_v55 }
 0x4aa   : > { %10974 = vmatpush3.msra.mxu0 %v3854_v55  ;;  %10977 = vmatprep.mubr.msk.f32.mxu0 %vm3352_vm3, %v13037_v51 }
 0x4ab   : > { %10975 = vmatprep.subr.mxu0 %v3853_v38 }
 0x4ac   : > { %10976 = vmatpush3.msra.mxu0 %v3853_v38 }
 0x4ad   : > { %10978 = vmatmul.mubr.msk.f32.vlgmr.msra.gmra.mxu0 %vm3352_vm3, %v13109_v6  ;;  %11017 = vmatprep.subr.mxu0 %v4110_v17 }
 0x4ae   : > { %11018 = vmatpush3.msra.mxu0 %v4110_v17  ;;  %10980 = vmatprep.mubr.msk.f32.mxu0 %vm3352_vm3, %v13113_v36 }
 0x4af   : > { %11019 = vmatprep.subr.mxu0 %v4109_v43 }
 0x4b0   : > { %11020 = vmatpush3.msra.mxu0 %v4109_v43 }
 0x4b1   : > { %10981 = vmatmul.mubr.msk.f32.gmra.mxu0 %vm3352_vm3, %v13121_v12  ;;  %11021 = vmatprep.subr.mxu0 %v4108_v1 }
 0x4b2   : > { %11022 = vmatpush3.msra.mxu0 %v4108_v1  ;;  %10983 = vmatprep.mubr.msk.f32.mxu0 %vm3352_vm3, %v13124_v25 }
 0x4b3   : > { %11023 = vmatprep.subr.mxu0 %v4107_v46 }
 0x4b4   : > { %11024 = vmatpush3.msra.mxu0 %v4107_v46 }
 0x4b5   : > { %10984 = vmatmul.mubr.msk.f32.gmra.mxu0 %vm3352_vm3, %v13135_v21  ;;  %11025 = vmatprep.subr.mxu0 %v4106_v11 }
 0x4b6   : > { %11026 = vmatpush3.msra.mxu0 %v4106_v11  ;;  %10986 = vmatprep.mubr.msk.f32.mxu0 %vm3352_vm3, %v13138_v50 }
 0x4b7   : > { %11027 = vmatprep.subr.mxu0 %v4105_v10 }
 0x4b8   : > { %11028 = vmatpush3.msra.mxu0 %v4105_v10 }
 0x4b9   : > { %10987 = vmatmul.mubr.msk.f32.gmra.mxu0 %vm3352_vm3, %v13149_v30  ;;  %11029 = vmatprep.subr.mxu0 %v4104_v19 }
 0x4ba   : > { %11030 = vmatpush3.msra.mxu0 %v4104_v19  ;;  %11033 = vmatprep.mubr.msk.f32.mxu0 %vm3352_vm3, %v13037_v51 }
 0x4bb   : > { %11031 = vmatprep.subr.mxu0 %v4103_v57 }
 0x4bc   : > { %11032 = vmatpush3.msra.mxu0 %v4103_v57 }
 0x4bd   : > { %11034 = vmatmul.mubr.msk.f32.vlgmr.msra.gmra.mxu0 %vm3352_vm3, %v13109_v6  ;;  %11073 = vmatprep.subr.mxu0 %v4368_v13 }
 0x4be   : > { %11074 = vmatpush3.msra.mxu0 %v4368_v13  ;;  %11036 = vmatprep.mubr.msk.f32.mxu0 %vm3352_vm3, %v13113_v36 }
 0x4bf   : > { %11075 = vmatprep.subr.mxu0 %v4367_v62 }
 0x4c0   : > { %11076 = vmatpush3.msra.mxu0 %v4367_v62 }
 0x4c1   : > { %11037 = vmatmul.mubr.msk.f32.gmra.mxu0 %vm3352_vm3, %v13121_v12  ;;  %11077 = vmatprep.subr.mxu0 %v4366_v61 }
 0x4c2   : > { %11078 = vmatpush3.msra.mxu0 %v4366_v61  ;;  %11039 = vmatprep.mubr.msk.f32.mxu0 %vm3352_vm3, %v13124_v25 }
 0x4c3   : > { %11079 = vmatprep.subr.mxu0 %v4365_v54 }
 0x4c4   : > { %11080 = vmatpush3.msra.mxu0 %v4365_v54 }
 0x4c5   : > { %11040 = vmatmul.mubr.msk.f32.gmra.mxu0 %vm3352_vm3, %v13135_v21  ;;  %11081 = vmatprep.subr.mxu0 %v4364_v22 }
 0x4c6   : > { %11082 = vmatpush3.msra.mxu0 %v4364_v22  ;;  %11042 = vmatprep.mubr.msk.f32.mxu0 %vm3352_vm3, %v13138_v50 }
 0x4c7   : > { %11083 = vmatprep.subr.mxu0 %v4363_v47 }
 0x4c8   : > { %11084 = vmatpush3.msra.mxu0 %v4363_v47 }
 0x4c9   : > { %11043 = vmatmul.mubr.msk.f32.gmra.mxu0 %vm3352_vm3, %v13149_v30  ;;  %11085 = vmatprep.subr.mxu0 %v4362_v45 }
 0x4ca   : > { %11086 = vmatpush3.msra.mxu0 %v4362_v45  ;;  %11089 = vmatprep.mubr.msk.f32.mxu0 %vm3352_vm3, %v13037_v51 }
 0x4cb   : > { %11087 = vmatprep.subr.mxu0 %v4361_v33 }
 0x4cc   : > { %11088 = vmatpush3.msra.mxu0 %v4361_v33 }
 0x4cd   : > { %11090 = vmatmul.mubr.msk.f32.vlgmr.msra.gmra.mxu0 %vm3352_vm3, %v13109_v6  ;;  %11129 = vmatprep.subr.mxu0 %v14056_v31 }
 0x4ce   : > { %11092 = vmatprep.mubr.msk.f32.mxu0 %vm3352_vm3, %v13113_v36 }
 0x4d1   : > { %11093 = vmatmul.mubr.msk.f32.gmra.mxu0 %vm3352_vm3, %v13121_v12 }
 0x4d2   : > { %11095 = vmatprep.mubr.msk.f32.mxu0 %vm3352_vm3, %v13124_v25 }
 0x4d5   : > { %11096 = vmatmul.mubr.msk.f32.gmra.mxu0 %vm3352_vm3, %v13135_v21 }
 0x4d6   : > { %11098 = vmatprep.mubr.msk.f32.mxu0 %vm3352_vm3, %v13138_v50 }
 0x4d9   : > { %11099 = vmatmul.mubr.msk.f32.gmra.mxu0 %vm3352_vm3, %v13149_v30 }
 0x4da   : > { %11145 = vmatprep.mubr.msk.f32.mxu0 %vm11809_vm0, %v14056_v31 }
 0x53d   : > { %v10867_v27 = vpop.f32.mrf.mxu0 }
 0x53f   : > { %v3443_v18 = vpop.f32.mrf.mxu0 }
 0x540   : > { %10893 = vmatprep.mubr.msk.f32.mxu1 %vm3352_vm3, %v3443_v18 }
 0x541   : > { %v10870_v14 = vpop.f32.mrf.mxu0  ;;  %10894 = vmatmul.mubr.msk.f32.vlgmr.msra.gmra.mxu1 %vm3352_vm3, %v10867_v27 }
 0x542   : > { %10934 = vmatpush3.msra.mxu1 %v13049_v42 }
 0x543   : > { %v3453_v23 = vpop.f32.mrf.mxu0  ;;  %10935 = vmatprep.subr.mxu1 %v13052_v60 }
 0x544   : > { %10896 = vmatprep.mubr.msk.f32.mxu1 %vm3352_vm3, %v3453_v23  ;;  %10936 = vmatpush3.msra.mxu1 %v13052_v60 }
 0x545   : > { %v10873_v51 = vpop.f32.mrf.mxu0  ;;  %10897 = vmatmul.mubr.msk.f32.gmra.mxu1 %vm3352_vm3, %v10870_v14  ;;  %10937 = vmatprep.subr.mxu1 %v13057_v26 }
 0x546   : > { %10938 = vmatpush3.msra.mxu1 %v13057_v26 }
 0x547   : > { %v3463_v48 = vpop.f32.mrf.mxu0  ;;  %10939 = vmatprep.subr.mxu1 %v13062_v20 }
 0x548   : > { %10899 = vmatprep.mubr.msk.f32.mxu1 %vm3352_vm3, %v3463_v48  ;;  %10940 = vmatpush3.msra.mxu1 %v13062_v20 }
 0x549   : > { %v10876_v0 = vpop.f32.mrf.mxu0  ;;  %10900 = vmatmul.mubr.msk.f32.gmra.mxu1 %vm3352_vm3, %v10873_v51  ;;  %10941 = vmatprep.subr.mxu1 %v13067_v63 }
 0x54a   : > { %10942 = vmatpush3.msra.mxu1 %v13067_v63 }
 0x54b   : > { %v3473_v8 = vpop.f32.mrf.mxu0  ;;  %10943 = vmatprep.subr.mxu1 %v13074_v49 }
 0x54c   : > { %10902 = vmatprep.mubr.msk.f32.mxu1 %vm3352_vm3, %v3473_v8  ;;  %10944 = vmatpush3.msra.mxu1 %v13074_v49 }
 0x54d   : > { %10903 = vmatmul.mubr.msk.f32.gmra.mxu1 %vm3352_vm3, %v10876_v0  ;;  %10945 = vmatprep.subr.mxu1 %v13250_v15 }
 0x54e   : > { %10946 = vmatpush3.msra.mxu1 %v13250_v15 }
 0x54f   : > { %10947 = vmatprep.subr.mxu1 %v13259_v2 }
 0x550   : > { %10948 = vmatpush3.msra.mxu1 %v13259_v2 }
 0x551   : > { %10989 = vmatprep.subr.mxu1 %v13049_v42 }
 0x55d   : > { %v10923_v6 = vpop.f32.mrf.mxu0 }
 0x55f   : > { %v3677_v36 = vpop.f32.mrf.mxu0 }
 0x560   : > { %10949 = vmatprep.mubr.msk.f32.mxu1 %vm3352_vm3, %v3677_v36  ;;  %v3350_v36 = vld [vmem:[%s11873_s24 + $0x30] sm:$0xff] }
 0x561   : > { %v10926_v12 = vpop.f32.mrf.mxu0  ;;  %10950 = vmatmul.mubr.msk.f32.vlgmr.msra.gmra.mxu1 %vm3352_vm3, %v10923_v6  ;;  %v3351_v6 = vld [vmem:[%s11873_s24 + $0x38] sm:$0xf] }
 0x562   : > { %10990 = vmatpush3.msra.mxu1 %v13049_v42 }
 0x563   : > { %v3687_v25 = vpop.f32.mrf.mxu0  ;;  %10991 = vmatprep.subr.mxu1 %v13052_v60 }
 0x564   : > { %10952 = vmatprep.mubr.msk.f32.mxu1 %vm3352_vm3, %v3687_v25  ;;  %10992 = vmatpush3.msra.mxu1 %v13052_v60 }
 0x565   : > { %v10929_v21 = vpop.f32.mrf.mxu0  ;;  %10953 = vmatmul.mubr.msk.f32.gmra.mxu1 %vm3352_vm3, %v10926_v12  ;;  %10993 = vmatprep.subr.mxu1 %v13057_v26 }
 0x566   : > { %10994 = vmatpush3.msra.mxu1 %v13057_v26 }
 0x567   : > { %v3697_v50 = vpop.f32.mrf.mxu0  ;;  %10995 = vmatprep.subr.mxu1 %v13062_v20 }
 0x568   : > { %10955 = vmatprep.mubr.msk.f32.mxu1 %vm3352_vm3, %v3697_v50  ;;  %10996 = vmatpush3.msra.mxu1 %v13062_v20 }
 0x569   : > { %v10932_v30 = vpop.f32.mrf.mxu0  ;;  %10956 = vmatmul.mubr.msk.f32.gmra.mxu1 %vm3352_vm3, %v10929_v21  ;;  %10997 = vmatprep.subr.mxu1 %v13067_v63  ;;  %v3349_v21 = vld [vmem:[%s11873_s24 + $0x28] sm:$0xff] }
 0x56a   : > { %10998 = vmatpush3.msra.mxu1 %v13067_v63 }
 0x56b   : > { %v3707_v39 = vpop.f32.mrf.mxu0  ;;  %10999 = vmatprep.subr.mxu1 %v13074_v49 }
 0x56c   : > { %10958 = vmatprep.mubr.msk.f32.mxu1 %vm3352_vm3, %v3707_v39  ;;  %11000 = vmatpush3.msra.mxu1 %v13074_v49  ;;  %v3348_v39 = vld [vmem:[%s11873_s24 + $0x20] sm:$0xff] }
 0x56d   : > { %10959 = vmatmul.mubr.msk.f32.gmra.mxu1 %vm3352_vm3, %v10932_v30  ;;  %v10979_v16 = vpop.f32.mrf.mxu0  ;;  %11001 = vmatprep.subr.mxu1 %v13250_v15 }
 0x56e   : > { %11002 = vmatpush3.msra.mxu1 %v13250_v15 }
 0x56f   : > { %v3927_v34 = vpop.f32.mrf.mxu0  ;;  %11003 = vmatprep.subr.mxu1 %v13259_v2 }
 0x570   : > { %11004 = vmatpush3.msra.mxu1 %v13259_v2  ;;  %11005 = vmatprep.mubr.msk.f32.mxu1 %vm3352_vm3, %v3927_v34 }
 0x571   : > { %v10982_v44 = vpop.f32.mrf.mxu0  ;;  %11006 = vmatmul.mubr.msk.f32.vlgmr.msra.gmra.mxu1 %vm3352_vm3, %v10979_v16  ;;  %11045 = vmatprep.subr.mxu1 %v13049_v42 }
 0x572   : > { %11046 = vmatpush3.msra.mxu1 %v13049_v42 }
 0x573   : > { %v3937_v5 = vpop.f32.mrf.mxu0  ;;  %11047 = vmatprep.subr.mxu1 %v13052_v60 }
 0x574   : > { %11008 = vmatprep.mubr.msk.f32.mxu1 %vm3352_vm3, %v3937_v5  ;;  %11048 = vmatpush3.msra.mxu1 %v13052_v60 }
 0x575   : > { %v10985_v35 = vpop.f32.mrf.mxu0  ;;  %11009 = vmatmul.mubr.msk.f32.gmra.mxu1 %vm3352_vm3, %v10982_v44  ;;  %11049 = vmatprep.subr.mxu1 %v13057_v26  ;;  %v3347_v44 = vld [vmem:[%s11873_s24 + $0x18] sm:$0xff] }
 0x576   : > { %11050 = vmatpush3.msra.mxu1 %v13057_v26 }
 0x577   : > { %v3947_v55 = vpop.f32.mrf.mxu0  ;;  %11051 = vmatprep.subr.mxu1 %v13062_v20 }
 0x578   : > { %11011 = vmatprep.mubr.msk.f32.mxu1 %vm3352_vm3, %v3947_v55  ;;  %11052 = vmatpush3.msra.mxu1 %v13062_v20 }
 0x579   : > { %v10988_v38 = vpop.f32.mrf.mxu0  ;;  %11012 = vmatmul.mubr.msk.f32.gmra.mxu1 %vm3352_vm3, %v10985_v35  ;;  %11053 = vmatprep.subr.mxu1 %v13067_v63  ;;  %v3346_v35 = vld [vmem:[%s11873_s24 + $0x10] sm:$0xff] }
 0x57a   : > { %11054 = vmatpush3.msra.mxu1 %v13067_v63 }
 0x57b   : > { %v3957_v17 = vpop.f32.mrf.mxu0  ;;  %11055 = vmatprep.subr.mxu1 %v13074_v49 }
 0x57c   : > { %11014 = vmatprep.mubr.msk.f32.mxu1 %vm3352_vm3, %v3957_v17  ;;  %11056 = vmatpush3.msra.mxu1 %v13074_v49 }
 0x57d   : > { %11015 = vmatmul.mubr.msk.f32.gmra.mxu1 %vm3352_vm3, %v10988_v38  ;;  %v11035_v43 = vpop.f32.mrf.mxu0  ;;  %11057 = vmatprep.subr.mxu1 %v13250_v15  ;;  %v3345_v38 = vld [vmem:[%s11873_s24 + $0x8] sm:$0xff] }
 0x57e   : > { %11058 = vmatpush3.msra.mxu1 %v13250_v15 }
 0x57f   : > { %v4177_v1 = vpop.f32.mrf.mxu0  ;;  %11059 = vmatprep.subr.mxu1 %v13259_v2 }
 0x580   : > { %11060 = vmatpush3.msra.mxu1 %v13259_v2  ;;  %11061 = vmatprep.mubr.msk.f32.mxu1 %vm3352_vm3, %v4177_v1 }
 0x581   : > { %v11038_v46 = vpop.f32.mrf.mxu0  ;;  %11062 = vmatmul.mubr.msk.f32.vlgmr.msra.gmra.mxu1 %vm3352_vm3, %v11035_v43  ;;  %11101 = vmatprep.subr.mxu1 %v13049_v42 }
 0x582   : > { %11102 = vmatpush3.msra.mxu1 %v13049_v42 }
 0x583   : > { %v4187_v11 = vpop.f32.mrf.mxu0  ;;  %11103 = vmatprep.subr.mxu1 %v13052_v60 }
 0x584   : > { %11064 = vmatprep.mubr.msk.f32.mxu1 %vm3352_vm3, %v4187_v11  ;;  %11104 = vmatpush3.msra.mxu1 %v13052_v60 }
 0x585   : > { %v11041_v10 = vpop.f32.mrf.mxu0  ;;  %11065 = vmatmul.mubr.msk.f32.gmra.mxu1 %vm3352_vm3, %v11038_v46  ;;  %11105 = vmatprep.subr.mxu1 %v13057_v26 }
 0x586   : > { %11106 = vmatpush3.msra.mxu1 %v13057_v26 }
 0x587   : > { %v4197_v19 = vpop.f32.mrf.mxu0  ;;  %11107 = vmatprep.subr.mxu1 %v13062_v20 }
 0x588   : > { %11067 = vmatprep.mubr.msk.f32.mxu1 %vm3352_vm3, %v4197_v19  ;;  %11108 = vmatpush3.msra.mxu1 %v13062_v20 }
 0x589   : > { %v11044_v42 = vpop.f32.mrf.mxu0  ;;  %11068 = vmatmul.mubr.msk.f32.gmra.mxu1 %vm3352_vm3, %v11041_v10  ;;  %11109 = vmatprep.subr.mxu1 %v13067_v63 }
 0x58a   : > { %11110 = vmatpush3.msra.mxu1 %v13067_v63 }
 0x58b   : > { %v4207_v60 = vpop.f32.mrf.mxu0  ;;  %11111 = vmatprep.subr.mxu1 %v13074_v49 }
 0x58c   : > { %11070 = vmatprep.mubr.msk.f32.mxu1 %vm3352_vm3, %v4207_v60  ;;  %11112 = vmatpush3.msra.mxu1 %v13074_v49 }
 0x58d   : > { %11071 = vmatmul.mubr.msk.f32.gmra.mxu1 %vm3352_vm3, %v11044_v42  ;;  %v11091_v26 = vpop.f32.mrf.mxu0  ;;  %11113 = vmatprep.subr.mxu1 %v13250_v15 }
 0x58e   : > { %11114 = vmatpush3.msra.mxu1 %v13250_v15 }
 0x58f   : > { %v4435_v20 = vpop.f32.mrf.mxu0  ;;  %11115 = vmatprep.subr.mxu1 %v13259_v2 }
 0x590   : > { %11116 = vmatpush3.msra.mxu1 %v13259_v2  ;;  %11117 = vmatprep.mubr.msk.f32.mxu1 %vm3352_vm3, %v4435_v20 }
 0x591   : > { %v11094_v63 = vpop.f32.mrf.mxu0  ;;  %11118 = vmatmul.mubr.msk.f32.vlgmr.msra.gmra.mxu1 %vm3352_vm3, %v11091_v26  ;;  %11148 = vmatprep.subr.mxu1 %v14056_v31 }
 0x592   : > { %11149 = vmatpush3.msk.msra.mxu1 %vm2730_vm1, %v3351_v6 }
 0x593   : > { %v4445_v49 = vpop.f32.mrf.mxu0  ;;  %11150 = vmatprep.subr.mxu1 %v14056_v31 }
 0x594   : > { %11120 = vmatprep.mubr.msk.f32.mxu1 %vm3352_vm3, %v4445_v49  ;;  %11151 = vmatpush3.msra.mxu1 %v3350_v36 }
 0x595   : > { %v11097_v57 = vpop.f32.mrf.mxu0  ;;  %11121 = vmatmul.mubr.msk.f32.gmra.mxu1 %vm3352_vm3, %v11094_v63  ;;  %11152 = vmatprep.subr.mxu1 %v14056_v31 }
 0x596   : > { %11153 = vmatpush3.msra.mxu1 %v3349_v21 }
 0x597   : > { %v4455_v13 = vpop.f32.mrf.mxu0  ;;  %11154 = vmatprep.subr.mxu1 %v14056_v31 }
 0x598   : > { %11123 = vmatprep.mubr.msk.f32.mxu1 %vm3352_vm3, %v4455_v13  ;;  %11155 = vmatpush3.msra.mxu1 %v3348_v39 }
 0x599   : > { %v11100_v62 = vpop.f32.mrf.mxu0  ;;  %11124 = vmatmul.mubr.msk.f32.gmra.mxu1 %vm3352_vm3, %v11097_v57  ;;  %11156 = vmatprep.subr.mxu1 %v14056_v31 }
 0x59a   : > { %11157 = vmatpush3.msra.mxu1 %v3347_v44 }
 0x59b   : > { %v4465_v15 = vpop.f32.mrf.mxu0  ;;  %11158 = vmatprep.subr.mxu1 %v14056_v31 }
 0x59c   : > { %11126 = vmatprep.mubr.msk.f32.mxu1 %vm3352_vm3, %v4465_v15  ;;  %11159 = vmatpush3.msra.mxu1 %v3346_v35 }
 0x59d   : > { %11127 = vmatmul.mubr.msk.f32.gmra.mxu1 %vm3352_vm3, %v11100_v62  ;;  %11160 = vmatprep.subr.mxu1 %v14056_v31 }
 0x59e   : > { %11164 = vmatprep.mubr.msk.f32.mxu1 %vm11809_vm0, %v14056_v31  ;;  %11161 = vmatpush3.msra.mxu1 %v3345_v38 }
 0x59f   : > { %11162 = vmatprep.subr.mxu1 %v14056_v31 }
 0x601   : > { %v10895_v61 = vpop.f32.mrf.mxu1 }
 0x602   : > { %v4346_v6 = vmul.f32 %v10895_v61, %v10895_v61 }
 0x603   : > { %v3572_v2 = vpop.f32.mrf.mxu1 }
 0x604   : > { %v4345_v39 = vmul.f32 %v3572_v2, %v3572_v2 }
 0x605   : > { %v13409_v54 = vpop.f32.mrf.mxu1 }
 0x606   : > { %v4348_v1 = vmul.f32 %v13409_v54, %v13409_v54 }
 0x607   : > { %v13411_v22 = vpop.f32.mrf.mxu1 }
 0x608   : > { %v4347_v37 = vmul.f32 %v13411_v22, %v13411_v22 }
 0x609   : > { %v13413_v47 = vpop.f32.mrf.mxu1 }
 0x60b   : > { %v13415_v45 = vpop.f32.mrf.mxu1 }
 0x60d   : > { %v13417_v33 = vpop.f32.mrf.mxu1 }
 0x60f   : > { %v13419_v27 = vpop.f32.mrf.mxu1 }
 0x621   : > { %v10951_v18 = vpop.f32.mrf.mxu1 }
 0x622   : > { %v13421_v14 = vmul.f32 %v10951_v18, %v10895_v61  ;;  %v4604_v36 = vmul.f32 %v10951_v18, %v10951_v18 }
 0x623   : > { %v3806_v23 = vpop.f32.mrf.mxu1 }
 0x624   : > { %v13423_v51 = vmul.f32 %v3806_v23, %v3572_v2  ;;  %v4603_v44 = vmul.f32 %v3806_v23, %v3806_v23  ;;  %v4350_v23 = vmul.f32 %v13413_v47, %v13413_v47 }
 0x625   : > { %v10954_v48 = vpop.f32.mrf.mxu1 }
 0x626   : > { %v13426_v0 = vmul.f32 %v10954_v48, %v13409_v54  ;;  %v4606_v41 = vmul.f32 %v10954_v48, %v10954_v48 }
 0x627   : > { %v3816_v8 = vpop.f32.mrf.mxu1 }
 0x628   : > { %v13431_v12 = vmul.f32 %v3816_v8, %v13411_v22  ;;  %v4605_v58 = vmul.f32 %v3816_v8, %v3816_v8  ;;  %v4349_v22 = vmul.f32 %v13415_v45, %v13415_v45 }
 0x629   : > { %v13434_v25 = vpop.f32.mrf.mxu1 }
 0x62a   : > { %v13440_v50 = vmul.f32 %v13434_v25, %v13413_v47  ;;  %v4608_v54 = vmul.f32 %v13434_v25, %v13434_v25 }
 0x62b   : > { %v13442_v30 = vpop.f32.mrf.mxu1 }
 0x62c   : > { %v13448_v16 = vmul.f32 %v13442_v30, %v13415_v45 }
 0x62d   : > { %v13450_v34 = vpop.f32.mrf.mxu1 }
 0x62f   : > { %v13454_v5 = vpop.f32.mrf.mxu1 }
 0x631   : > { %v13458_v55 = vpop.f32.mrf.mxu1 }
 0x633   : > { %v13464_v43 = vpop.f32.mrf.mxu1 }
 0x635   : > { %v13469_v46 = vpop.f32.mrf.mxu1 }
 0x637   : > { %v13472_v11 = vpop.f32.mrf.mxu1 }
 0x639   : > { %v13474_v10 = vpop.f32.mrf.mxu1 }
 0x63b   : > { %v13476_v19 = vpop.f32.mrf.mxu1 }
 0x63d   : > { %v13478_v42 = vpop.f32.mrf.mxu1 }
 0x63f   : > { %v13480_v60 = vpop.f32.mrf.mxu1 }
 0x641   : > { %v11063_v26 = vpop.f32.mrf.mxu1 }
 0x642   : > { %v4354_v35 = vsub.f32 %v11063_v26, %v4346_v6 }
 0x643   : > { %v4306_v20 = vpop.f32.mrf.mxu1 }
 0x644   : > { %v4353_v32 = vsub.f32 %v4306_v20, %v4345_v39 }
 0x645   : > { %v11066_v63 = vpop.f32.mrf.mxu1 }
 0x646   : > { %v4356_v61 = vsub.f32 %v11066_v63, %v4348_v1  ;;  %v4609_v63 = vmul.f32 %v13454_v5, %v13454_v5 }
 0x647   : > { %v4316_v49 = vpop.f32.mrf.mxu1 }
 0x648   : > { %v4355_v26 = vsub.f32 %v4316_v49, %v4347_v37  ;;  %v4352_v37 = vmul.f32 %v13417_v33, %v13417_v33 }
 0x649   : > { %v11069_v57 = vpop.f32.mrf.mxu1 }
 0x64b   : > { %v4326_v13 = vpop.f32.mrf.mxu1 }
 0x64c   : > { %v4357_v8 = vsub.f32 %v4326_v13, %v4349_v22  ;;  %v14086_v13 = vsub.f32 %v13458_v55, %v13421_v14  ;;  %v3851_v22 = vmul.f32 %v13454_v5, %v13419_v27 }
 0x64d   : > { %v11072_v62 = vpop.f32.mrf.mxu1 }
 0x64e   : > { %v4360_v49 = vsub.f32 %v11072_v62, %v4352_v37  ;;  %v14087_v62 = vsub.f32 %v13464_v43, %v13423_v51  ;;  %v4099_v43 = vsub.f32 %v13476_v19, %v13448_v16 }
 0x64f   : > { %v13482_v15 = vpop.f32.mrf.mxu1 }
 0x651   : > { %v11119_v21 = vpop.f32.mrf.mxu1 }
 0x652   : > { %v4612_v38 = vsub.f32 %v11119_v21, %v4604_v36 }
 0x653   : > { %v4564_v17 = vpop.f32.mrf.mxu1 }
 0x654   : > { %v4620_v59 = vadd.f32 %v4612_v38, %v4354_v35  ;;  %v4611_v53 = vsub.f32 %v4564_v17, %v4603_v44  ;;  %v4628_v44 = vmul.f32 2.0, %v14086_v13  ;;  %v4098_v35 = vsub.f32 %v13469_v46, %v13426_v0  ;;  %v3344_v13 = vld [vmem:[%s11873_s24] sm:$0xff] }
 0x655   : > { %v11122_v28 = vpop.f32.mrf.mxu1  ;;  %v4100_v0 = vsub.f32 %v13474_v10, %v13440_v50  ;;  %11163 = vmatpush3.msra.mxu1 %v3344_v13 }
 0x656   : > { %v4644_v18 = vadd.f32 0.0009, %v4620_v59  ;;  %v4619_v7 = vadd.f32 %v4611_v53, %v4353_v32  ;;  %v4614_v2 = vsub.f32 %v11122_v28, %v4606_v41  ;;  %v4607_v59 = vmul.f32 %v13442_v30, %v13442_v30 }
 0x657   : > { %v4574_v48 = vpop.f32.mrf.mxu1  ;;  %v4358_v32 = vsub.f32 %v11069_v57, %v4350_v23  ;;  %v4351_v30 = vmul.f32 %v13419_v27, %v13419_v27 }
 0x658   : > { %11706 = vrcp.f32 %v4644_v18  ;;  %v4643_v20 = vadd.f32 0.0009, %v4619_v7  ;;  %v4622_v17 = vadd.f32 %v4614_v2, %v4356_v61  ;;  %v4613_v6 = vsub.f32 %v4574_v48, %v4605_v58 }
 0x659   : > { %v11125_v41 = vpop.f32.mrf.mxu1  ;;  %v4610_v7 = vmul.f32 %v13450_v34, %v13450_v34  ;;  %v4359_v38 = vsub.f32 %v13482_v15, %v4351_v30  ;;  %v4636_v48 = vadd.f32 0.0009, %v4628_v44  ;;  %v4834_v44 = vld [vmem:[%s11883_s6 + $0x38] sm:$0xff] }
 0x65a   : > { %11708 = vrcp.f32 %v4643_v20  ;;  %v4646_v53 = vadd.f32 0.0009, %v4622_v17  ;;  %v4621_v28 = vadd.f32 %v4613_v6, %v4355_v26  ;;  %v4616_v47 = vsub.f32 %v11125_v41, %v4608_v54  ;;  %11189 = vmatprep.subr.mxu1 %v4834_v44 }
 0x65b   : > { %v4584_v58 = vpop.f32.mrf.mxu1  ;;  %v4627_v54 = vmul.f32 2.0, %v14087_v62  ;;  %v4097_v26 = vsub.f32 %v13472_v11, %v13431_v12  ;;  %v4630_v20 = vmul.f32 2.0, %v4098_v35  ;;  %v3852_v17 = vmul.f32 %v13450_v34, %v13417_v33  ;;  %v4829_v62 = vld [vmem:[%s11883_s6 + $0x10] sm:$0xff] }
 0x65c   : > { %11710 = vrcp.f32 %v4646_v53  ;;  %v4645_v25 = vadd.f32 0.0009, %v4621_v28  ;;  %v4624_v45 = vadd.f32 %v4616_v47, %v4358_v32  ;;  %v4615_v1 = vsub.f32 %v4584_v58, %v4607_v59 }
 0x65d   : > { %v11128_v57 = vpop.f32.mrf.mxu1  ;;  %v4635_v6 = vadd.f32 0.0009, %v4627_v54  ;;  %v4629_v51 = vmul.f32 2.0, %v4097_v26  ;;  %v4638_v59 = vadd.f32 0.0009, %v4630_v20  ;;  %v4632_v32 = vmul.f32 2.0, %v4100_v0 }
 0x65e   : > { %11712 = vrcp.f32 %v4645_v25  ;;  %v4648_v36 = vadd.f32 0.0009, %v4624_v45  ;;  %v4623_v21 = vadd.f32 %v4615_v1, %v4357_v8  ;;  %v4618_v39 = vsub.f32 %v11128_v57, %v4610_v7  ;;  %v4823_v57 = vld [vmem:[%s11878_s30] sm:$0xff]  ;;  %v4828_v54 = vld [vmem:[%s11883_s6 + $0x8] sm:$0xff] }
 0x65f   : > { %v4594_v61 = vpop.f32.mrf.mxu1  ;;  %v4102_v50 = vsub.f32 %v13478_v42, %v3852_v17  ;;  %v4637_v53 = vadd.f32 0.0009, %v4629_v51  ;;  %v4631_v28 = vmul.f32 2.0, %v4099_v43  ;;  %v4101_v33 = vsub.f32 %v13480_v60, %v3851_v22  ;;  %v4827_v26 = vld [vmem:[%s11883_s6] sm:$0xff]  ;;  %v13603_v51 = vld [vmem:[%s14097_s2 + $0x18] sm:$0xff]  ;;  %v13606_v43 = vld [vmem:[%s14097_s2 + $0x10] sm:$0xff] }
 0x660   : > { %11714 = vrcp.f32 %v4648_v36  ;;  %v4647_v18 = vadd.f32 0.0009, %v4623_v21  ;;  %v4626_v2 = vadd.f32 %v4618_v39, %v4360_v49  ;;  %v4617_v23 = vsub.f32 %v4594_v61, %v4609_v63  ;;  %v3343_v49 = vld [vmem:[%s11868_s19] sm:$0x3]  ;;  %v14093_v36 = vld [vmem:[#allocation20_spill] sm:$0xff]  ;;  %v14095_v39 = vld [vmem:[#allocation17_spill] sm:$0xff] }
 0x661   : > { %v4640_v37 = vadd.f32 0.0009, %v4632_v32  ;;  %v4634_v16 = vmul.f32 2.0, %v4102_v50  ;;  %v4639_v8 = vadd.f32 0.0009, %v4631_v28  ;;  %v4633_v58 = vmul.f32 2.0, %v4101_v33 }
 0x662   : > { %11716 = vrcp.f32 %v4647_v18  ;;  %v4650_v14 = vadd.f32 0.0009, %v4626_v2  ;;  %v4625_v55 = vadd.f32 %v4617_v23, %v4359_v38  ;;  %v14094_v21 = vld [vmem:[#allocation32_spill] sm:$0xff]  ;;  %v4833_v38 = vld [vmem:[%s11883_s6 + $0x30] sm:$0xff]  ;;  %v4831_v2 = vld [vmem:[%s11883_s6 + $0x20] sm:$0xff] }
 0x663   : > { %v4642_v5 = vadd.f32 0.0009, %v4634_v16  ;;  %v4641_v42 = vadd.f32 0.0009, %v4633_v58  ;;  %v4832_v18 = vld [vmem:[%s11883_s6 + $0x28] sm:$0xff]  ;;  %v4830_v23 = vld [vmem:[%s11883_s6 + $0x18] sm:$0xff] }
 0x664   : > { %11718 = vrcp.f32 %v4650_v14  ;;  %v4649_v46 = vadd.f32 0.0009, %v4625_v55  ;;  %v13641_v28 = vld [vmem:[%s14096_s1 + $0x18] sm:$0xf] }
 0x665   : > { %v11707_v15 = vpop.eup %11706 }
 0x666   : > { %11720 = vrcp.f32 %v4649_v46  ;;  %v4654_v12 = vmul.f32 %v11707_v15, %v4636_v48 }
 0x667   : > { %v11709_v11 = vpop.eup %11708 }
 0x668   : > { %v4652_v10 = vmul.f32 %v11709_v11, %v4635_v6  ;;  %v13598_v6 = vld [vmem:[%s14096_s1] sm:$0xff] }
 0x669   : > { %v11711_v41 = vpop.eup %11710 }
 0x66a   : > { %v4658_v34 = vmul.f32 %v11711_v41, %v4638_v59  ;;  %v13629_v41 = vld [vmem:[%s14096_s1 + $0x8] sm:$0xff] }
 0x66b   : > { %v11713_v47 = vpop.eup %11712 }
 0x66c   : > { %v4656_v19 = vmul.f32 %v11713_v47, %v4637_v53  ;;  %v13633_v53 = vld [vmem:[%s14096_s1 + $0x10] sm:$0xff] }
 0x66d   : > { %v11715_v7 = vpop.eup %11714 }
 0x66e   : > { %v4662_v25 = vmul.f32 %v11715_v7, %v4640_v37 }
 0x66f   : > { %v11717_v27 = vpop.eup %11716 }
 0x670   : > { %v4660_v45 = vmul.f32 %v11717_v27, %v4639_v8 }
 0x671   : > { %v11719_v1 = vpop.eup %11718 }
 0x672   : > { %v4666_v30 = vmul.f32 %v11719_v1, %v4642_v5 }
 0x673   : > { %v11721_v63 = vpop.eup %11720 }
 0x674   : > { %11130 = vmatpush3.msk.msra.mxu0 %vm2730_vm1, %v4666_v30  ;;  %v4664_v60 = vmul.f32 %v11721_v63, %v4641_v42  ;;  %v13721_v63 = vld [vmem:[%s14097_s2 + $0x8] sm:$0xff] }
 0x675   : > { %11131 = vmatprep.subr.mxu0 %v14056_v31 }
 0x676   : > { %11132 = vmatpush3.msra.mxu0 %v4664_v60  ;;  %v13726_v60 = vld [vmem:[%s14097_s2] sm:$0xff] }
 0x677   : > { %11133 = vmatprep.subr.mxu0 %v14056_v31 }
 0x678   : > { %11134 = vmatpush3.msra.mxu0 %v4662_v25 }
 0x679   : > { %11135 = vmatprep.subr.mxu0 %v14056_v31 }
 0x67a   : > { %11136 = vmatpush3.msra.mxu0 %v4660_v45 }
 0x67b   : > { %11137 = vmatprep.subr.mxu0 %v14056_v31 }
 0x67c   : > { %11138 = vmatpush3.msra.mxu0 %v4658_v34 }
 0x67d   : > { %11139 = vmatprep.subr.mxu0 %v14056_v31 }
 0x67e   : > { %11140 = vmatpush3.msra.mxu0 %v4656_v19 }
 0x67f   : > { %11141 = vmatprep.subr.mxu0 %v14056_v31 }
 0x680   : > { %11142 = vmatpush3.msra.mxu0 %v4654_v12 }
 0x681   : > { %11143 = vmatprep.subr.mxu0 %v14056_v31 }
 0x682   : > { %11144 = vmatpush3.msra.mxu0 %v4652_v10 }
 0x683   : > { %11146 = vmatmul.mubr.msk.f32.vlgmr.msra.gmra.mxu0 %vm4667_vm5, %v3343_v49  ;;  %11167 = vmatprep.subr.mxu0 %v13090_v40 }
 0x684   : > { %11168 = vmatpush3.msra.mxu0 %v13090_v40  ;;  %11183 = vmatprep.mubr.msk.f32.mxu0 %vm3352_vm3, %v4823_v57  ;;  %v4824_v40 = vld [vmem:[%s11878_s30 + $0x8] sm:$0xff] }
 0x685   : > { %11169 = vmatprep.subr.mxu0 %v13093_v9 }
 0x686   : > { %11170 = vmatpush3.msra.mxu0 %v13093_v9  ;;  %v14092_v9 = vld [vmem:[#allocation28_spill] sm:$0xff] }
 0x687   : > { %11171 = vmatprep.subr.mxu0 %v13086_v56 }
 0x688   : > { %11172 = vmatpush3.msra.mxu0 %v13086_v56  ;;  %v4825_v56 = vld [vmem:[%s11878_s30 + $0x10] sm:$0xff] }
 0x689   : > { %11173 = vmatprep.subr.mxu0 %v13088_v29 }
 0x68a   : > { %11174 = vmatpush3.msra.mxu0 %v13088_v29  ;;  %v14088_v29 = vld [vmem:[#allocation31_spill] sm:$0xff] }
 0x68b   : > { %11175 = vmatprep.subr.mxu0 %v13080_v24 }
 0x68c   : > { %11176 = vmatpush3.msra.mxu0 %v13080_v24  ;;  %v4826_v24 = vld [vmem:[%s11878_s30 + $0x18] sm:$0xff] }
 0x68d   : > { %11177 = vmatprep.subr.mxu0 %v13084_v52 }
 0x68e   : > { %11178 = vmatpush3.msra.mxu0 %v13084_v52  ;;  %v14089_v52 = vld [vmem:[#allocation16_spill] sm:$0xff] }
 0x68f   : > { %11179 = vmatprep.subr.mxu0 %v13069_v4 }
 0x690   : > { %11180 = vmatpush3.msra.mxu0 %v13069_v4  ;;  %v14090_v4 = vld [vmem:[#allocation19_spill] sm:$0xff] }
 0x691   : > { %11181 = vmatprep.subr.mxu0 %v13076_v3 }
 0x692   : > { %11182 = vmatpush3.msra.mxu0 %v13076_v3  ;;  %v14091_v3 = vld [vmem:[#allocation27_spill] sm:$0xff] }
 0x693   : > { %11184 = vmatmul.mubr.msk.f32.vlgmr.msra.gmra.mxu0 %vm3352_vm3, %v4824_v40  ;;  %11211 = vmatprep.subr.mxu0 %v14088_v29 }
 0x694   : > { %11212 = vmatpush3.msra.mxu0 %v14088_v29  ;;  %11186 = vmatprep.mubr.msk.f32.mxu0 %vm3352_vm3, %v4825_v56 }
 0x695   : > { %11213 = vmatprep.subr.mxu0 %v14089_v52 }
 0x696   : > { %11214 = vmatpush3.msra.mxu0 %v14089_v52 }
 0x697   : > { %11187 = vmatmul.mubr.msk.f32.gmra.mxu0 %vm3352_vm3, %v4826_v24  ;;  %11215 = vmatprep.subr.mxu0 %v14090_v4 }
 0x698   : > { %11216 = vmatpush3.msra.mxu0 %v14090_v4  ;;  %11227 = vmatprep.mubr.msk.f32.mxu0 %vm3352_vm3, %v4823_v57 }
 0x699   : > { %11217 = vmatprep.subr.mxu0 %v14091_v3 }
 0x69a   : > { %11218 = vmatpush3.msra.mxu0 %v14091_v3 }
 0x69b   : > { %11219 = vmatprep.subr.mxu0 %v14092_v9 }
 0x69c   : > { %11220 = vmatpush3.msra.mxu0 %v14092_v9 }
 0x69d   : > { %11221 = vmatprep.subr.mxu0 %v14093_v36 }
 0x69e   : > { %11222 = vmatpush3.msra.mxu0 %v14093_v36 }
 0x69f   : > { %11223 = vmatprep.subr.mxu0 %v14094_v21 }
 0x6a0   : > { %11224 = vmatpush3.msra.mxu0 %v14094_v21 }
 0x6a1   : > { %11225 = vmatprep.subr.mxu0 %v14095_v39 }
 0x6a2   : > { %11226 = vmatpush3.msra.mxu0 %v14095_v39 }
 0x6a3   : > { %11228 = vmatmul.mubr.msk.f32.vlgmr.msra.gmra.mxu0 %vm3352_vm3, %v4824_v40 }
 0x6a4   : > { %11230 = vmatprep.mubr.msk.f32.mxu0 %vm3352_vm3, %v4825_v56 }
 0x6a7   : > { %11231 = vmatmul.mubr.msk.f32.gmra.mxu0 %vm3352_vm3, %v4826_v24 }
 0x6a8   : > { %11263 = vmatprep.mubr.msk.f32.mxu0 %vm5224_vm6, %v13598_v6 }
 0x743   : > { %v4740_v35 = vpop.f32.mrf.mxu0 }
 0x744   : > { %11165 = vmatmul.mubr.msk.f32.vlgmr.msra.gmra.mxu1 %vm4667_vm5, %v4740_v35 }
 0x745   : > { %v11147_v61 = vpop.f32.mrf.mxu0  ;;  %11190 = vmatpush3.msra.mxu1 %v4834_v44 }
 0x746   : > { %11191 = vmatprep.subr.mxu1 %v4833_v38 }
 0x747   : > { %11192 = vmatpush3.msra.mxu1 %v4833_v38 }
 0x748   : > { %11193 = vmatprep.subr.mxu1 %v4832_v18 }
 0x749   : > { %11194 = vmatpush3.msra.mxu1 %v4832_v18 }
 0x74a   : > { %11195 = vmatprep.subr.mxu1 %v4831_v2 }
 0x74b   : > { %11196 = vmatpush3.msra.mxu1 %v4831_v2 }
 0x74c   : > { %11197 = vmatprep.subr.mxu1 %v4830_v23 }
 0x74d   : > { %11198 = vmatpush3.msra.mxu1 %v4830_v23 }
 0x74e   : > { %11199 = vmatprep.subr.mxu1 %v4829_v62 }
 0x74f   : > { %11200 = vmatpush3.msra.mxu1 %v4829_v62 }
 0x750   : > { %11201 = vmatprep.subr.mxu1 %v4828_v54 }
 0x751   : > { %11202 = vmatpush3.msra.mxu1 %v4828_v54 }
 0x752   : > { %11203 = vmatprep.subr.mxu1 %v4827_v26 }
 0x753   : > { %v11185_v14 = vpop.f32.mrf.mxu0  ;;  %11204 = vmatpush3.msra.mxu1 %v4827_v26 }
 0x754   : > { %11233 = vmatprep.subr.mxu1 %v4834_v44 }
 0x755   : > { %v4913_v55 = vpop.f32.mrf.mxu0 }
 0x756   : > { %11205 = vmatprep.mubr.msk.f32.mxu1 %vm3352_vm3, %v4913_v55 }
 0x757   : > { %v11188_v48 = vpop.f32.mrf.mxu0  ;;  %11206 = vmatmul.mubr.msk.f32.vlgmr.msra.gmra.mxu1 %vm3352_vm3, %v11185_v14 }
 0x758   : > { %11234 = vmatpush3.msra.mxu1 %v4834_v44 }
 0x759   : > { %v4923_v20 = vpop.f32.mrf.mxu0  ;;  %11235 = vmatprep.subr.mxu1 %v4833_v38 }
 0x75a   : > { %11208 = vmatprep.mubr.msk.f32.mxu1 %vm3352_vm3, %v4923_v20  ;;  %11236 = vmatpush3.msra.mxu1 %v4833_v38 }
 0x75b   : > { %11209 = vmatmul.mubr.msk.f32.gmra.mxu1 %vm3352_vm3, %v11188_v48  ;;  %11237 = vmatprep.subr.mxu1 %v4832_v18 }
 0x75c   : > { %11238 = vmatpush3.msra.mxu1 %v4832_v18 }
 0x75d   : > { %11239 = vmatprep.subr.mxu1 %v4831_v2 }
 0x75e   : > { %11240 = vmatpush3.msra.mxu1 %v4831_v2 }
 0x75f   : > { %11241 = vmatprep.subr.mxu1 %v4830_v23 }
 0x760   : > { %11242 = vmatpush3.msra.mxu1 %v4830_v23  ;;  %v5223_v23 = vld [vmem:[%s14098_s7 + $0x18] sm:$0xf] }
 0x761   : > { %11243 = vmatprep.subr.mxu1 %v4829_v62 }
 0x762   : > { %11244 = vmatpush3.msra.mxu1 %v4829_v62  ;;  %v5222_v62 = vld [vmem:[%s14098_s7 + $0x10] sm:$0xff] }
 0x763   : > { %v11229_v0 = vpop.f32.mrf.mxu0  ;;  %11245 = vmatprep.subr.mxu1 %v4828_v54 }
 0x764   : > { %11246 = vmatpush3.msra.mxu1 %v4828_v54  ;;  %v5221_v54 = vld [vmem:[%s14098_s7 + $0x8] sm:$0xff] }
 0x765   : > { %v5095_v46 = vpop.f32.mrf.mxu0  ;;  %11247 = vmatprep.subr.mxu1 %v4827_v26 }
 0x766   : > { %11248 = vmatpush3.msra.mxu1 %v4827_v26  ;;  %11249 = vmatprep.mubr.msk.f32.mxu1 %vm3352_vm3, %v5095_v46 }
 0x767   : > { %v11232_v15 = vpop.f32.mrf.mxu0  ;;  %11250 = vmatmul.mubr.msk.f32.vlgmr.msra.gmra.mxu1 %vm3352_vm3, %v11229_v0  ;;  %11269 = vmatprep.subr.mxu1 %v13603_v51 }
 0x768   : > { %11270 = vmatpush3.msra.mxu1 %v13603_v51 }
 0x769   : > { %v5105_v17 = vpop.f32.mrf.mxu0  ;;  %11271 = vmatprep.subr.mxu1 %v13606_v43 }
 0x76a   : > { %11252 = vmatprep.mubr.msk.f32.mxu1 %vm3352_vm3, %v5105_v17  ;;  %11272 = vmatpush3.msra.mxu1 %v13606_v43 }
 0x76b   : > { %11253 = vmatmul.mubr.msk.f32.gmra.mxu1 %vm3352_vm3, %v11232_v15  ;;  %11273 = vmatprep.subr.mxu1 %v13721_v63 }
 0x76c   : > { %11274 = vmatpush3.msra.mxu1 %v13721_v63 }
 0x76d   : > { %11275 = vmatprep.subr.mxu1 %v13726_v60 }
 0x76e   : > { %11276 = vmatpush3.msra.mxu1 %v13726_v60 }
 0x76f   : > { %11297 = vmatprep.subr.mxu1 %v13603_v51 }
 0x804   : > { %v4816_v12 = vpop.f32.mrf.mxu1 }
 0x805   : > { %v4820_v11 = vmax.f32 %v4816_v12, 0.0 }
 0x806   : > { %v11166_v22 = vpop.f32.mrf.mxu1 }
 0x807   : > { %9055 = vst.msk [vmem:[%s13044_s28 + $0x2] sm:$0x3] %vm2881_vm4, %v4820_v11 }
 0x817   : > { %v13614_v59 = vpop.f32.mrf.mxu1 }
 0x818   : > { %v5796_v27 = vmul.f32 %v13614_v59, %v13614_v59 }
 0x819   : > { %v13616_v32 = vpop.f32.mrf.mxu1 }
 0x81a   : > { %v5795_v5 = vmul.f32 %v13616_v32, %v13616_v32 }
 0x81b   : > { %v13618_v50 = vpop.f32.mrf.mxu1 }
 0x81c   : > { %11255 = vmatprep.subr.mxu0 %v13618_v50  ;;  %v5798_v58 = vmul.f32 %v13618_v50, %v13618_v50 }
 0x81d   : > { %v13621_v10 = vpop.f32.mrf.mxu1  ;;  %11256 = vmatpush3.msra.mxu0 %v13618_v50 }
 0x81e   : > { %11257 = vmatprep.subr.mxu0 %v13621_v10  ;;  %v5797_v25 = vmul.f32 %v13621_v10, %v13621_v10 }
 0x81f   : > { %11258 = vmatpush3.msra.mxu0 %v13621_v10 }
 0x820   : > { %11259 = vmatprep.subr.mxu0 %v13614_v59 }
 0x821   : > { %11260 = vmatpush3.msra.mxu0 %v13614_v59 }
 0x822   : > { %11261 = vmatprep.subr.mxu0 %v13616_v32 }
 0x823   : > { %11262 = vmatpush3.msra.mxu0 %v13616_v32 }
 0x824   : > { %11264 = vmatmul.mubr.msk.f32.vlgmr.msra.gmra.mxu0 %vm5224_vm6, %v13629_v41 }
 0x825   : > { %11266 = vmatprep.mubr.msk.f32.mxu0 %vm5224_vm6, %v13633_v53 }
 0x827   : > { %v13643_v33 = vpop.f32.mrf.mxu1 }
 0x828   : > { %11267 = vmatmul.mubr.msk.f32.gmra.mxu0 %vm5224_vm6, %v13641_v28  ;;  %v5606_v7 = vmul.f32 %v13643_v33, %v13614_v59  ;;  %v5990_v42 = vmul.f32 %v13643_v33, %v13643_v33 }
 0x829   : > { %v13647_v34 = vpop.f32.mrf.mxu1  ;;  %11291 = vmatprep.mubr.msk.f32.mxu0 %vm5224_vm6, %v13598_v6 }
 0x82a   : > { %v5605_v8 = vmul.f32 %v13647_v34, %v13616_v32  ;;  %v5989_v30 = vmul.f32 %v13647_v34, %v13647_v34 }
 0x82b   : > { %v13651_v47 = vpop.f32.mrf.mxu1 }
 0x82c   : > { %11283 = vmatprep.subr.mxu0 %v13651_v47  ;;  %v5608_v16 = vmul.f32 %v13651_v47, %v13618_v50  ;;  %v5992_v45 = vmul.f32 %v13651_v47, %v13651_v47 }
 0x82d   : > { %v13654_v37 = vpop.f32.mrf.mxu1  ;;  %11284 = vmatpush3.msra.mxu0 %v13651_v47 }
 0x82e   : > { %11285 = vmatprep.subr.mxu0 %v13654_v37  ;;  %v5607_v19 = vmul.f32 %v13654_v37, %v13621_v10  ;;  %v5991_v1 = vmul.f32 %v13654_v37, %v13654_v37 }
 0x82f   : > { %11286 = vmatpush3.msra.mxu0 %v13654_v37 }
 0x830   : > { %11287 = vmatprep.subr.mxu0 %v13643_v33 }
 0x831   : > { %11288 = vmatpush3.msra.mxu0 %v13643_v33 }
 0x832   : > { %11289 = vmatprep.subr.mxu0 %v13647_v34 }
 0x833   : > { %11290 = vmatpush3.msra.mxu0 %v13647_v34 }
 0x834   : > { %11292 = vmatmul.mubr.msk.f32.vlgmr.msra.gmra.mxu0 %vm5224_vm6, %v13629_v41  ;;  %11311 = vmatprep.subr.mxu0 %v5608_v16 }
 0x835   : > { %11312 = vmatpush3.msra.mxu0 %v5608_v16  ;;  %11294 = vmatprep.mubr.msk.f32.mxu0 %vm5224_vm6, %v13633_v53 }
 0x836   : > { %11313 = vmatprep.subr.mxu0 %v5607_v19 }
 0x837   : > { %11314 = vmatpush3.msra.mxu0 %v5607_v19 }
 0x838   : > { %11295 = vmatmul.mubr.msk.f32.gmra.mxu0 %vm5224_vm6, %v13641_v28  ;;  %11315 = vmatprep.subr.mxu0 %v5606_v7 }
 0x839   : > { %11316 = vmatpush3.msra.mxu0 %v5606_v7  ;;  %11319 = vmatprep.mubr.msk.f32.mxu0 %vm5224_vm6, %v13598_v6 }
 0x83a   : > { %11317 = vmatprep.subr.mxu0 %v5605_v8 }
 0x83b   : > { %11318 = vmatpush3.msra.mxu0 %v5605_v8 }
 0x83c   : > { %11320 = vmatmul.mubr.msk.f32.vlgmr.msra.gmra.mxu0 %vm5224_vm6, %v13629_v41  ;;  %11339 = vmatprep.subr.mxu0 %v5798_v58 }
 0x83d   : > { %11340 = vmatpush3.msra.mxu0 %v5798_v58  ;;  %11322 = vmatprep.mubr.msk.f32.mxu0 %vm5224_vm6, %v13633_v53 }
 0x83e   : > { %11341 = vmatprep.subr.mxu0 %v5797_v25 }
 0x83f   : > { %11342 = vmatpush3.msra.mxu0 %v5797_v25 }
 0x840   : > { %11323 = vmatmul.mubr.msk.f32.gmra.mxu0 %vm5224_vm6, %v13641_v28  ;;  %11343 = vmatprep.subr.mxu0 %v5796_v27 }
 0x841   : > { %11344 = vmatpush3.msra.mxu0 %v5796_v27  ;;  %11347 = vmatprep.mubr.msk.f32.mxu0 %vm5224_vm6, %v13598_v6 }
 0x842   : > { %11345 = vmatprep.subr.mxu0 %v5795_v5 }
 0x843   : > { %11346 = vmatpush3.msra.mxu0 %v5795_v5 }
 0x844   : > { %11348 = vmatmul.mubr.msk.f32.vlgmr.msra.gmra.mxu0 %vm5224_vm6, %v13629_v41  ;;  %11367 = vmatprep.subr.mxu0 %v5992_v45 }
 0x845   : > { %11368 = vmatpush3.msra.mxu0 %v5992_v45  ;;  %11350 = vmatprep.mubr.msk.f32.mxu0 %vm5224_vm6, %v13633_v53 }
 0x846   : > { %11369 = vmatprep.subr.mxu0 %v5991_v1 }
 0x847   : > { %11370 = vmatpush3.msra.mxu0 %v5991_v1 }
 0x848   : > { %11351 = vmatmul.mubr.msk.f32.gmra.mxu0 %vm5224_vm6, %v13641_v28  ;;  %11371 = vmatprep.subr.mxu0 %v5990_v42 }
 0x849   : > { %11372 = vmatpush3.msra.mxu0 %v5990_v42  ;;  %11375 = vmatprep.mubr.msk.f32.mxu0 %vm5224_vm6, %v13598_v6 }
 0x84a   : > { %11373 = vmatprep.subr.mxu0 %v5989_v30 }
 0x84b   : > { %11374 = vmatpush3.msra.mxu0 %v5989_v30 }
 0x84c   : > { %11376 = vmatmul.mubr.msk.f32.vlgmr.msra.gmra.mxu0 %vm5224_vm6, %v13629_v41  ;;  %11395 = vmatprep.subr.mxu0 %v14056_v31 }
 0x84d   : > { %11378 = vmatprep.mubr.msk.f32.mxu0 %vm5224_vm6, %v13633_v53 }
 0x850   : > { %11379 = vmatmul.mubr.msk.f32.gmra.mxu0 %vm5224_vm6, %v13641_v28 }
 0x851   : > { %11403 = vmatprep.mubr.msk.f32.mxu0 %vm11809_vm0, %v14056_v31 }
 0x8e4   : > { %v11265_v49 = vpop.f32.mrf.mxu0 }
 0x8e6   : > { %v5303_v57 = vpop.f32.mrf.mxu0 }
 0x8e7   : > { %11277 = vmatprep.mubr.msk.f32.mxu1 %vm5224_vm6, %v5303_v57 }
 0x8e8   : > { %v11268_v40 = vpop.f32.mrf.mxu0  ;;  %11278 = vmatmul.mubr.msk.f32.vlgmr.msra.gmra.mxu1 %vm5224_vm6, %v11265_v49 }
 0x8e9   : > { %11298 = vmatpush3.msra.mxu1 %v13603_v51 }
 0x8ea   : > { %v5313_v56 = vpop.f32.mrf.mxu0  ;;  %11299 = vmatprep.subr.mxu1 %v13606_v43 }
 0x8eb   : > { %11280 = vmatprep.mubr.msk.f32.mxu1 %vm5224_vm6, %v5313_v56  ;;  %11300 = vmatpush3.msra.mxu1 %v13606_v43 }
 0x8ec   : > { %11281 = vmatmul.mubr.msk.f32.gmra.mxu1 %vm5224_vm6, %v11268_v40  ;;  %11301 = vmatprep.subr.mxu1 %v13721_v63 }
 0x8ed   : > { %11302 = vmatpush3.msra.mxu1 %v13721_v63 }
 0x8ee   : > { %11303 = vmatprep.subr.mxu1 %v13726_v60 }
 0x8ef   : > { %11304 = vmatpush3.msra.mxu1 %v13726_v60 }
 0x8f0   : > { %11325 = vmatprep.subr.mxu1 %v13603_v51 }
 0x8f4   : > { %v11293_v29 = vpop.f32.mrf.mxu0 }
 0x8f6   : > { %v5485_v24 = vpop.f32.mrf.mxu0 }
 0x8f7   : > { %11305 = vmatprep.mubr.msk.f32.mxu1 %vm5224_vm6, %v5485_v24 }
 0x8f8   : > { %v11296_v52 = vpop.f32.mrf.mxu0  ;;  %11306 = vmatmul.mubr.msk.f32.vlgmr.msra.gmra.mxu1 %vm5224_vm6, %v11293_v29 }
 0x8f9   : > { %11326 = vmatpush3.msra.mxu1 %v13603_v51 }
 0x8fa   : > { %v5495_v4 = vpop.f32.mrf.mxu0  ;;  %11327 = vmatprep.subr.mxu1 %v13606_v43 }
 0x8fb   : > { %11308 = vmatprep.mubr.msk.f32.mxu1 %vm5224_vm6, %v5495_v4  ;;  %11328 = vmatpush3.msra.mxu1 %v13606_v43 }
 0x8fc   : > { %11309 = vmatmul.mubr.msk.f32.gmra.mxu1 %vm5224_vm6, %v11296_v52  ;;  %v11321_v3 = vpop.f32.mrf.mxu0  ;;  %11329 = vmatprep.subr.mxu1 %v13721_v63 }
 0x8fd   : > { %11330 = vmatpush3.msra.mxu1 %v13721_v63 }
 0x8fe   : > { %v5675_v9 = vpop.f32.mrf.mxu0  ;;  %11331 = vmatprep.subr.mxu1 %v13726_v60 }
 0x8ff   : > { %11332 = vmatpush3.msra.mxu1 %v13726_v60  ;;  %11333 = vmatprep.mubr.msk.f32.mxu1 %vm5224_vm6, %v5675_v9 }
 0x900   : > { %v11324_v36 = vpop.f32.mrf.mxu0  ;;  %11334 = vmatmul.mubr.msk.f32.vlgmr.msra.gmra.mxu1 %vm5224_vm6, %v11321_v3  ;;  %11353 = vmatprep.subr.mxu1 %v13603_v51 }
 0x901   : > { %11354 = vmatpush3.msra.mxu1 %v13603_v51 }
 0x902   : > { %v5685_v21 = vpop.f32.mrf.mxu0  ;;  %11355 = vmatprep.subr.mxu1 %v13606_v43 }
 0x903   : > { %11336 = vmatprep.mubr.msk.f32.mxu1 %vm5224_vm6, %v5685_v21  ;;  %11356 = vmatpush3.msra.mxu1 %v13606_v43 }
 0x904   : > { %11337 = vmatmul.mubr.msk.f32.gmra.mxu1 %vm5224_vm6, %v11324_v36  ;;  %v11349_v39 = vpop.f32.mrf.mxu0  ;;  %11357 = vmatprep.subr.mxu1 %v13721_v63 }
 0x905   : > { %11358 = vmatpush3.msra.mxu1 %v13721_v63 }
 0x906   : > { %v5865_v13 = vpop.f32.mrf.mxu0  ;;  %11359 = vmatprep.subr.mxu1 %v13726_v60 }
 0x907   : > { %11360 = vmatpush3.msra.mxu1 %v13726_v60  ;;  %11361 = vmatprep.mubr.msk.f32.mxu1 %vm5224_vm6, %v5865_v13 }
 0x908   : > { %v11352_v44 = vpop.f32.mrf.mxu0  ;;  %11362 = vmatmul.mubr.msk.f32.vlgmr.msra.gmra.mxu1 %vm5224_vm6, %v11349_v39  ;;  %11381 = vmatprep.subr.mxu1 %v13603_v51 }
 0x909   : > { %11382 = vmatpush3.msra.mxu1 %v13603_v51 }
 0x90a   : > { %v5875_v35 = vpop.f32.mrf.mxu0  ;;  %11383 = vmatprep.subr.mxu1 %v13606_v43 }
 0x90b   : > { %11364 = vmatprep.mubr.msk.f32.mxu1 %vm5224_vm6, %v5875_v35  ;;  %11384 = vmatpush3.msra.mxu1 %v13606_v43 }
 0x90c   : > { %11365 = vmatmul.mubr.msk.f32.gmra.mxu1 %vm5224_vm6, %v11352_v44  ;;  %v11377_v38 = vpop.f32.mrf.mxu0  ;;  %11385 = vmatprep.subr.mxu1 %v13721_v63 }
 0x90d   : > { %11386 = vmatpush3.msra.mxu1 %v13721_v63 }
 0x90e   : > { %v6059_v61 = vpop.f32.mrf.mxu0  ;;  %11387 = vmatprep.subr.mxu1 %v13726_v60 }
 0x90f   : > { %11388 = vmatpush3.msra.mxu1 %v13726_v60  ;;  %11389 = vmatprep.mubr.msk.f32.mxu1 %vm5224_vm6, %v6059_v61 }
 0x910   : > { %v11380_v18 = vpop.f32.mrf.mxu0  ;;  %11390 = vmatmul.mubr.msk.f32.vlgmr.msra.gmra.mxu1 %vm5224_vm6, %v11377_v38  ;;  %11406 = vmatprep.subr.mxu1 %v14056_v31 }
 0x911   : > { %11407 = vmatpush3.msk.msra.mxu1 %vm2730_vm1, %v5223_v23 }
 0x912   : > { %v6069_v2 = vpop.f32.mrf.mxu0  ;;  %11408 = vmatprep.subr.mxu1 %v14056_v31 }
 0x913   : > { %11392 = vmatprep.mubr.msk.f32.mxu1 %vm5224_vm6, %v6069_v2  ;;  %11409 = vmatpush3.msra.mxu1 %v5222_v62 }
 0x914   : > { %11393 = vmatmul.mubr.msk.f32.gmra.mxu1 %vm5224_vm6, %v11380_v18  ;;  %11410 = vmatprep.subr.mxu1 %v14056_v31 }
 0x915   : > { %11414 = vmatprep.mubr.msk.f32.mxu1 %vm11809_vm0, %v14056_v31  ;;  %11411 = vmatpush3.msra.mxu1 %v5221_v54 }
 0x916   : > { %11412 = vmatprep.subr.mxu1 %v14056_v31 }
 0x9a8   : > { %v11279_v26 = vpop.f32.mrf.mxu1 }
 0x9a9   : > { %v5982_v28 = vmul.f32 %v11279_v26, %v11279_v26 }
 0x9aa   : > { %v5400_v14 = vpop.f32.mrf.mxu1 }
 0x9ab   : > { %v5981_v25 = vmul.f32 %v5400_v14, %v5400_v14 }
 0x9ac   : > { %v11282_v55 = vpop.f32.mrf.mxu1 }
 0x9ad   : > { %v5984_v27 = vmul.f32 %v11282_v55, %v11282_v55 }
 0x9ae   : > { %v5410_v48 = vpop.f32.mrf.mxu1 }
 0x9af   : > { %v5983_v1 = vmul.f32 %v5410_v48, %v5410_v48 }
 0x9b8   : > { %v11307_v20 = vpop.f32.mrf.mxu1 }
 0x9b9   : > { %v6176_v53 = vmul.f32 %v11307_v20, %v11307_v20  ;;  %v5602_v35 = vmul.f32 %v11307_v20, %v11279_v26 }
 0x9ba   : > { %v5582_v0 = vpop.f32.mrf.mxu1 }
 0x9bb   : > { %v6175_v19 = vmul.f32 %v5582_v0, %v5582_v0  ;;  %v5601_v61 = vmul.f32 %v5582_v0, %v5400_v14 }
 0x9bc   : > { %v11310_v46 = vpop.f32.mrf.mxu1 }
 0x9bd   : > { %v6178_v5 = vmul.f32 %v11310_v46, %v11310_v46  ;;  %v5604_v39 = vmul.f32 %v11310_v46, %v11282_v55 }
 0x9be   : > { %v5592_v15 = vpop.f32.mrf.mxu1 }
 0x9bf   : > { %v6177_v63 = vmul.f32 %v5592_v15, %v5592_v15  ;;  %v5603_v13 = vmul.f32 %v5592_v15, %v5410_v48  ;;  %v5219_v15 = vld [vmem:[%s14099_s10] sm:$0x3]  ;;  %s14107_s10 = sld [smem:[#allocation13_spill]] }
 0x9c0   : > { %v11335_v17 = vpop.f32.mrf.mxu1 }
 0x9c1   : > { %v5792_v18 = vsub.f32 %v11335_v17, %v5602_v35  ;;  %v6363_v17 = vld [vmem:[%s14100_s11] sm:$0xff] }
 0x9c2   : > { %v5772_v6 = vpop.f32.mrf.mxu1 }
 0x9c3   : > { %v5791_v23 = vsub.f32 %v5772_v6, %v5601_v61  ;;  %v6188_v54 = vmul.f32 2.0, %v5792_v18  ;;  %v6364_v6 = vld [vmem:[%s14100_s11 + $0x8] sm:$0xff] }
 0x9c4   : > { %v11338_v51 = vpop.f32.mrf.mxu1 }
 0x9c5   : > { %v5794_v44 = vsub.f32 %v11338_v51, %v5604_v39  ;;  %v6192_v48 = vadd.f32 0.0009, %v6188_v54 }
 0x9c6   : > { %v5782_v43 = vpop.f32.mrf.mxu1 }
 0x9c7   : > { %v5793_v38 = vsub.f32 %v5782_v43, %v5603_v13  ;;  %v6190_v2 = vmul.f32 2.0, %v5794_v44  ;;  %v6693_v44 = vld [vmem:[%s14104_s22 + $0x8] sm:$0xf] }
 0x9c8   : > { %v11363_v12 = vpop.f32.mrf.mxu1 }
 0x9c9   : > { %v5986_v8 = vsub.f32 %v11363_v12, %v5982_v28  ;;  %v6189_v62 = vmul.f32 2.0, %v5793_v38  ;;  %v6194_v12 = vadd.f32 0.0009, %v6190_v2 }
 0x9ca   : > { %v5962_v11 = vpop.f32.mrf.mxu1 }
 0x9cb   : > { %v5985_v60 = vsub.f32 %v5962_v11, %v5981_v25 }
 0x9cc   : > { %v11366_v22 = vpop.f32.mrf.mxu1 }
 0x9cd   : > { %v5988_v49 = vsub.f32 %v11366_v22, %v5984_v27 }
 0x9ce   : > { %v5972_v41 = vpop.f32.mrf.mxu1 }
 0x9cf   : > { %v5987_v56 = vsub.f32 %v5972_v41, %v5983_v1  ;;  %v6187_v41 = vmul.f32 2.0, %v5791_v23 }
 0x9d0   : > { %v11391_v16 = vpop.f32.mrf.mxu1 }
 0x9d1   : > { %v6180_v7 = vsub.f32 %v11391_v16, %v6176_v53  ;;  %v6193_v53 = vadd.f32 0.0009, %v6189_v62  ;;  %v6191_v14 = vadd.f32 0.0009, %v6187_v41 }
 0x9d2   : > { %v6156_v58 = vpop.f32.mrf.mxu1 }
 0x9d3   : > { %v6179_v45 = vsub.f32 %v6156_v58, %v6175_v19  ;;  %v6184_v42 = vadd.f32 %v6180_v7, %v5986_v8  ;;  %v6687_v19 = vld [vmem:[%s14102_s0] sm:$0xff] }
 0x9d4   : > { %v11394_v30 = vpop.f32.mrf.mxu1 }
 0x9d5   : > { %v6182_v57 = vsub.f32 %v11394_v30, %v6178_v5  ;;  %v6183_v29 = vadd.f32 %v6179_v45, %v5985_v60  ;;  %v6196_v4 = vadd.f32 0.0009, %v6184_v42  ;;  %v6688_v5 = vld [vmem:[%s14102_s0 + $0x8] sm:$0xf] }
 0x9d6   : > { %v6166_v40 = vpop.f32.mrf.mxu1 }
 0x9d7   : > { %v6186_v24 = vadd.f32 %v6182_v57, %v5988_v49  ;;  %v6181_v52 = vsub.f32 %v6166_v40, %v6177_v63  ;;  %v6195_v36 = vadd.f32 0.0009, %v6183_v29  ;;  %v6690_v40 = vld [vmem:[%s14103_s18 + $0x8] sm:$0xff] }
 0x9d9   : > { %v6198_v3 = vadd.f32 0.0009, %v6186_v24  ;;  %v6185_v9 = vadd.f32 %v6181_v52, %v5987_v56  ;;  %v6689_v56 = vld [vmem:[%s14103_s18] sm:$0xff] }
 0x9db   : > { %11722 = vrcp.f32 %v6198_v3  ;;  %v6197_v21 = vadd.f32 0.0009, %v6185_v9 }
 0x9dc   : > { %11724 = vrcp.f32 %v6196_v4 }
 0x9dd   : > { %11726 = vrcp.f32 %v6197_v21 }
 0x9de   : > { %11728 = vrcp.f32 %v6195_v36 }
 0x9e8   : > { %v11723_v11 = vpop.eup %11722 }
 0x9e9   : > { %v11725_v22 = vpop.eup %11724  ;;  %v6206_v28 = vmul.f32 %v11723_v11, %v6194_v12 }
 0x9ea   : > { %v11727_v55 = vpop.eup %11726  ;;  %v6202_v0 = vmul.f32 %v11725_v22, %v6192_v48 }
 0x9eb   : > { %11396 = vmatpush3.msk.msra.mxu0 %vm2730_vm1, %v6206_v28  ;;  %v6204_v26 = vmul.f32 %v11727_v55, %v6193_v53  ;;  %v11729_v20 = vpop.eup %11728 }
 0x9ec   : > { %11397 = vmatprep.subr.mxu0 %v14056_v31  ;;  %v6200_v46 = vmul.f32 %v11729_v20, %v6191_v14 }
 0x9ed   : > { %11398 = vmatpush3.msra.mxu0 %v6204_v26 }
 0x9ee   : > { %11399 = vmatprep.subr.mxu0 %v14056_v31 }
 0x9ef   : > { %11400 = vmatpush3.msra.mxu0 %v6202_v0 }
 0x9f0   : > { %11401 = vmatprep.subr.mxu0 %v14056_v31 }
 0x9f1   : > { %11402 = vmatpush3.msra.mxu0 %v6200_v46 }
 0x9f2   : > { %11404 = vmatmul.mubr.msk.f32.vlgmr.msra.gmra.mxu0 %vm6207_vm7, %v5219_v15  ;;  %11417 = vmatprep.subr.mxu0 %v13618_v50 }
 0x9f3   : > { %11418 = vmatpush3.msra.mxu0 %v13618_v50  ;;  %11425 = vmatprep.mubr.msk.f32.mxu0 %vm5224_vm6, %v6363_v17 }
 0x9f4   : > { %11419 = vmatprep.subr.mxu0 %v13621_v10 }
 0x9f5   : > { %11420 = vmatpush3.msra.mxu0 %v13621_v10  ;;  %v6367_v10 = vld [vmem:[%s14101_s16 + $0x10] sm:$0xff] }
 0x9f6   : > { %11421 = vmatprep.subr.mxu0 %v13614_v59 }
 0x9f7   : > { %11422 = vmatpush3.msra.mxu0 %v13614_v59  ;;  %v5220_v59 = vld [vmem:[%s14098_s7] sm:$0xff] }
 0x9f8   : > { %11423 = vmatprep.subr.mxu0 %v13616_v32  ;;  %11413 = vmatpush3.msra.mxu1 %v5220_v59 }
 0x9f9   : > { %11424 = vmatpush3.msra.mxu0 %v13616_v32  ;;  %v6368_v32 = vld [vmem:[%s14101_s16 + $0x18] sm:$0xff] }
 0x9fa   : > { %11426 = vmatmul.mubr.msk.f32.vlgmr.msra.gmra.mxu0 %vm5224_vm6, %v6364_v6  ;;  %11439 = vmatprep.subr.mxu0 %v13651_v47 }
 0x9fb   : > { %11440 = vmatpush3.msra.mxu0 %v13651_v47  ;;  %11447 = vmatprep.mubr.msk.f32.mxu0 %vm5224_vm6, %v6363_v17 }
 0x9fc   : > { %11441 = vmatprep.subr.mxu0 %v13654_v37  ;;  %11428 = vmatprep.subr.mxu1 %v6368_v32 }
 0x9fd   : > { %11442 = vmatpush3.msra.mxu0 %v13654_v37  ;;  %v6366_v37 = vld [vmem:[%s14101_s16 + $0x8] sm:$0xff] }
 0x9fe   : > { %11443 = vmatprep.subr.mxu0 %v13643_v33 }
 0x9ff   : > { %11444 = vmatpush3.msra.mxu0 %v13643_v33  ;;  %v6365_v33 = vld [vmem:[%s14101_s16] sm:$0xff] }
 0xa00   : > { %11445 = vmatprep.subr.mxu0 %v13647_v34 }
 0xa01   : > { %11446 = vmatpush3.msra.mxu0 %v13647_v34 }
 0xa02   : > { %11448 = vmatmul.mubr.msk.f32.vlgmr.msra.gmra.mxu0 %vm5224_vm6, %v6364_v6 }
 0xa03   : > { %11465 = vmatprep.mubr.msk.f32.mxu0 %vm6694_vm8, %v6687_v19 }
 0xab2   : > { %v6280_v50 = vpop.f32.mrf.mxu0 }
 0xab3   : > { %11415 = vmatmul.mubr.msk.f32.vlgmr.msra.gmra.mxu1 %vm6207_vm7, %v6280_v50 }
 0xab4   : > { %v11405_v47 = vpop.f32.mrf.mxu0  ;;  %11429 = vmatpush3.msra.mxu1 %v6368_v32 }
 0xab5   : > { %11430 = vmatprep.subr.mxu1 %v6367_v10 }
 0xab6   : > { %11431 = vmatpush3.msra.mxu1 %v6367_v10 }
 0xab7   : > { %11432 = vmatprep.subr.mxu1 %v6366_v37 }
 0xab8   : > { %11433 = vmatpush3.msra.mxu1 %v6366_v37 }
 0xab9   : > { %11434 = vmatprep.subr.mxu1 %v6365_v33 }
 0xaba   : > { %v11427_v34 = vpop.f32.mrf.mxu0  ;;  %11435 = vmatpush3.msra.mxu1 %v6365_v33 }
 0xabb   : > { %11450 = vmatprep.subr.mxu1 %v6368_v32 }
 0xabc   : > { %v6441_v51 = vpop.f32.mrf.mxu0 }
 0xabd   : > { %11436 = vmatprep.mubr.msk.f32.mxu1 %vm5224_vm6, %v6441_v51 }
 0xabe   : > { %11437 = vmatmul.mubr.msk.f32.vlgmr.msra.gmra.mxu1 %vm5224_vm6, %v11427_v34 }
 0xabf   : > { %11451 = vmatpush3.msra.mxu1 %v6368_v32 }
 0xac0   : > { %11452 = vmatprep.subr.mxu1 %v6367_v10 }
 0xac1   : > { %11453 = vmatpush3.msra.mxu1 %v6367_v10 }
 0xac2   : > { %v11449_v43 = vpop.f32.mrf.mxu0  ;;  %11454 = vmatprep.subr.mxu1 %v6366_v37 }
 0xac3   : > { %11455 = vmatpush3.msra.mxu1 %v6366_v37 }
 0xac4   : > { %v6597_v16 = vpop.f32.mrf.mxu0  ;;  %11456 = vmatprep.subr.mxu1 %v6365_v33 }
 0xac5   : > { %11457 = vmatpush3.msra.mxu1 %v6365_v33  ;;  %11458 = vmatprep.mubr.msk.f32.mxu1 %vm5224_vm6, %v6597_v16  ;;  %v6691_v16 = vld [vmem:[%s14105_s23] sm:$0x3]  ;;  %s14108_s23 = sld [smem:[#allocation14_spill]] }
 0xac6   : > { %11459 = vmatmul.mubr.msk.f32.vlgmr.msra.gmra.mxu1 %vm5224_vm6, %v11449_v43  ;;  %11468 = vmatprep.subr.mxu1 %v6690_v40 }
 0xac7   : > { %11469 = vmatpush3.msra.mxu1 %v6690_v40 }
 0xac8   : > { %11470 = vmatprep.subr.mxu1 %v6689_v56 }
 0xac9   : > { %11471 = vmatpush3.msra.mxu1 %v6689_v56 }
 0xaca   : > { %11482 = vmatprep.subr.mxu1 %v6690_v40 }
 0xb73   : > { %v6356_v7 = vpop.f32.mrf.mxu1 }
 0xb74   : > { %v6360_v8 = vmax.f32 %v6356_v7, 0.0  ;;  %v6692_v7 = vld [vmem:[%s14104_s22] sm:$0xff] }
 0xb75   : > { %v11416_v58 = vpop.f32.mrf.mxu1 }
 0xb76   : > { %9116 = vst.msk [vmem:[%s13044_s28 + $0x4] sm:$0x3] %vm2881_vm4, %v6360_v8  ;;  %v7669_v8 = vld [vmem:[%s14107_s10 + $0x8] sm:$0xff] }
 0xb7e   : > { %v13834_v25 = vpop.f32.mrf.mxu1 }
 0xb7f   : > { %11461 = vmatprep.subr.mxu0 %v13834_v25  ;;  %v7176_v63 = vmul.f32 %v13834_v25, %v13834_v25 }
 0xb80   : > { %v13837_v27 = vpop.f32.mrf.mxu1  ;;  %11462 = vmatpush3.msra.mxu0 %v13834_v25 }
 0xb81   : > { %11463 = vmatprep.subr.mxu0 %v13837_v27  ;;  %v7175_v60 = vmul.f32 %v13837_v27, %v13837_v27 }
 0xb82   : > { %11464 = vmatpush3.msra.mxu0 %v13837_v27 }
 0xb83   : > { %11466 = vmatmul.mubr.msk.f32.vlgmr.msra.gmra.mxu0 %vm6694_vm8, %v6688_v5 }
 0xb84   : > { %11479 = vmatprep.mubr.msk.f32.mxu0 %vm6694_vm8, %v6687_v19 }
 0xb86   : > { %v13845_v45 = vpop.f32.mrf.mxu1 }
 0xb87   : > { %11475 = vmatprep.subr.mxu0 %v13845_v45  ;;  %v7016_v42 = vmul.f32 %v13845_v45, %v13834_v25  ;;  %v7338_v49 = vmul.f32 %v13845_v45, %v13845_v45 }
 0xb88   : > { %v13848_v1 = vpop.f32.mrf.mxu1  ;;  %11476 = vmatpush3.msra.mxu0 %v13845_v45 }
 0xb89   : > { %11477 = vmatprep.subr.mxu0 %v13848_v1  ;;  %v7015_v30 = vmul.f32 %v13848_v1, %v13837_v27  ;;  %v7337_v57 = vmul.f32 %v13848_v1, %v13848_v1 }
 0xb8a   : > { %11478 = vmatpush3.msra.mxu0 %v13848_v1 }
 0xb8b   : > { %11480 = vmatmul.mubr.msk.f32.vlgmr.msra.gmra.mxu0 %vm6694_vm8, %v6688_v5  ;;  %11489 = vmatprep.subr.mxu0 %v7016_v42 }
 0xb8c   : > { %11490 = vmatpush3.msra.mxu0 %v7016_v42  ;;  %11493 = vmatprep.mubr.msk.f32.mxu0 %vm6694_vm8, %v6687_v19 }
 0xb8d   : > { %11491 = vmatprep.subr.mxu0 %v7015_v30 }
 0xb8e   : > { %11492 = vmatpush3.msra.mxu0 %v7015_v30 }
 0xb8f   : > { %11494 = vmatmul.mubr.msk.f32.vlgmr.msra.gmra.mxu0 %vm6694_vm8, %v6688_v5  ;;  %11503 = vmatprep.subr.mxu0 %v7176_v63 }
 0xb90   : > { %11504 = vmatpush3.msra.mxu0 %v7176_v63  ;;  %11507 = vmatprep.mubr.msk.f32.mxu0 %vm6694_vm8, %v6687_v19 }
 0xb91   : > { %11505 = vmatprep.subr.mxu0 %v7175_v60 }
 0xb92   : > { %11506 = vmatpush3.msra.mxu0 %v7175_v60 }
 0xb93   : > { %11508 = vmatmul.mubr.msk.f32.vlgmr.msra.gmra.mxu0 %vm6694_vm8, %v6688_v5  ;;  %11517 = vmatprep.subr.mxu0 %v7338_v49 }
 0xb94   : > { %11518 = vmatpush3.msra.mxu0 %v7338_v49  ;;  %11521 = vmatprep.mubr.msk.f32.mxu0 %vm6694_vm8, %v6687_v19  ;;  %v7667_v19 = vld [vmem:[%s14106_s26] sm:$0xff] }
 0xb95   : > { %11519 = vmatprep.subr.mxu0 %v7337_v57  ;;  %v7959_v49 = vld [vmem:[%s14108_s23] sm:$0xf] }
 0xb96   : > { %11520 = vmatpush3.msra.mxu0 %v7337_v57 }
 0xb97   : > { %11522 = vmatmul.mubr.msk.f32.vlgmr.msra.gmra.mxu0 %vm6694_vm8, %v6688_v5  ;;  %11531 = vmatprep.subr.mxu0 %v14056_v31 }
 0xb98   : > { %11535 = vmatprep.mubr.msk.f32.mxu0 %vm11809_vm0, %v14056_v31 }
 0xc43   : > { %v11467_v29 = vpop.f32.mrf.mxu0 }
 0xc45   : > { %v6767_v24 = vpop.f32.mrf.mxu0 }
 0xc46   : > { %11472 = vmatprep.mubr.msk.f32.mxu1 %vm6694_vm8, %v6767_v24 }
 0xc47   : > { %11473 = vmatmul.mubr.msk.f32.vlgmr.msra.gmra.mxu1 %vm6694_vm8, %v11467_v29 }
 0xc48   : > { %11483 = vmatpush3.msra.mxu1 %v6690_v40 }
 0xc49   : > { %11484 = vmatprep.subr.mxu1 %v6689_v56 }
 0xc4a   : > { %11485 = vmatpush3.msra.mxu1 %v6689_v56 }
 0xc4b   : > { %v11481_v52 = vpop.f32.mrf.mxu0  ;;  %11496 = vmatprep.subr.mxu1 %v6690_v40 }
 0xc4d   : > { %v6923_v4 = vpop.f32.mrf.mxu0 }
 0xc4e   : > { %11486 = vmatprep.mubr.msk.f32.mxu1 %vm6694_vm8, %v6923_v4 }
 0xc4f   : > { %11487 = vmatmul.mubr.msk.f32.vlgmr.msra.gmra.mxu1 %vm6694_vm8, %v11481_v52  ;;  %v11495_v3 = vpop.f32.mrf.mxu0 }
 0xc50   : > { %11497 = vmatpush3.msra.mxu1 %v6690_v40 }
 0xc51   : > { %v7083_v9 = vpop.f32.mrf.mxu0  ;;  %11498 = vmatprep.subr.mxu1 %v6689_v56 }
 0xc52   : > { %11499 = vmatpush3.msra.mxu1 %v6689_v56  ;;  %11500 = vmatprep.mubr.msk.f32.mxu1 %vm6694_vm8, %v7083_v9 }
 0xc53   : > { %11501 = vmatmul.mubr.msk.f32.vlgmr.msra.gmra.mxu1 %vm6694_vm8, %v11495_v3  ;;  %v11509_v36 = vpop.f32.mrf.mxu0  ;;  %11510 = vmatprep.subr.mxu1 %v6690_v40  ;;  %v7960_v3 = vld [vmem:[%s11953_s20] sm:$0xff] }
 0xc54   : > { %11511 = vmatpush3.msra.mxu1 %v6690_v40 }
 0xc55   : > { %v7243_v21 = vpop.f32.mrf.mxu0  ;;  %11512 = vmatprep.subr.mxu1 %v6689_v56 }
 0xc56   : > { %11513 = vmatpush3.msra.mxu1 %v6689_v56  ;;  %11514 = vmatprep.mubr.msk.f32.mxu1 %vm6694_vm8, %v7243_v21 }
 0xc57   : > { %11515 = vmatmul.mubr.msk.f32.vlgmr.msra.gmra.mxu1 %vm6694_vm8, %v11509_v36  ;;  %v11523_v39 = vpop.f32.mrf.mxu0  ;;  %11524 = vmatprep.subr.mxu1 %v6690_v40 }
 0xc58   : > { %11525 = vmatpush3.msra.mxu1 %v6690_v40 }
 0xc59   : > { %v7405_v13 = vpop.f32.mrf.mxu0  ;;  %11526 = vmatprep.subr.mxu1 %v6689_v56 }
 0xc5a   : > { %11527 = vmatpush3.msra.mxu1 %v6689_v56  ;;  %11528 = vmatprep.mubr.msk.f32.mxu1 %vm6694_vm8, %v7405_v13 }
 0xc5b   : > { %11529 = vmatmul.mubr.msk.f32.vlgmr.msra.gmra.mxu1 %vm6694_vm8, %v11523_v39  ;;  %11538 = vmatprep.subr.mxu1 %v14056_v31 }
 0xc5c   : > { %11542 = vmatprep.mubr.msk.f32.mxu1 %vm11809_vm0, %v14056_v31  ;;  %11539 = vmatpush3.msk.msra.mxu1 %vm2730_vm1, %v6693_v44 }
 0xc5d   : > { %11540 = vmatprep.subr.mxu1 %v14056_v31 }
 0xc5e   : > { %11541 = vmatpush3.msra.mxu1 %v6692_v7 }
 0xc5f   : > { %11552 = vmatprep.subr.mxu1 %v14056_v31 }
 0xd07   : > { %v11474_v35 = vpop.f32.mrf.mxu1 }
 0xd08   : > { %v7334_v12 = vmul.f32 %v11474_v35, %v11474_v35 }
 0xd09   : > { %v6848_v38 = vpop.f32.mrf.mxu1 }
 0xd0a   : > { %v7333_v41 = vmul.f32 %v6848_v38, %v6848_v38 }
 0xd0f   : > { %v11488_v61 = vpop.f32.mrf.mxu1 }
 0xd10   : > { %v7496_v11 = vmul.f32 %v11488_v61, %v11488_v61  ;;  %v7014_v17 = vmul.f32 %v11488_v61, %v11474_v35 }
 0xd11   : > { %v7004_v18 = vpop.f32.mrf.mxu1 }
 0xd12   : > { %v7495_v53 = vmul.f32 %v7004_v18, %v7004_v18  ;;  %v7013_v6 = vmul.f32 %v7004_v18, %v6848_v38 }
 0xd13   : > { %v11502_v2 = vpop.f32.mrf.mxu1 }
 0xd14   : > { %v7174_v59 = vsub.f32 %v11502_v2, %v7014_v17  ;;  %v7962_v2 = vld [vmem:[%s11963_s4] sm:$0xf] }
 0xd15   : > { %v7164_v23 = vpop.f32.mrf.mxu1 }
 0xd16   : > { %v7173_v32 = vsub.f32 %v7164_v23, %v7013_v6  ;;  %v7502_v50 = vmul.f32 2.0, %v7174_v59 }
 0xd17   : > { %v11516_v62 = vpop.f32.mrf.mxu1 }
 0xd18   : > { %v7336_v28 = vsub.f32 %v11516_v62, %v7334_v12  ;;  %v7501_v10 = vmul.f32 2.0, %v7173_v32  ;;  %v7504_v47 = vadd.f32 0.0009, %v7502_v50 }
 0xd19   : > { %v7324_v54 = vpop.f32.mrf.mxu1 }
 0xd1a   : > { %v7335_v26 = vsub.f32 %v7324_v54, %v7333_v41  ;;  %v7503_v33 = vadd.f32 0.0009, %v7501_v10 }
 0xd1b   : > { %v11530_v22 = vpop.f32.mrf.mxu1 }
 0xd1c   : > { %v7498_v55 = vsub.f32 %v11530_v22, %v7496_v11 }
 0xd1d   : > { %v7486_v48 = vpop.f32.mrf.mxu1 }
 0xd1e   : > { %v7500_v20 = vadd.f32 %v7498_v55, %v7336_v28  ;;  %v7497_v14 = vsub.f32 %v7486_v48, %v7495_v53 }
 0xd20   : > { %v7506_v0 = vadd.f32 0.0009, %v7500_v20  ;;  %v7499_v46 = vadd.f32 %v7497_v14, %v7335_v26 }
 0xd22   : > { %11730 = vrcp.f32 %v7506_v0  ;;  %v7505_v15 = vadd.f32 0.0009, %v7499_v46 }
 0xd24   : > { %11732 = vrcp.f32 %v7505_v15 }
 0xd2f   : > { %v11731_v37 = vpop.eup %11730 }
 0xd30   : > { %v7510_v34 = vmul.f32 %v11731_v37, %v7504_v47 }
 0xd31   : > { %v11733_v51 = vpop.eup %11732 }
 0xd32   : > { %11532 = vmatpush3.msk.msra.mxu0 %vm2730_vm1, %v7510_v34  ;;  %v7508_v43 = vmul.f32 %v11733_v51, %v7503_v33 }
 0xd33   : > { %11533 = vmatprep.subr.mxu0 %v14056_v31 }
 0xd34   : > { %11534 = vmatpush3.msra.mxu0 %v7508_v43  ;;  %v7961_v43 = vld [vmem:[%s11958_s27] sm:$0x3] }
 0xd35   : > { %11536 = vmatmul.mubr.msk.f32.vlgmr.msra.gmra.mxu0 %vm7511_vm9, %v6691_v16  ;;  %11545 = vmatprep.subr.mxu0 %v14056_v31 }
 0xd36   : > { %11546 = vmatpush3.msra.mxu0 %v13834_v25  ;;  %11549 = vmatprep.mubr.msk.f32.mxu0 %vm11809_vm0, %v14056_v31  ;;  %v7668_v25 = vld [vmem:[%s14107_s10] sm:$0xff] }
 0xd37   : > { %11547 = vmatprep.subr.mxu0 %v14056_v31 }
 0xd38   : > { %11548 = vmatpush3.msra.mxu0 %v13837_v27 }
 0xd39   : > { %11550 = vmatmul.mubr.msk.f32.vlgmr.msra.gmra.mxu0 %vm6694_vm8, %v7667_v19  ;;  %11559 = vmatprep.subr.mxu0 %v14056_v31 }
 0xd3a   : > { %11560 = vmatpush3.msra.mxu0 %v13845_v45  ;;  %11563 = vmatprep.mubr.msk.f32.mxu0 %vm11809_vm0, %v14056_v31 }
 0xd3b   : > { %11561 = vmatprep.subr.mxu0 %v14056_v31 }
 0xd3c   : > { %11562 = vmatpush3.msra.mxu0 %v13848_v1 }
 0xd3d   : > { %11564 = vmatmul.mubr.msk.f32.vlgmr.msra.gmra.mxu0 %vm6694_vm8, %v7667_v19  ;;  %11573 = vmatprep.subr.mxu0 %v14056_v31 }
 0xd3e   : > { %11575 = vmatprep.mubr.msk.f32.mxu0 %vm11809_vm0, %v14056_v31 }
 0xdf5   : > { %v7584_v58 = vpop.f32.mrf.mxu0 }
 0xdf6   : > { %11543 = vmatmul.mubr.msk.f32.vlgmr.msra.gmra.mxu1 %vm7511_vm9, %v7584_v58 }
 0xdf7   : > { %v11537_v27 = vpop.f32.mrf.mxu0  ;;  %11553 = vmatpush3.msra.mxu1 %v7669_v8  ;;  %11556 = vmatprep.mubr.msk.f32.mxu1 %vm11809_vm0, %v14056_v31 }
 0xdf8   : > { %11554 = vmatprep.subr.mxu1 %v14056_v31 }
 0xdf9   : > { %v7739_v5 = vpop.f32.mrf.mxu0  ;;  %11555 = vmatpush3.msra.mxu1 %v7668_v25 }
 0xdfa   : > { %11557 = vmatmul.mubr.msk.f32.vlgmr.msra.gmra.mxu1 %vm6694_vm8, %v7739_v5  ;;  %11566 = vmatprep.subr.mxu1 %v14056_v31 }
 0xdfb   : > { %v11551_v45 = vpop.f32.mrf.mxu0  ;;  %11567 = vmatpush3.msra.mxu1 %v7669_v8  ;;  %11570 = vmatprep.mubr.msk.f32.mxu1 %vm11809_vm0, %v14056_v31 }
 0xdfc   : > { %11568 = vmatprep.subr.mxu1 %v14056_v31 }
 0xdfd   : > { %v7882_v1 = vpop.f32.mrf.mxu0  ;;  %11569 = vmatpush3.msra.mxu1 %v7668_v25 }
 0xdfe   : > { %11571 = vmatmul.mubr.msk.f32.vlgmr.msra.gmra.mxu1 %vm6694_vm8, %v7882_v1  ;;  %11578 = vmatprep.subr.mxu1 %v14056_v31 }
 0xdff   : > { %v11565_v42 = vpop.f32.mrf.mxu0  ;;  %11580 = vmatprep.mubr.msk.f32.mxu1 %vm11809_vm0, %v14056_v31  ;;  %11579 = vmatpush3.msra.mxu1 %v7960_v3 }
 0xe00   : > { %11588 = vmatprep.subr.mxu1 %v14056_v31 }
 0xeb6   : > { %v7660_v30 = vpop.f32.mrf.mxu1 }
 0xeb7   : > { %v7664_v63 = vmax.f32 %v7660_v30, 0.0 }
 0xeb8   : > { %v11544_v60 = vpop.f32.mrf.mxu1 }
 0xeb9   : > { %9149 = vst.msk [vmem:[%s13044_s28 + $0x6] sm:$0x3] %vm2881_vm4, %v7664_v63 }
 0xeba   : > { %v7812_v57 = vpop.f32.mrf.mxu1 }
 0xebb   : > { %11574 = vmatpush3.msra.mxu0 %v7812_v57  ;;  %v8399_v52 = vmul.f32 %v7812_v57, %v7812_v57 }
 0xebc   : > { %v11558_v40 = vpop.f32.mrf.mxu1  ;;  %11576 = vmatmul.mubr.msk.f32.vlgmr.msra.gmra.mxu0 %vm7963_vm10, %v7959_v49  ;;  %11583 = vmatprep.subr.mxu0 %v14056_v31 }
 0xebd   : > { %11585 = vmatprep.mubr.msk.f32.mxu0 %vm11809_vm0, %v14056_v31 }
 0xebe   : > { %v7955_v56 = vpop.f32.mrf.mxu1 }
 0xebf   : > { %v8254_v29 = vmul.f32 %v7955_v56, %v7812_v57  ;;  %11584 = vmatpush3.msra.mxu0 %v7955_v56  ;;  %v8545_v4 = vmul.f32 %v7955_v56, %v7955_v56 }
 0xec0   : > { %v11572_v24 = vpop.f32.mrf.mxu1  ;;  %11586 = vmatmul.mubr.msk.f32.vlgmr.msra.gmra.mxu0 %vm7963_vm10, %v7959_v49  ;;  %11593 = vmatprep.subr.mxu0 %v14056_v31 }
 0xec1   : > { %11594 = vmatpush3.msra.mxu0 %v8254_v29  ;;  %11595 = vmatprep.mubr.msk.f32.mxu0 %vm11809_vm0, %v14056_v31 }
 0xec2   : > { %11603 = vmatprep.subr.mxu0 %v14056_v31 }
 0xec4   : > { %11596 = vmatmul.mubr.msk.f32.vlgmr.msra.gmra.mxu0 %vm7963_vm10, %v7959_v49 }
 0xec5   : > { %11604 = vmatpush3.msra.mxu0 %v8399_v52  ;;  %11605 = vmatprep.mubr.msk.f32.mxu0 %vm11809_vm0, %v14056_v31 }
 0xec6   : > { %11613 = vmatprep.subr.mxu0 %v14056_v31 }
 0xec8   : > { %11606 = vmatmul.mubr.msk.f32.vlgmr.msra.gmra.mxu0 %vm7963_vm10, %v7959_v49 }
 0xec9   : > { %11614 = vmatpush3.msra.mxu0 %v8545_v4  ;;  %11615 = vmatprep.mubr.msk.f32.mxu0 %vm11809_vm0, %v14056_v31 }
 0xeca   : > { %11623 = vmatprep.subr.mxu0 %v14056_v31 }
 0xecc   : > { %11616 = vmatmul.mubr.msk.f32.vlgmr.msra.gmra.mxu0 %vm7963_vm10, %v7959_v49 }
 0xecd   : > { %11625 = vmatprep.mubr.msk.f32.mxu0 %vm11809_vm0, %v14056_v31 }
 0xf7c   : > { %v8033_v9 = vpop.f32.mrf.mxu0 }
 0xf7d   : > { %11581 = vmatmul.mubr.msk.f32.vlgmr.msra.gmra.mxu1 %vm7963_vm10, %v8033_v9 }
 0xf7e   : > { %v11577_v36 = vpop.f32.mrf.mxu0  ;;  %11589 = vmatpush3.msra.mxu1 %v7960_v3  ;;  %11590 = vmatprep.mubr.msk.f32.mxu1 %vm11809_vm0, %v14056_v31 }
 0xf7f   : > { %11598 = vmatprep.subr.mxu1 %v14056_v31 }
 0xf80   : > { %v8176_v21 = vpop.f32.mrf.mxu0 }
 0xf81   : > { %11591 = vmatmul.mubr.msk.f32.vlgmr.msra.gmra.mxu1 %vm7963_vm10, %v8176_v21 }
 0xf82   : > { %v11587_v39 = vpop.f32.mrf.mxu0  ;;  %11599 = vmatpush3.msra.mxu1 %v7960_v3  ;;  %11600 = vmatprep.mubr.msk.f32.mxu1 %vm11809_vm0, %v14056_v31 }
 0xf83   : > { %11608 = vmatprep.subr.mxu1 %v14056_v31 }
 0xf84   : > { %v8321_v13 = vpop.f32.mrf.mxu0 }
 0xf85   : > { %11601 = vmatmul.mubr.msk.f32.vlgmr.msra.gmra.mxu1 %vm7963_vm10, %v8321_v13 }
 0xf86   : > { %v11597_v44 = vpop.f32.mrf.mxu0  ;;  %11609 = vmatpush3.msra.mxu1 %v7960_v3  ;;  %11610 = vmatprep.mubr.msk.f32.mxu1 %vm11809_vm0, %v14056_v31 }
 0xf87   : > { %11618 = vmatprep.subr.mxu1 %v14056_v31 }
 0xf88   : > { %v8466_v35 = vpop.f32.mrf.mxu0 }
 0xf89   : > { %11611 = vmatmul.mubr.msk.f32.vlgmr.msra.gmra.mxu1 %vm7963_vm10, %v8466_v35 }
 0xf8a   : > { %v11607_v38 = vpop.f32.mrf.mxu0  ;;  %11619 = vmatpush3.msra.mxu1 %v7960_v3  ;;  %11620 = vmatprep.mubr.msk.f32.mxu1 %vm11809_vm0, %v14056_v31 }
 0xf8b   : > { %11628 = vmatprep.subr.mxu1 %v14056_v31 }
 0xf8c   : > { %v8612_v61 = vpop.f32.mrf.mxu0 }
 0xf8d   : > { %11621 = vmatmul.mubr.msk.f32.vlgmr.msra.gmra.mxu1 %vm7963_vm10, %v8612_v61 }
 0xf8e   : > { %v11617_v18 = vpop.f32.mrf.mxu0  ;;  %11630 = vmatprep.mubr.msk.f32.mxu1 %vm11809_vm0, %v14056_v31  ;;  %11629 = vmatpush3.msk.msra.mxu1 %vm2730_vm1, %v7962_v2 }
0x103d   : > { %v8106_v23 = vpop.f32.mrf.mxu1 }
0x103e   : > { %v8543_v53 = vmul.f32 %v8106_v23, %v8106_v23 }
0x103f   : > { %v11582_v62 = vpop.f32.mrf.mxu1 }
0x1041   : > { %v8249_v54 = vpop.f32.mrf.mxu1 }
0x1042   : > { %v8689_v22 = vmul.f32 %v8249_v54, %v8249_v54  ;;  %v8253_v17 = vmul.f32 %v8249_v54, %v8106_v23 }
0x1043   : > { %v11592_v12 = vpop.f32.mrf.mxu1 }
0x1044   : > { %v8699_v55 = vadd.f32 %v8689_v22, %v8543_v53  ;;  %v8697_v59 = vmul.f32 2.0, %v8253_v17 }
0x1045   : > { %v8394_v11 = vpop.f32.mrf.mxu1 }
0x1046   : > { %v8700_v20 = vadd.f32 0.0001, %v8699_v55  ;;  %v8398_v6 = vsub.f32 %v8394_v11, %v8253_v17  ;;  %v8698_v10 = vadd.f32 0.0001, %v8697_v59 }
0x1047   : > { %v11602_v41 = vpop.f32.mrf.mxu1 }
0x1048   : > { %11734 = vrcp.f32 %v8700_v20  ;;  %v8692_v32 = vmul.f32 2.0, %v8398_v6 }
0x1049   : > { %v8539_v28 = vpop.f32.mrf.mxu1 }
0x104a   : > { %v8544_v14 = vsub.f32 %v8539_v28, %v8543_v53  ;;  %v8693_v47 = vadd.f32 0.0009, %v8692_v32 }
0x104b   : > { %v11612_v48 = vpop.f32.mrf.mxu1 }
0x104d   : > { %v8685_v26 = vpop.f32.mrf.mxu1 }
0x104e   : > { %v8690_v0 = vsub.f32 %v8685_v26, %v8689_v22 }
0x104f   : > { %v11622_v46 = vpop.f32.mrf.mxu1 }
0x1050   : > { %v8691_v31 = vadd.f32 %v8690_v0, %v8544_v14 }
0x1052   : > { %v8694_v15 = vadd.f32 0.0009, %v8691_v31 }
0x1054   : > { %11736 = vrcp.f32 %v8694_v15 }
0x1055   : > { %v11735_v50 = vpop.eup %11734 }
0x1056   : > { %v8702_v33 = vmul.f32 %v11735_v50, %v8698_v10 }
0x1061   : > { %v11737_v37 = vpop.eup %11736 }
0x1062   : > { %v8696_v34 = vmul.f32 %v11737_v37, %v8693_v47 }
0x1064   : > { %v8703_v51 = vmul.f32 %v8702_v33, %v8696_v34 }
0x1066   : > { %11624 = vmatpush3.msk.msra.mxu0 %vm2730_vm1, %v8703_v51 }
0x1067   : > { %11626 = vmatmul.mubr.msk.f32.vlgmr.msra.gmra.mxu0 %vm8704_vm11, %v7961_v43 }
0x1127   : > { %v8777_v16 = vpop.f32.mrf.mxu0 }
0x1128   : > { %11631 = vmatmul.mubr.msk.f32.vlgmr.msra.gmra.mxu1 %vm8704_vm11, %v8777_v16 }
0x1129   : > { %v11627_v19 = vpop.f32.mrf.mxu0 }
0x11e8   : > { %v8853_v7 = vpop.f32.mrf.mxu1 }
0x11e9   : > { %v8857_v8 = vmax.f32 %v8853_v7, 0.0 }
0x11ea   : > { %v11632_v58 = vpop.f32.mrf.mxu1 }
0x11eb   : > { %9168 = vst.msk [vmem:[%s13044_s28 + $0x8] sm:$0x3] %vm2881_vm4, %v8857_v8 }
0x11ec PF: > { %s71_s15 = sadd.s32 1, %s11776_s15  }
0x11ed   : > { %p68_p5 = scmp.ge.s32.totalorder %s71_s15, 4  }
0x11ef   :  { %70 = sbr.rel (!%p68_p5) target bundleno = 53 (0x35), region = 207 }

</bundles_post_ra>
